<compile_context>
chip_gen: v7x
topology: tpu7x:2x2x1
jax: 0.10.0
libtpu: 0.0.40
codegen_flags: <defaults>
</compile_context>

<pallas_src>
import jax
import jax.numpy as jnp
from jax import lax
from jax.experimental import pallas as pl
from jax.experimental.pallas import tpu as pltpu

NEG_SLOPE = 0.01   # nn.LeakyReLU default
HIDDEN = 512
N_RESIDUAL = 7     # self.block is applied 7 times (shared weights)
OUT_PAD = 128      # lane-dense padded width of the final projection


def _leaky_relu(x):
    # Valid for 0 < NEG_SLOPE < 1: max(x, 0.01*x) == leaky_relu(x).
    return jnp.maximum(x, NEG_SLOPE * x)


def discriminator_kernel(x_ref, w1_ref, b1_ref, wb_ref, bb_ref, ws_ref, bs_ref, o_ref):
    # ts_to_feature: Linear(ts_dim, 512) + LeakyReLU   (bf16 MXU, f32 accumulate).
    x = x_ref[...].astype(jnp.bfloat16)
    h = jnp.dot(x, w1_ref[...], preferred_element_type=jnp.float32)
    h = _leaky_relu(h + b1_ref[...])               # (1,512) bias sublane-broadcasts

    wb = wb_ref[...]                               # shared bf16 weight, VMEM-resident
    bb = bb_ref[...]                               # (1,512) f32; NOT broadcast to (TB,512)

    # 7 applications of the shared residual block: h = h + LeakyReLU(h @ Wb + bb).
    # Carry (h_f32, h_bf16): the bf16 image is produced in the same elementwise
    # pass as the residual add, so the next block's MXU operand needs no extra
    # full re-read/cast of h.  The residual itself stays f32 (no compounding
    # bf16 carry error beyond the MXU-operand rounding).
    def body(_, carry):
        h32, h16 = carry
        acc = jnp.dot(h16, wb, preferred_element_type=jnp.float32)
        h32 = h32 + _leaky_relu(acc + bb)
        return h32, h32.astype(jnp.bfloat16)

    _, h16 = lax.fori_loop(0, N_RESIDUAL, body, (h, h.astype(jnp.bfloat16)),
                           unroll=True)

    # to_score: Linear(512, 1), computed lane-dense as a (TB, 128) tile
    # (columns 1..127 carry zero weights; the wrapper slices column 0).
    score = jnp.dot(h16, ws_ref[...], preferred_element_type=jnp.float32)
    o_ref[...] = (score + bs_ref[...]).astype(o_ref.dtype)


def _choose_tb(B, block_b):
    """Batch tile: multiple of 8, MXU-friendly, minimal padding, >=2 steps if possible."""
    b_pad8 = max(8, ((B + 7) // 8) * 8)
    block_b = max(8, (block_b // 8) * 8)
    if b_pad8 <= block_b and b_pad8 <= 256:
        # Small batch: one tile, padded only to the 8-row sublane multiple.
        return b_pad8
    candidates = [c for c in (1024, 512, 384, 256, 128) if c <= block_b]
    if not candidates:
        candidates = [block_b]

    def key(c):
        steps = -(-b_pad8 // c)
        waste = steps * c - B
        # Prefer >=2 grid steps (v7x megacore), then least padded rows, then bigger tile.
        return (0 if steps >= 2 else 1, waste, -c)

    return min(candidates, key=key)


def discriminator_forward(x, params, block_b=512):
    w1, b1, wb, bb, ws, bs = params
    B, ts_dim = x.shape

    TB = _choose_tb(B, block_b)
    B_pad = ((B + TB - 1) // TB) * TB
    TS_PAD = ((max(ts_dim, 1) + 127) // 128) * 128   # lane-dense first matmul

    # Zero-pad batch rows and ts columns; zero-pad w1's extra input rows to match.
    x_p = jnp.pad(x, ((0, B_pad - B), (0, TS_PAD - ts_dim)))
    w1_bf = jnp.pad(w1, ((0, TS_PAD - ts_dim), (0, 0))).astype(jnp.bfloat16)
    wb_bf = wb.astype(jnp.bfloat16)
    ws_pad = jnp.pad(ws, ((0, 0), (0, OUT_PAD - ws.shape[1]))).astype(jnp.bfloat16)
    bs_pad = jnp.pad(bs, ((0, 0), (0, OUT_PAD - bs.shape[1])))

    # bf16 padded-score writeback (only column 0 is real) when the tile height is
    # a multiple of the bf16 sublane packing; otherwise keep f32 for clean layout.
    out_dtype = jnp.bfloat16 if TB % 16 == 0 else jnp.float32
    out_itemsize = jnp.dtype(out_dtype).itemsize

    nb = B_pad // TB
    flops = 2 * B_pad * (TS_PAD * HIDDEN + N_RESIDUAL * HIDDEN * HIDDEN + HIDDEN * OUT_PAD)
    bytes_accessed = (B_pad * TS_PAD * 4 + B_pad * OUT_PAD * out_itemsize
                      + w1_bf.size * 2 + wb_bf.size * 2 + ws_pad.size * 2
                      + b1.size * 4 + bb.size * 4 + bs_pad.size * 4)

    out_padded = pl.pallas_call(
        discriminator_kernel,
        out_shape=jax.ShapeDtypeStruct((B_pad, OUT_PAD), out_dtype),
        grid=(nb,),
        in_specs=[
            pl.BlockSpec((TB, TS_PAD), lambda i: (i, 0)),        # x: batch-tiled
            pl.BlockSpec((TS_PAD, HIDDEN), lambda i: (0, 0)),    # w1: resident
            pl.BlockSpec((1, HIDDEN), lambda i: (0, 0)),         # b1: resident
            pl.BlockSpec((HIDDEN, HIDDEN), lambda i: (0, 0)),    # wb: resident
            pl.BlockSpec((1, HIDDEN), lambda i: (0, 0)),         # bb: resident
            pl.BlockSpec((HIDDEN, OUT_PAD), lambda i: (0, 0)),   # ws (padded): resident
            pl.BlockSpec((1, OUT_PAD), lambda i: (0, 0)),        # bs (padded): resident
        ],
        out_specs=pl.BlockSpec((TB, OUT_PAD), lambda i: (i, 0)),
        compiler_params=pltpu.CompilerParams(
            dimension_semantics=("parallel",),
            # Only needed when sweeping TB above 512 (v6e); v5e (16 MiB scoped
            # default) and v7x (64 MiB physical) should keep TB <= 512.
            vmem_limit_bytes=(64 * 1024 * 1024 if TB > 512 else None),
        ),
        cost_estimate=pl.CostEstimate(
            flops=flops, transcendentals=0, bytes_accessed=bytes_accessed),
    )(x_p, w1_bf, b1, wb_bf, bb, ws_pad, bs_pad)

    return out_padded[:B, :1].astype(jnp.float32)


def init_params(key, ts_dim):
    """Deterministic init mimicking PyTorch's default U(-1/sqrt(fan_in), 1/sqrt(fan_in))."""
    ks = jax.random.split(key, 6)

    def uni(k, shape, fan_in):
        bound = 1.0 / jnp.sqrt(fan_in)
        return jax.random.uniform(k, shape, jnp.float32, -bound, bound)

    w1 = uni(ks[0], (ts_dim, HIDDEN), ts_dim)       # Linear(ts_dim, 512), stored (in, out)
    b1 = uni(ks[1], (1, HIDDEN), ts_dim)
    wb = uni(ks[2], (HIDDEN, HIDDEN), HIDDEN)       # Linear(512, 512)
    bb = uni(ks[3], (1, HIDDEN), HIDDEN)
    ws = uni(ks[4], (HIDDEN, 1), HIDDEN)            # Linear(512, 1)
    bs = uni(ks[5], (1, 1), HIDDEN)
    return (w1, b1, wb, bb, ws, bs)


def reference_forward(x, params):
    """Pure-JAX f32 reference replicating the PyTorch forward exactly."""
    w1, b1, wb, bb, ws, bs = params

    def lrelu(v):
        return jnp.where(v > 0, v, NEG_SLOPE * v)

    h = lrelu(x @ w1 + b1)
    for _ in range(N_RESIDUAL):
        h = h + lrelu(h @ wb + bb)
    return h @ ws + bs


if __name__ == "__main__":
    key = jax.random.PRNGKey(0)
    k_param, k_x = jax.random.split(key)

    B, ts_dim = 16, 32
    params = init_params(k_param, ts_dim)
    x = jax.random.normal(k_x, (B, ts_dim), jnp.float32)

    # Small batch tile (8) so the smoke test exercises a multi-step batch grid.
    out = discriminator_forward(x, params, block_b=8)
    out = jax.block_until_ready(out)

    ref = reference_forward(x, params)
    assert out.shape == (B, 1)
    # bf16 MXU inputs with f32 accumulation: modest tolerance vs the f32 reference.
    assert jnp.allclose(out, ref, atol=5e-2, rtol=5e-2), "mismatch vs reference"

    print("KERNEL_OK")
</pallas_src>

<mosaic_0001>
module attributes {stable_mosaic.version = 11 : i64} {
  func.func @discriminator_kernel(%arg0: i32, %arg1: memref<8x128xf32, #tpu.memory_space<vmem>>, %arg2: memref<128x512xbf16, #tpu.memory_space<vmem>>, %arg3: memref<1x512xf32, #tpu.memory_space<vmem>>, %arg4: memref<512x512xbf16, #tpu.memory_space<vmem>>, %arg5: memref<1x512xf32, #tpu.memory_space<vmem>>, %arg6: memref<512x128xbf16, #tpu.memory_space<vmem>>, %arg7: memref<1x128xf32, #tpu.memory_space<vmem>>, %arg8: memref<8x128xf32, #tpu.memory_space<vmem>>) attributes {dimension_semantics = [#tpu.dimension_semantics<parallel>], iteration_bounds = array<i64: 2>, scalar_prefetch = 0 : i64, scratch_operands = 0 : i64, tpu.core_type = #tpu.core_type<tc>, window_params = [{transform_indices = @transform_0, window_bounds = array<i64: 8, 128>}, {pipeline_mode = #tpu.pipeline_mode<synchronous>, transform_indices = @transform_1, window_bounds = array<i64: 128, 512>}, {pipeline_mode = #tpu.pipeline_mode<synchronous>, transform_indices = @transform_2, window_bounds = array<i64: 1, 512>}, {pipeline_mode = #tpu.pipeline_mode<synchronous>, transform_indices = @transform_3, window_bounds = array<i64: 512, 512>}, {pipeline_mode = #tpu.pipeline_mode<synchronous>, transform_indices = @transform_4, window_bounds = array<i64: 1, 512>}, {pipeline_mode = #tpu.pipeline_mode<synchronous>, transform_indices = @transform_5, window_bounds = array<i64: 512, 128>}, {pipeline_mode = #tpu.pipeline_mode<synchronous>, transform_indices = @transform_6, window_bounds = array<i64: 1, 128>}, {transform_indices = @transform_7, window_bounds = array<i64: 8, 128>}]} {
    %c0 = arith.constant 0 : index
    %c0_0 = arith.constant 0 : index
    %0 = vector.load %arg1[%c0, %c0_0] : memref<8x128xf32, #tpu.memory_space<vmem>>, vector<8x128xf32>
    %1 = arith.truncf %0 : vector<8x128xf32> to vector<8x128xbf16>
    %c0_1 = arith.constant 0 : index
    %c0_2 = arith.constant 0 : index
    %2 = vector.load %arg2[%c0_1, %c0_2] : memref<128x512xbf16, #tpu.memory_space<vmem>>, vector<128x512xbf16>
    %cst = arith.constant dense<0.000000e+00> : vector<8x512xf32>
    %3 = tpu.matmul %1, %2, %cst {dimension_numbers = #tpu.dot_dimension_numbers<[1], [0], [0], [1], [0, 0, 1, 1], [], []>} : vector<8x128xbf16>, vector<128x512xbf16>, vector<8x512xf32> -> vector<8x512xf32>
    %c0_3 = arith.constant 0 : index
    %c0_4 = arith.constant 0 : index
    %4 = vector.load %arg3[%c0_3, %c0_4] : memref<1x512xf32, #tpu.memory_space<vmem>>, vector<1x512xf32>
    %5 = vector.broadcast %4 : vector<1x512xf32> to vector<8x512xf32>
    %6 = arith.addf %3, %5 : vector<8x512xf32>
    %cst_5 = arith.constant 0.00999999977 : f32
    %7 = vector.broadcast %cst_5 : f32 to vector<8x512xf32>
    %8 = arith.mulf %7, %6 : vector<8x512xf32>
    %9 = arith.maximumf %6, %8 : vector<8x512xf32>
    %c0_6 = arith.constant 0 : index
    %c0_7 = arith.constant 0 : index
    %10 = vector.load %arg4[%c0_6, %c0_7] : memref<512x512xbf16, #tpu.memory_space<vmem>>, vector<512x512xbf16>
    %c0_8 = arith.constant 0 : index
    %c0_9 = arith.constant 0 : index
    %11 = vector.load %arg5[%c0_8, %c0_9] : memref<1x512xf32, #tpu.memory_space<vmem>>, vector<1x512xf32>
    %12 = arith.truncf %9 : vector<8x512xf32> to vector<8x512xbf16>
    %c0_i32 = arith.constant 0 : i32
    %cst_10 = arith.constant dense<0.000000e+00> : vector<8x512xf32>
    %13 = tpu.matmul %12, %10, %cst_10 {dimension_numbers = #tpu.dot_dimension_numbers<[1], [0], [0], [1], [0, 0, 1, 1], [], []>} : vector<8x512xbf16>, vector<512x512xbf16>, vector<8x512xf32> -> vector<8x512xf32>
    %14 = vector.broadcast %11 : vector<1x512xf32> to vector<8x512xf32>
    %15 = arith.addf %13, %14 : vector<8x512xf32>
    %cst_11 = arith.constant 0.00999999977 : f32
    %16 = vector.broadcast %cst_11 : f32 to vector<8x512xf32>
    %17 = arith.mulf %16, %15 : vector<8x512xf32>
    %18 = arith.maximumf %15, %17 : vector<8x512xf32>
    %19 = arith.addf %9, %18 : vector<8x512xf32>
    %20 = arith.truncf %19 : vector<8x512xf32> to vector<8x512xbf16>
    %c1_i32 = arith.constant 1 : i32
    %cst_12 = arith.constant dense<0.000000e+00> : vector<8x512xf32>
    %21 = tpu.matmul %20, %10, %cst_12 {dimension_numbers = #tpu.dot_dimension_numbers<[1], [0], [0], [1], [0, 0, 1, 1], [], []>} : vector<8x512xbf16>, vector<512x512xbf16>, vector<8x512xf32> -> vector<8x512xf32>
    %22 = vector.broadcast %11 : vector<1x512xf32> to vector<8x512xf32>
    %23 = arith.addf %21, %22 : vector<8x512xf32>
    %cst_13 = arith.constant 0.00999999977 : f32
    %24 = vector.broadcast %cst_13 : f32 to vector<8x512xf32>
    %25 = arith.mulf %24, %23 : vector<8x512xf32>
    %26 = arith.maximumf %23, %25 : vector<8x512xf32>
    %27 = arith.addf %19, %26 : vector<8x512xf32>
    %28 = arith.truncf %27 : vector<8x512xf32> to vector<8x512xbf16>
    %c2_i32 = arith.constant 2 : i32
    %cst_14 = arith.constant dense<0.000000e+00> : vector<8x512xf32>
    %29 = tpu.matmul %28, %10, %cst_14 {dimension_numbers = #tpu.dot_dimension_numbers<[1], [0], [0], [1], [0, 0, 1, 1], [], []>} : vector<8x512xbf16>, vector<512x512xbf16>, vector<8x512xf32> -> vector<8x512xf32>
    %30 = vector.broadcast %11 : vector<1x512xf32> to vector<8x512xf32>
    %31 = arith.addf %29, %30 : vector<8x512xf32>
    %cst_15 = arith.constant 0.00999999977 : f32
    %32 = vector.broadcast %cst_15 : f32 to vector<8x512xf32>
    %33 = arith.mulf %32, %31 : vector<8x512xf32>
    %34 = arith.maximumf %31, %33 : vector<8x512xf32>
    %35 = arith.addf %27, %34 : vector<8x512xf32>
    %36 = arith.truncf %35 : vector<8x512xf32> to vector<8x512xbf16>
    %c3_i32 = arith.constant 3 : i32
    %cst_16 = arith.constant dense<0.000000e+00> : vector<8x512xf32>
    %37 = tpu.matmul %36, %10, %cst_16 {dimension_numbers = #tpu.dot_dimension_numbers<[1], [0], [0], [1], [0, 0, 1, 1], [], []>} : vector<8x512xbf16>, vector<512x512xbf16>, vector<8x512xf32> -> vector<8x512xf32>
    %38 = vector.broadcast %11 : vector<1x512xf32> to vector<8x512xf32>
    %39 = arith.addf %37, %38 : vector<8x512xf32>
    %cst_17 = arith.constant 0.00999999977 : f32
    %40 = vector.broadcast %cst_17 : f32 to vector<8x512xf32>
    %41 = arith.mulf %40, %39 : vector<8x512xf32>
    %42 = arith.maximumf %39, %41 : vector<8x512xf32>
    %43 = arith.addf %35, %42 : vector<8x512xf32>
    %44 = arith.truncf %43 : vector<8x512xf32> to vector<8x512xbf16>
    %c4_i32 = arith.constant 4 : i32
    %cst_18 = arith.constant dense<0.000000e+00> : vector<8x512xf32>
    %45 = tpu.matmul %44, %10, %cst_18 {dimension_numbers = #tpu.dot_dimension_numbers<[1], [0], [0], [1], [0, 0, 1, 1], [], []>} : vector<8x512xbf16>, vector<512x512xbf16>, vector<8x512xf32> -> vector<8x512xf32>
    %46 = vector.broadcast %11 : vector<1x512xf32> to vector<8x512xf32>
    %47 = arith.addf %45, %46 : vector<8x512xf32>
    %cst_19 = arith.constant 0.00999999977 : f32
    %48 = vector.broadcast %cst_19 : f32 to vector<8x512xf32>
    %49 = arith.mulf %48, %47 : vector<8x512xf32>
    %50 = arith.maximumf %47, %49 : vector<8x512xf32>
    %51 = arith.addf %43, %50 : vector<8x512xf32>
    %52 = arith.truncf %51 : vector<8x512xf32> to vector<8x512xbf16>
    %c5_i32 = arith.constant 5 : i32
    %cst_20 = arith.constant dense<0.000000e+00> : vector<8x512xf32>
    %53 = tpu.matmul %52, %10, %cst_20 {dimension_numbers = #tpu.dot_dimension_numbers<[1], [0], [0], [1], [0, 0, 1, 1], [], []>} : vector<8x512xbf16>, vector<512x512xbf16>, vector<8x512xf32> -> vector<8x512xf32>
    %54 = vector.broadcast %11 : vector<1x512xf32> to vector<8x512xf32>
    %55 = arith.addf %53, %54 : vector<8x512xf32>
    %cst_21 = arith.constant 0.00999999977 : f32
    %56 = vector.broadcast %cst_21 : f32 to vector<8x512xf32>
    %57 = arith.mulf %56, %55 : vector<8x512xf32>
    %58 = arith.maximumf %55, %57 : vector<8x512xf32>
    %59 = arith.addf %51, %58 : vector<8x512xf32>
    %60 = arith.truncf %59 : vector<8x512xf32> to vector<8x512xbf16>
    %c6_i32 = arith.constant 6 : i32
    %cst_22 = arith.constant dense<0.000000e+00> : vector<8x512xf32>
    %61 = tpu.matmul %60, %10, %cst_22 {dimension_numbers = #tpu.dot_dimension_numbers<[1], [0], [0], [1], [0, 0, 1, 1], [], []>} : vector<8x512xbf16>, vector<512x512xbf16>, vector<8x512xf32> -> vector<8x512xf32>
    %62 = vector.broadcast %11 : vector<1x512xf32> to vector<8x512xf32>
    %63 = arith.addf %61, %62 : vector<8x512xf32>
    %cst_23 = arith.constant 0.00999999977 : f32
    %64 = vector.broadcast %cst_23 : f32 to vector<8x512xf32>
    %65 = arith.mulf %64, %63 : vector<8x512xf32>
    %66 = arith.maximumf %63, %65 : vector<8x512xf32>
    %67 = arith.addf %59, %66 : vector<8x512xf32>
    %68 = arith.truncf %67 : vector<8x512xf32> to vector<8x512xbf16>
    %c0_24 = arith.constant 0 : index
    %c0_25 = arith.constant 0 : index
    %69 = vector.load %arg6[%c0_24, %c0_25] : memref<512x128xbf16, #tpu.memory_space<vmem>>, vector<512x128xbf16>
    %cst_26 = arith.constant dense<0.000000e+00> : vector<8x128xf32>
    %70 = tpu.matmul %68, %69, %cst_26 {dimension_numbers = #tpu.dot_dimension_numbers<[1], [0], [0], [1], [0, 0, 1, 1], [], []>} : vector<8x512xbf16>, vector<512x128xbf16>, vector<8x128xf32> -> vector<8x128xf32>
    %c0_27 = arith.constant 0 : index
    %c0_28 = arith.constant 0 : index
    %71 = vector.load %arg7[%c0_27, %c0_28] : memref<1x128xf32, #tpu.memory_space<vmem>>, vector<1x128xf32>
    %72 = vector.broadcast %71 : vector<1x128xf32> to vector<8x128xf32>
    %73 = arith.addf %70, %72 : vector<8x128xf32>
    %c0_29 = arith.constant 0 : index
    %c0_30 = arith.constant 0 : index
    %74 = vector.load %arg8[%c0_29, %c0_30] : memref<8x128xf32, #tpu.memory_space<vmem>>, vector<8x128xf32>
    tpu.vector_store %arg8[%c0_29, %c0_30], %73 {strides = array<i32>} : memref<8x128xf32, #tpu.memory_space<vmem>>, vector<8x128xf32>,
    return
  }
  func.func @transform_0(%arg0: i32) -> (i32, i32) {
    %c0_i32 = arith.constant 0 : i32
    %c0_i32_0 = arith.constant 0 : i32
    return %arg0, %c0_i32 : i32, i32
  }
  func.func @transform_1(%arg0: i32) -> (i32, i32) {
    %c0_i32 = arith.constant 0 : i32
    %c0_i32_0 = arith.constant 0 : i32
    %c0_i32_1 = arith.constant 0 : i32
    return %c0_i32, %c0_i32_0 : i32, i32
  }
  func.func @transform_2(%arg0: i32) -> (i32, i32) {
    %c0_i32 = arith.constant 0 : i32
    %c0_i32_0 = arith.constant 0 : i32
    %c0_i32_1 = arith.constant 0 : i32
    return %c0_i32, %c0_i32_0 : i32, i32
  }
  func.func @transform_3(%arg0: i32) -> (i32, i32) {
    %c0_i32 = arith.constant 0 : i32
    %c0_i32_0 = arith.constant 0 : i32
    %c0_i32_1 = arith.constant 0 : i32
    return %c0_i32, %c0_i32_0 : i32, i32
  }
  func.func @transform_4(%arg0: i32) -> (i32, i32) {
    %c0_i32 = arith.constant 0 : i32
    %c0_i32_0 = arith.constant 0 : i32
    %c0_i32_1 = arith.constant 0 : i32
    return %c0_i32, %c0_i32_0 : i32, i32
  }
  func.func @transform_5(%arg0: i32) -> (i32, i32) {
    %c0_i32 = arith.constant 0 : i32
    %c0_i32_0 = arith.constant 0 : i32
    %c0_i32_1 = arith.constant 0 : i32
    return %c0_i32, %c0_i32_0 : i32, i32
  }
  func.func @transform_6(%arg0: i32) -> (i32, i32) {
    %c0_i32 = arith.constant 0 : i32
    %c0_i32_0 = arith.constant 0 : i32
    %c0_i32_1 = arith.constant 0 : i32
    return %c0_i32, %c0_i32_0 : i32, i32
  }
  func.func @transform_7(%arg0: i32) -> (i32, i32) {
    %c0_i32 = arith.constant 0 : i32
    %c0_i32_0 = arith.constant 0 : i32
    return %arg0, %c0_i32 : i32, i32
  }
}

</mosaic_0001>

<bundles_post_ra>
// kernel: tpu_custom_call.1
= control target key start
LH: loop header
LB: loop body
LE: loop exit
PB: predicated region body
PF: predicated region fallthrough
CT: control target
= control target key end

     0   :  { %12 = vsyncpa [#allocation3], 0  ;;  %s6126_s0 = inlined_call_operand.hbm [shape: f32[16,128], index: 0, kind: input, shape index: {}]   ;;  %s6127_s1 = inlined_call_operand.hbm [shape: bf16[128,512], index: 1, kind: input, shape index: {}]   ;;  %s6128_s2 = inlined_call_operand.vmem [shape: f32[1,512], index: 2, kind: input, shape index: {}]   ;;  %s6129_s3 = inlined_call_operand.hbm [shape: bf16[512,512], index: 3, kind: input, shape index: {}]   ;;  %s6130_s4 = inlined_call_operand.vmem [shape: f32[1,512], index: 4, kind: input, shape index: {}]   ;;  %s6131_s5 = inlined_call_operand.hbm [shape: bf16[512,128], index: 5, kind: input, shape index: {}]   ;;  %s6132_s6 = inlined_call_operand.vmem [shape: f32[1,128], index: 6, kind: input, shape index: {}]   ;;  %s6133_s7 = inlined_call_operand.hbm [shape: f32[16,128], index: 7, kind: output, shape index: {}]  }
   0x1   :  { %14 = vsyncpa [#allocation3 + $0x1], 0 }
   0x2   :  { %15 = vsyncpa [#allocation6], 0 }
   0x3   :  { %16 = vsyncpa [#allocation9], 0 }
   0x4   :  { %17 = vsyncpa [#allocation4], 0 }
   0x5   :  { %19 = vsyncpa [#allocation4 + $0x1], 0  ;;  %s4263_s24 = smov 0   ;;  %s4265_s25 = smov 0  }
   0x6   :  { %s4267_s26 = smov 0   ;;  %s4269_s27 = smov 0  }
   0x7 LB: > { %s4284_s28 = sadd.s32 4294967295, %s4211_s27   ;;  %s3156_s29 = sadd.s32 4294967294, %s4211_s27   ;;  %s4211_s27 = sphi %s4269_s27, %s7066_s27   ;;  %s4207_s26 = sphi %s4267_s26, %s7065_s26   ;;  %s4203_s25 = sphi %s4265_s25, %s7064_s25   ;;  %s4199_s24 = sphi %s4263_s24, %s7063_s24  }
   0x8   : > { %p45_p0 = scmp.ne.s32.totalorder %s4203_s25, %s4199_s24  ;;  %p6134_p1 = scmp.eq.s32.totalorder %s4284_s28, 0 }
   0x9   : > { %p201_p3 = scmp.eq.s32.totalorder %s3156_s29, 1  ;;  %p3157_p5 = scmp.ge.s32.totalorder %s4211_s27, 1 }
   0xa   : > { %p4293_p4 = por %p6134_p1, %p45_p0  ;;  %p208_p7 = scmp.lt.s32.totalorder %s4211_s27, 3 }
   0xb   : > { %p4298_p6 = por %p201_p3, %p45_p0  ;;  %s4213_s10 = smov [#allocation5]  }
   0xc   : > { %s6518_s30 = scalar_select %p4293_p4, 1, 0 }
   0xd   : > { %s6519_s8 = scalar_select %p4298_p6, 1, 0 }
   0xe   : > { %p4303_p8 = pnand %p3157_p5, %p208_p7  ;;  %s220_s11 = sshll.u32 %s4213_s10, 4  ;;  %s4307_s11 = int_to_ptr.vmem [resolvable:$true] %s220_s11 }
   0xf   : > { %6520 = sst [smem:[#allocation15_spill]] %s6519_s8  ;;  %s4214_s13 = smov [#allocation7]  }
  0x10   : > { %s6521_s9 = scalar_select %p4303_p8, 1, 0 }
  0x11   : > { %p3511_p9 = pneg %p4303_p8  ;;  %s236_s14 = sshll.u32 %s4214_s13, 4  ;;  %s4318_s14 = int_to_ptr.vmem [resolvable:$true] %s236_s14 }
  0x12   : > { %s4215_s15 = smov [#allocation8]   ;;  %s4023_s19 = scalar_lea.hbm %s6127_s1, 4096 }
  0x13   : > { %p4314_p11 = pnand %p3511_p9, %p6134_p1  ;;  %s4320_s16 = sshll.u32 %s4215_s15, 4  ;;  %s253_s16 = int_to_ptr.vmem [resolvable:$true] %s4320_s16 }
  0x14   : > { %p4024_p12 = scmp.ne.s32.totalorder %s6127_s1, %s4023_s19  ;;  %p4030_p5 = scmp.lt.u32.totalorder %s4023_s19, %s6127_s1 }
  0x15   : > { %p4330_p13 = pneg %p4314_p11 }
  0x17   : > { %p4026_p0 = pnand %p4330_p13, %p4024_p12 }
  0x19   : > { %p4027_p3 = pneg %p4026_p0 }
  0x1b   : > { %p4032_p7 = pnand %p4030_p5, %p4027_p3 }
  0x1d   : > { %4035 = shalt.err (!%p4032_p7)
}
  0x1e   : > { %s4036_s10 = scalar_lea.vmem %s4307_s11, 4096  ;;  %p4044_p2 = scmp.lt.s32.totalorder %s4307_s11, %s4307_s11 }
  0x1f   : > { %p4037_p9 = scmp.ne.s32.totalorder %s4307_s11, %s4036_s10  ;;  %p4045_p6 = scmp.lt.s32.totalorder %s4036_s10, %s4036_s10 }
  0x21   : > { %p4039_p10 = pnand %p4037_p9, %p4330_p13  ;;  %p4046_p12 = por %p4045_p6, %p4044_p2 }
  0x23   : > { %p4040_p1 = pneg %p4039_p10 }
  0x25   : > { %p4047_p0 = pnand %p4046_p12, %p4040_p1 }
  0x27   : > { %4050 = shalt.err (!%p4047_p0)
}
  0x28   : > { %s4216_s13 = smov 256   ;;  %s4217_s15 = smov 16  }
  0x29   : > { %3514 = dma.hbm_to_vmem [thread:$0]  (!%p4314_p11), %s6127_s1, 4096, %s4307_s11, [#allocation6], %s4216_s13, %s4216_s13, %s4217_s15  }
  0x2a   : > { %s4051_s21 = scalar_lea.hbm %s6129_s3, 16384 }
  0x2b   : > { %p4052_p2 = scmp.ne.s32.totalorder %s6129_s3, %s4051_s21  ;;  %p4058_p10 = scmp.lt.u32.totalorder %s4051_s21, %s6129_s3 }
  0x2d   : > { %p4054_p1 = pnand %p4052_p2, %p4330_p13 }
  0x2f   : > { %p4055_p6 = pneg %p4054_p1 }
  0x31   : > { %p4060_p3 = pnand %p4058_p10, %p4055_p6 }
  0x33   : > { %4063 = shalt.err (!%p4060_p3)
}
  0x34   : > { %s4064_s11 = scalar_lea.vmem %s4318_s14, 16384  ;;  %p4072_p12 = scmp.lt.s32.totalorder %s4318_s14, %s4318_s14 }
  0x35   : > { %p4065_p5 = scmp.ne.s32.totalorder %s4318_s14, %s4064_s11  ;;  %p4073_p0 = scmp.lt.s32.totalorder %s4064_s11, %s4064_s11 }
  0x37   : > { %p4067_p7 = pnand %p4065_p5, %p4330_p13  ;;  %p4074_p2 = por %p4073_p0, %p4072_p12 }
  0x39   : > { %p4068_p9 = pneg %p4067_p7 }
  0x3b   : > { %p4075_p1 = pnand %p4074_p2, %p4068_p9 }
  0x3d   : > { %4078 = shalt.err (!%p4075_p1)
}
  0x3e   : > { %3517 = dma.hbm_to_vmem [thread:$0]  (!%p4314_p11), %s6129_s3, 16384, %s4318_s14, [#allocation6], %s4216_s13, %s4216_s13, %s4217_s15  }
  0x3f   : > { %s4079_s20 = scalar_lea.hbm %s6131_s5, 4096 }
  0x40   : > { %p4080_p6 = scmp.ne.s32.totalorder %s6131_s5, %s4079_s20  ;;  %p4086_p5 = scmp.lt.u32.totalorder %s4079_s20, %s6131_s5 }
  0x42   : > { %p4082_p10 = pnand %p4080_p6, %p4330_p13 }
  0x44   : > { %p4083_p3 = pneg %p4082_p10 }
  0x46   : > { %p4088_p7 = pnand %p4086_p5, %p4083_p3 }
  0x48   : > { %4091 = shalt.err (!%p4088_p7)
}
  0x49   : > { %s4092_s11 = scalar_lea.vmem %s253_s16, 4096  ;;  %p4100_p2 = scmp.lt.s32.totalorder %s253_s16, %s253_s16 }
  0x4a   : > { %p4093_p9 = scmp.ne.s32.totalorder %s253_s16, %s4092_s11  ;;  %p4101_p1 = scmp.lt.s32.totalorder %s4092_s11, %s4092_s11 }
  0x4c   : > { %p4095_p12 = pnand %p4093_p9, %p4330_p13  ;;  %p4102_p4 = por %p4101_p1, %p4100_p2 }
  0x4e   : > { %p4096_p0 = pneg %p4095_p12 }
  0x50   : > { %p4103_p8 = pnand %p4102_p4, %p4096_p0 }
  0x52   : > { %4106 = shalt.err (!%p4103_p8)
}
  0x53   : > { %s4218_s14 = smov 64   ;;  %s4219_s22 = smov 4  }
  0x54   : > { %3520 = dma.hbm_to_vmem [thread:$0]  (!%p4314_p11), %s6131_s5, 4096, %s253_s16, [#allocation9], %s4218_s14, %s4218_s14, %s4219_s22  }
  0x55   : > { %s4394_s8 = sadd.s32 1, %s4211_s27   ;;  %s32_s18 = sadd.s32 1, %s4207_s26 }
  0x56   : > { %s29_s17 = ssub.s32 %s4211_s27, %s4394_s8  ;;  %p39_p8 = scmp.ne.s32.totalorder %s4207_s26, %s4203_s25 }
  0x57   : > { %p30_p4 = scmp.eq.s32.totalorder %s29_s17, 0  ;;  %p40_p13 = scmp.eq.s32.totalorder %s4211_s27, 0 }
  0x58   : > { %p3532_p6 = scmp.lt.s32.totalorder %s4211_s27, 2  ;;  %p6524_p3 = scmp.eq.s32.totalorder %s4284_s28, 1 }
  0x59   : > { %s4404_s19 = scalar_select %p30_p4, %s4207_s26, %s32_s18  }
  0x5a   : > { %p41_p10 = por %p40_p13, %p39_p8  ;;  %p4408_p5 = por %p6524_p3, %p39_p8 }
  0x5b   : > { %s269_s12 = sand.u32 1, %s4207_s26   ;;  %s3163_s21 = sshll.u32 %s4211_s27, 7 }
  0x5c   : > { %s3162_s16 = sshll.u32 %s269_s12, 3  ;;  %s4417_s10 = scalar_lea.hbm %s6126_s0, %s3163_s21 }
  0x5d   : > { %s273_s11 = scalar_lea.vmem [#allocation2], %s3162_s16  ;;  %p4419_p11 = pnand %p3532_p6, %p41_p10 }
  0x5e   : > { %s280_s14 = sshll.u32 %s273_s11, 4  ;;  %s270_s13 = scalar_lea.sflag [#allocation3], %s269_s12  ;;  %s4423_s14 = int_to_ptr.vmem [resolvable:$true] %s280_s14 }
  0x5f   : > { %s4107_s15 = scalar_lea.hbm %s4417_s10, 128  ;;  %p4109_p9 = pneg %p4419_p11 }
  0x60   : > { %p4108_p7 = scmp.ne.s32.totalorder %s4417_s10, %s4107_s15  ;;  %s4112_s21 = scalar_lea.hbm %s6126_s0, 256 }
  0x61   : > { %p4113_p2 = scmp.lt.u32.totalorder %s4417_s10, %s6126_s0  ;;  %p4114_p1 = scmp.lt.u32.totalorder %s4112_s21, %s4107_s15 }
  0x62   : > { %p4110_p12 = pnand %p4109_p9, %p4108_p7  ;;  %p4116_p8 = scmp.lt.u32.totalorder %s4107_s15, %s4417_s10 }
  0x63   : > { %p4115_p4 = por %p4114_p1, %p4113_p2 }
  0x64   : > { %p4111_p0 = pneg %p4110_p12 }
  0x65   : > { %p4117_p13 = por %p4116_p8, %p4115_p4 }
  0x67   : > { %p4118_p6 = pnand %p4117_p13, %p4111_p0 }
  0x69   : > { %4121 = shalt.err (!%p4118_p6)
}
  0x6a   : > { %s4122_s12 = scalar_lea.vmem %s4423_s14, 128  ;;  %s4220_s29 = smov [#allocation2]  }
  0x6b   : > { %p4123_p10 = scmp.ne.s32.totalorder %s4423_s14, %s4122_s12  ;;  %s4127_s11 = sshll.u32 %s4220_s29, 4  ;;  %s4128_s11 = int_to_ptr.vmem [resolvable:$false] %s4127_s11 }
  0x6c   : > { %s4129_s17 = scalar_lea.vmem %s4128_s11, 256  ;;  %p4130_p12 = scmp.lt.s32.totalorder %s4423_s14, %s4128_s11 }
  0x6d   : > { %p4125_p3 = pnand %p4123_p10, %p4109_p9  ;;  %p4131_p2 = scmp.lt.s32.totalorder %s4129_s17, %s4122_s12 }
  0x6f   : > { %p4126_p7 = pneg %p4125_p3  ;;  %p4132_p1 = por %p4131_p2, %p4130_p12 }
  0x71   : > { %p4133_p4 = pnand %p4132_p1, %p4126_p7 }
  0x73   : > { %4136 = shalt.err (!%p4133_p4)
}
  0x74   : > { %3524 = dma.hbm_to_vmem [thread:$0]  (!%p4419_p11), %s4417_s10, 128, %s4423_s14, %s270_s13  }
  0x75   : > { %p6527_p0 = scmp.ne.s32.totalorder %s6521_s9, 0 }
  0x77   : > { %289 = sbr.rel (%p6527_p0) target bundleno = 2642 (0xa52), region = 48 }
  0x7e   : > { %s4453_s15 = sand.u32 1, %s4203_s25   ;;  %p6528_p9 = scmp.ne.s32.totalorder %s6518_s30, 0 }
  0x7f   : > { %s3165_s18 = sshll.u32 %s4453_s15, 3  ;;  %s292_s21 = scalar_lea.sflag [#allocation3], %s4453_s15 }
  0x80   : > { %s4459_s16 = scalar_lea.vmem [#allocation2], %s3165_s18 }
  0x81   : > { %4182 = dma.done.wait (%p6528_p9), %s292_s21, 128  }
  0x82   : > { %4184 = vsyncadd (%p6528_p9), %s292_s21, 4294967168  ;;  %p6529_p11 = scmp.eq.s32.totalorder %s4284_s28, 0 }
  0x84   : > { %4186 = dma.done.wait (%p6529_p11), [#allocation6], 20480   ;;  %p6530_p8 = pmov %p6529_p11 }
  0x86   : > { %4188 = vsyncadd (%p6530_p8), [#allocation6], 4294946816  ;;  %p6531_p13 = pmov %p6530_p8 }
  0x87   : > { %p6532_p6 = pmov %p6530_p8 }
  0x88   : > { %4190 = dma.done.wait (%p6531_p13), [#allocation9], 4096  }
  0x89   : > { %4192 = vsyncadd (%p6532_p6), [#allocation9], 4294963200  ;;  %v4221_v0 = vmov 0   ;;  %v3577_v1 = vld [vmem:[#allocation5 + $0x4] ss:$16 sps:$4 sm:$0xff]   ;;  %s3364_s23 = sshll.u32 %s4284_s28, 7 }
  0x8a   : > { %587 = vmatprep.mubr.bf16.mxu0 %v4221_v0  ;;  %628 = vmatprep.mubr.bf16.mxu1 %v4221_v0  ;;  %v3579_v2 = vld [vmem:[#allocation5] ss:$16 sps:$4 sm:$0xff]   ;;  %v3580_v3 = vld [vmem:[#allocation5 + $0x24] ss:$16 sps:$4 sm:$0xff]   ;;  %v3601_v10 = vld [vmem:[#allocation5 + $0xc] ss:$16 sps:$4 sm:$0xff]   ;;  %s6082_s21 = scalar_lea.hbm %s6133_s7, %s3364_s23 }
  0x8b   : > { %555 = vmatprep.subr.bf16.mxu0 %v3577_v1  ;;  %v3582_v4 = vld [vmem:[#allocation5 + $0x20] ss:$16 sps:$4 sm:$0xff]   ;;  %v3583_v5 = vld [vmem:[#allocation5 + $0x44] ss:$16 sps:$4 sm:$0xff]   ;;  %v3603_v11 = vld [vmem:[#allocation5 + $0x8] ss:$16 sps:$4 sm:$0xff]   ;;  %596 = vmatprep.subr.bf16.mxu1 %v3601_v10 }
  0x8c   : > { %556 = vmatpush1.bf16.msra.mxu0 %v3579_v2  ;;  %v3585_v6 = vld [vmem:[#allocation5 + $0x40] ss:$16 sps:$4 sm:$0xff]   ;;  %v3586_v7 = vld [vmem:[#allocation5 + $0x64] ss:$16 sps:$4 sm:$0xff]   ;;  %v3604_v12 = vld [vmem:[#allocation5 + $0x2c] ss:$16 sps:$4 sm:$0xff]   ;;  %597 = vmatpush1.bf16.msra.mxu1 %v3603_v11 }
  0x8d   : > { %557 = vmatprep.subr.bf16.mxu0 %v3580_v3  ;;  %v3588_v8 = vld [vmem:[#allocation5 + $0x60] ss:$16 sps:$4 sm:$0xff]   ;;  %v3589_v9 = vld [vmem:[#allocation5 + $0x84] ss:$16 sps:$4 sm:$0xff]   ;;  %v3606_v14 = vld [vmem:[#allocation5 + $0x28] ss:$16 sps:$4 sm:$0xff]   ;;  %598 = vmatprep.subr.bf16.mxu1 %v3604_v12 }
  0x8e   : > { %v3591_v13 = vld [vmem:[#allocation5 + $0x80] ss:$16 sps:$4 sm:$0xff]   ;;  %v3607_v15 = vld [vmem:[#allocation5 + $0x4c] ss:$16 sps:$4 sm:$0xff]   ;;  %v3592_v16 = vld [vmem:[#allocation5 + $0xa4] ss:$16 sps:$4 sm:$0xff]  }
  0x8f   : > { %v3594_v17 = vld [vmem:[#allocation5 + $0xa0] ss:$16 sps:$4 sm:$0xff]   ;;  %v3609_v18 = vld [vmem:[#allocation5 + $0x48] ss:$16 sps:$4 sm:$0xff]   ;;  %v3610_v19 = vld [vmem:[#allocation5 + $0x6c] ss:$16 sps:$4 sm:$0xff]  }
  0x90   : > { %558 = vmatpush1.bf16.msra.mxu0 %v3582_v4  ;;  %599 = vmatpush1.bf16.msra.mxu1 %v3606_v14  ;;  %v3595_v20 = vld [vmem:[#allocation5 + $0xc4] ss:$16 sps:$4 sm:$0xff]   ;;  %v3612_v21 = vld [vmem:[#allocation5 + $0x68] ss:$16 sps:$4 sm:$0xff]   ;;  %v3597_v22 = vld [vmem:[#allocation5 + $0xc0] ss:$16 sps:$4 sm:$0xff]  }
  0x91   : > { %559 = vmatprep.subr.bf16.mxu0 %v3583_v5  ;;  %600 = vmatprep.subr.bf16.mxu1 %v3607_v15  ;;  %v3613_v23 = vld [vmem:[#allocation5 + $0x8c] ss:$16 sps:$4 sm:$0xff]   ;;  %v3598_v24 = vld [vmem:[#allocation5 + $0xe4] ss:$16 sps:$4 sm:$0xff]   ;;  %v3600_v25 = vld [vmem:[#allocation5 + $0xe0] ss:$16 sps:$4 sm:$0xff]  }
  0x92   : > { %v339_v26 = vld [vmem:[%s4459_s16] sm:$0xff]  ;;  %s337_s12 = scalar_lea.vmem [#allocation10], %s3165_s18  ;;  %s3044_s16 = scalar_lea.sflag [#allocation4], %s4453_s15 }
  0x93   : > { %v3615_v27 = vld [vmem:[#allocation5 + $0x88] ss:$16 sps:$4 sm:$0xff]   ;;  %v3616_v28 = vld [vmem:[#allocation5 + $0xac] ss:$16 sps:$4 sm:$0xff]   ;;  %v4474_v29 = vld [vmem:[#allocation7 + $0x4] ss:$16 sps:$4 sm:$0xff]   ;;  %v340_v30 = vpack.c.bf16 %v339_v26, %v339_v26 }
  0x94   : > { %560 = vmatpush1.bf16.msra.mxu0 %v3585_v6  ;;  %601 = vmatpush1.bf16.msra.mxu1 %v3609_v18  ;;  %v3618_v31 = vld [vmem:[#allocation5 + $0xa8] ss:$16 sps:$4 sm:$0xff]   ;;  %v3619_v32 = vld [vmem:[#allocation5 + $0xcc] ss:$16 sps:$4 sm:$0xff]   ;;  %v4476_v33 = vld [vmem:[#allocation7] ss:$16 sps:$4 sm:$0xff]  }
  0x95   : > { %561 = vmatprep.subr.bf16.mxu0 %v3586_v7  ;;  %602 = vmatprep.subr.bf16.mxu1 %v3610_v19  ;;  %v4479_v34 = vld [vmem:[#allocation7 + $0x24] ss:$16 sps:$4 sm:$0xff]   ;;  %v3621_v35 = vld [vmem:[#allocation5 + $0xc8] ss:$16 sps:$4 sm:$0xff]   ;;  %v3622_v36 = vld [vmem:[#allocation5 + $0xec] ss:$16 sps:$4 sm:$0xff]  }
  0x96   : > { %v4482_v37 = vld [vmem:[#allocation7 + $0x20] ss:$16 sps:$4 sm:$0xff]   ;;  %v4485_v38 = vld [vmem:[#allocation7 + $0x44] ss:$16 sps:$4 sm:$0xff]   ;;  %v3624_v39 = vld [vmem:[#allocation5 + $0xe8] ss:$16 sps:$4 sm:$0xff]  }
  0x97   : > { %v4487_v40 = vld [vmem:[#allocation7 + $0xc] ss:$16 sps:$4 sm:$0xff]   ;;  %v4490_v41 = vld [vmem:[#allocation7 + $0x40] ss:$16 sps:$4 sm:$0xff]   ;;  %v4493_v42 = vld [vmem:[#allocation7 + $0x64] ss:$16 sps:$4 sm:$0xff]  }
  0x98   : > { %562 = vmatpush1.bf16.msra.mxu0 %v3588_v8  ;;  %603 = vmatpush1.bf16.msra.mxu1 %v3612_v21  ;;  %v4495_v43 = vld [vmem:[#allocation7 + $0x8] ss:$16 sps:$4 sm:$0xff]   ;;  %v4497_v44 = vld [vmem:[#allocation7 + $0x2c] ss:$16 sps:$4 sm:$0xff]   ;;  %v4501_v45 = vld [vmem:[#allocation7 + $0x60] ss:$16 sps:$4 sm:$0xff]  }
  0x99   : > { %563 = vmatprep.subr.bf16.mxu0 %v3589_v9  ;;  %604 = vmatprep.subr.bf16.mxu1 %v3613_v23  ;;  %v4504_v46 = vld [vmem:[#allocation7 + $0x84] ss:$16 sps:$4 sm:$0xff]   ;;  %v4507_v47 = vld [vmem:[#allocation7 + $0x28] ss:$16 sps:$4 sm:$0xff]   ;;  %v4510_v48 = vld [vmem:[#allocation7 + $0x4c] ss:$16 sps:$4 sm:$0xff]  }
  0x9a   : > { %v4513_v49 = vld [vmem:[#allocation7 + $0x80] ss:$16 sps:$4 sm:$0xff]   ;;  %v4516_v50 = vld [vmem:[#allocation7 + $0xa4] ss:$16 sps:$4 sm:$0xff]   ;;  %v4519_v51 = vld [vmem:[#allocation7 + $0x48] ss:$16 sps:$4 sm:$0xff]  }
  0x9b   : > { %v4521_v52 = vld [vmem:[#allocation7 + $0x6c] ss:$16 sps:$4 sm:$0xff]   ;;  %v4525_v53 = vld [vmem:[#allocation7 + $0xa0] ss:$16 sps:$4 sm:$0xff]   ;;  %v4528_v54 = vld [vmem:[#allocation7 + $0xc4] ss:$16 sps:$4 sm:$0xff]  }
  0x9c   : > { %564 = vmatpush1.bf16.msra.mxu0 %v3591_v13  ;;  %605 = vmatpush1.bf16.msra.mxu1 %v3615_v27  ;;  %v4531_v55 = vld [vmem:[#allocation7 + $0x68] ss:$16 sps:$4 sm:$0xff]   ;;  %v4534_v56 = vld [vmem:[#allocation7 + $0x8c] ss:$16 sps:$4 sm:$0xff]   ;;  %v4537_v57 = vld [vmem:[#allocation7 + $0xc0] ss:$16 sps:$4 sm:$0xff]  }
  0x9d   : > { %565 = vmatprep.subr.bf16.mxu0 %v3592_v16  ;;  %606 = vmatprep.subr.bf16.mxu1 %v3616_v28  ;;  %v4540_v58 = vld [vmem:[#allocation7 + $0xe4] ss:$16 sps:$4 sm:$0xff]   ;;  %v4543_v59 = vld [vmem:[#allocation7 + $0x88] ss:$16 sps:$4 sm:$0xff]   ;;  %v4545_v60 = vld [vmem:[#allocation7 + $0xac] ss:$16 sps:$4 sm:$0xff]  }
  0x9e   : > { %v4547_v61 = vld [vmem:[#allocation7 + $0xe0] ss:$16 sps:$4 sm:$0xff]   ;;  %v4551_v62 = vld [vmem:[#allocation7 + $0x104] ss:$16 sps:$4 sm:$0xff]   ;;  %v4553_v63 = vld [vmem:[#allocation7 + $0xa8] ss:$16 sps:$4 sm:$0xff]  }
  0x9f   : > { %v4556_v0 = vld [vmem:[#allocation7 + $0xcc] ss:$16 sps:$4 sm:$0xff]   ;;  %v4558_v1 = vld [vmem:[#allocation7 + $0x100] ss:$16 sps:$4 sm:$0xff]   ;;  %v4561_v2 = vld [vmem:[#allocation7 + $0x124] ss:$16 sps:$4 sm:$0xff]  }
  0xa0   : > { %566 = vmatpush1.bf16.msra.mxu0 %v3594_v17  ;;  %607 = vmatpush1.bf16.msra.mxu1 %v3618_v31  ;;  %v4565_v3 = vld [vmem:[#allocation7 + $0xc8] ss:$16 sps:$4 sm:$0xff]   ;;  %v4568_v4 = vld [vmem:[#allocation7 + $0xec] ss:$16 sps:$4 sm:$0xff]   ;;  %v4570_v5 = vld [vmem:[#allocation7 + $0x120] ss:$16 sps:$4 sm:$0xff]  }
  0xa1   : > { %567 = vmatprep.subr.bf16.mxu0 %v3595_v20  ;;  %608 = vmatprep.subr.bf16.mxu1 %v3619_v32  ;;  %v4573_v6 = vld [vmem:[#allocation7 + $0x144] ss:$16 sps:$4 sm:$0xff]   ;;  %v4577_v7 = vld [vmem:[#allocation7 + $0xe8] ss:$16 sps:$4 sm:$0xff]   ;;  %v4580_v8 = vld [vmem:[#allocation7 + $0x10c] ss:$16 sps:$4 sm:$0xff]  }
  0xa2   : > { %v4582_v9 = vld [vmem:[#allocation7 + $0x140] ss:$16 sps:$4 sm:$0xff]   ;;  %v4585_v10 = vld [vmem:[#allocation7 + $0x164] ss:$16 sps:$4 sm:$0xff]   ;;  %v4589_v11 = vld [vmem:[#allocation7 + $0x108] ss:$16 sps:$4 sm:$0xff]  }
  0xa3   : > { %v4592_v12 = vld [vmem:[#allocation7 + $0x12c] ss:$16 sps:$4 sm:$0xff]   ;;  %v4594_v13 = vld [vmem:[#allocation7 + $0x160] ss:$16 sps:$4 sm:$0xff]   ;;  %v4597_v14 = vld [vmem:[#allocation7 + $0x184] ss:$16 sps:$4 sm:$0xff]  }
  0xa4   : > { %568 = vmatpush1.bf16.msra.mxu0 %v3597_v22  ;;  %609 = vmatpush1.bf16.msra.mxu1 %v3621_v35  ;;  %6533 = vst [vmem:[#allocation16_spill] sm:$0xff] %v4594_v13  ;;  %6534 = vst [vmem:[#allocation17_spill] sm:$0xff] %v4597_v14  ;;  %v4601_v15 = vld [vmem:[#allocation7 + $0x128] ss:$16 sps:$4 sm:$0xff]   ;;  %v4604_v16 = vld [vmem:[#allocation7 + $0x14c] ss:$16 sps:$4 sm:$0xff]  }
  0xa5   : > { %569 = vmatprep.subr.bf16.mxu0 %v3598_v24  ;;  %610 = vmatprep.subr.bf16.mxu1 %v3622_v36  ;;  %v4606_v17 = vld [vmem:[#allocation7 + $0x180] ss:$16 sps:$4 sm:$0xff]   ;;  %v4609_v18 = vld [vmem:[#allocation7 + $0x1a4] ss:$16 sps:$4 sm:$0xff]   ;;  %v4613_v19 = vld [vmem:[#allocation7 + $0x148] ss:$16 sps:$4 sm:$0xff]  }
  0xa6   : > { %6535 = vst [vmem:[#allocation18_spill] sm:$0xff] %v4606_v17  ;;  %6536 = vst [vmem:[#allocation19_spill] sm:$0xff] %v4609_v18  ;;  %v4616_v20 = vld [vmem:[#allocation7 + $0x16c] ss:$16 sps:$4 sm:$0xff]   ;;  %v4618_v21 = vld [vmem:[#allocation7 + $0x1a0] ss:$16 sps:$4 sm:$0xff]  }
  0xa7   : > { %6537 = vst [vmem:[#allocation20_spill] sm:$0xff] %v4618_v21  ;;  %v4623_v22 = vld [vmem:[#allocation7 + $0x168] ss:$16 sps:$4 sm:$0xff]   ;;  %v4626_v23 = vld [vmem:[#allocation7 + $0x18c] ss:$16 sps:$4 sm:$0xff]   ;;  %s3057_s29 = sshll.u32 %s337_s12, 4  ;;  %s6084_s29 = int_to_ptr.vmem [resolvable:$true] %s3057_s29 }
  0xa8   : > { %570 = vmatpush1.bf16.msra.mxu0 %v3600_v25  ;;  %611 = vmatpush1.bf16.msra.mxu1 %v3624_v39  ;;  %6538 = vst [vmem:[#allocation21_spill] sm:$0xff] %v4623_v22  ;;  %6539 = vst [vmem:[#allocation22_spill] sm:$0xff] %v4626_v23  ;;  %v4631_v24 = vld [vmem:[#allocation7 + $0x188] ss:$16 sps:$4 sm:$0xff]   ;;  %v4633_v25 = vld [vmem:[#allocation7 + $0x1ac] ss:$16 sps:$4 sm:$0xff]  }
  0xa9   : > { %1439 = vmatprep.subr.bf16.mxu0 %v4474_v29  ;;  %1521 = vmatprep.subr.bf16.mxu1 %v4487_v40  ;;  %6540 = vst [vmem:[#allocation23_spill] sm:$0xff] %v4631_v24  ;;  %6541 = vst [vmem:[#allocation24_spill] sm:$0xff] %v4633_v25  ;;  %v4637_v26 = vld [vmem:[#allocation7 + $0x1a8] ss:$16 sps:$4 sm:$0xff]   ;;  %v4642_v27 = vld [vmem:[#allocation7 + $0x1c4] ss:$16 sps:$4 sm:$0xff]  }
  0xaa   : > { %6542 = vst [vmem:[#allocation25_spill] sm:$0xff] %v4637_v26  ;;  %6543 = vst [vmem:[#allocation26_spill] sm:$0xff] %v4642_v27  ;;  %v4644_v28 = vld [vmem:[#allocation7 + $0x1cc] ss:$16 sps:$4 sm:$0xff]   ;;  %v4648_v31 = vld [vmem:[#allocation7 + $0x1c8] ss:$16 sps:$4 sm:$0xff]  }
  0xab   : > { %588 = vmatmul.mubr.bf16.vlgmr.msra.gmra.mrb[0].mxu0 %v340_v30  ;;  %629 = vmatmul.mubr.bf16.vlgmr.msra.gmra.mrb[0].mxu1 %v340_v30  ;;  %6544 = vst [vmem:[#allocation27_spill] sm:$0xff] %v4644_v28  ;;  %v4646_v30 = vld [vmem:[#allocation7 + $0x1c0] ss:$16 sps:$4 sm:$0xff]   ;;  %6546 = vst [vmem:[#allocation29_spill] sm:$0xff] %v4648_v31  ;;  %v4654_v32 = vld [vmem:[#allocation7 + $0x1e4] ss:$16 sps:$4 sm:$0xff]  }
  0xac   : > { %1440 = vmatpush1.bf16.msra.mxu0 %v4476_v33  ;;  %1522 = vmatpush1.bf16.msra.mxu1 %v4495_v43  ;;  %6545 = vst [vmem:[#allocation28_spill] sm:$0xff] %v4646_v30  ;;  %6547 = vst [vmem:[#allocation30_spill] sm:$0xff] %v4654_v32  ;;  %v4656_v35 = vld [vmem:[#allocation7 + $0x1ec] ss:$16 sps:$4 sm:$0xff]   ;;  %v4658_v36 = vld [vmem:[#allocation7 + $0x1e0] ss:$16 sps:$4 sm:$0xff]  }
  0xad   : > { %1441 = vmatprep.subr.bf16.mxu0 %v4479_v34  ;;  %1523 = vmatprep.subr.bf16.mxu1 %v4497_v44  ;;  %6548 = vst [vmem:[#allocation31_spill] sm:$0xff] %v4656_v35  ;;  %6549 = vst [vmem:[#allocation32_spill] sm:$0xff] %v4658_v36  ;;  %v4660_v39 = vld [vmem:[#allocation7 + $0x1e8] ss:$16 sps:$4 sm:$0xff]   ;;  %s4137_s30 = scalar_lea.vmem %s6084_s29, 128  ;;  %s4222_s28 = smov [#allocation10]  }
  0xae   : > { %6550 = vst [vmem:[#allocation33_spill] sm:$0xff] %v4660_v39  ;;  %p4138_p10 = scmp.ne.s32.totalorder %s6084_s29, %s4137_s30  ;;  %s4141_s18 = sshll.u32 %s4222_s28, 4  ;;  %s4142_s18 = int_to_ptr.vmem [resolvable:$false] %s4141_s18 }
  0xaf   : > { %s4143_s9 = scalar_lea.vmem %s4142_s18, 256  ;;  %p4144_p12 = scmp.lt.s32.totalorder %s6084_s29, %s4142_s18 }
  0xb0   : > { %1442 = vmatpush1.bf16.msra.mxu0 %v4482_v37  ;;  %1524 = vmatpush1.bf16.msra.mxu1 %v4507_v47  ;;  %p4139_p3 = pnand %p4138_p10, %p4408_p5  ;;  %p4145_p2 = scmp.lt.s32.totalorder %s4143_s9, %s4137_s30 }
  0xb1   : > { %1443 = vmatprep.subr.bf16.mxu0 %v4485_v38  ;;  %1525 = vmatprep.subr.bf16.mxu1 %v4510_v48 }
  0xb2   : > { %p4140_p7 = pneg %p4139_p3  ;;  %p4146_p1 = por %p4145_p2, %p4144_p12 }
  0xb4   : > { %1444 = vmatpush1.bf16.msra.mxu0 %v4490_v41  ;;  %1526 = vmatpush1.bf16.msra.mxu1 %v4519_v51  ;;  %p4147_p4 = pnand %p4146_p1, %p4140_p7 }
  0xb5   : > { %1445 = vmatprep.subr.bf16.mxu0 %v4493_v42  ;;  %1527 = vmatprep.subr.bf16.mxu1 %v4521_v52 }
  0xb8   : > { %1446 = vmatpush1.bf16.msra.mxu0 %v4501_v45  ;;  %1528 = vmatpush1.bf16.msra.mxu1 %v4531_v55 }
  0xb9   : > { %1447 = vmatprep.subr.bf16.mxu0 %v4504_v46  ;;  %1529 = vmatprep.subr.bf16.mxu1 %v4534_v56 }
  0xbc   : > { %1448 = vmatpush1.bf16.msra.mxu0 %v4513_v49  ;;  %1530 = vmatpush1.bf16.msra.mxu1 %v4543_v59 }
  0xbd   : > { %1449 = vmatprep.subr.bf16.mxu0 %v4516_v50  ;;  %1531 = vmatprep.subr.bf16.mxu1 %v4545_v60 }
  0xc0   : > { %1450 = vmatpush1.bf16.msra.mxu0 %v4525_v53  ;;  %1532 = vmatpush1.bf16.msra.mxu1 %v4553_v63 }
  0xc1   : > { %1451 = vmatprep.subr.bf16.mxu0 %v4528_v54  ;;  %1533 = vmatprep.subr.bf16.mxu1 %v4556_v0 }
  0xc4   : > { %1452 = vmatpush1.bf16.msra.mxu0 %v4537_v57  ;;  %1534 = vmatpush1.bf16.msra.mxu1 %v4565_v3 }
  0xc5   : > { %1453 = vmatprep.subr.bf16.mxu0 %v4540_v58  ;;  %1535 = vmatprep.subr.bf16.mxu1 %v4568_v4 }
  0xc8   : > { %1454 = vmatpush1.bf16.msra.mxu0 %v4547_v61  ;;  %1536 = vmatpush1.bf16.msra.mxu1 %v4577_v7 }
  0xc9   : > { %1455 = vmatprep.subr.bf16.mxu0 %v4551_v62  ;;  %1537 = vmatprep.subr.bf16.mxu1 %v4580_v8 }
  0xcc   : > { %1456 = vmatpush1.bf16.msra.mxu0 %v4558_v1  ;;  %1538 = vmatpush1.bf16.msra.mxu1 %v4589_v11 }
  0xcd   : > { %1457 = vmatprep.subr.bf16.mxu0 %v4561_v2  ;;  %1539 = vmatprep.subr.bf16.mxu1 %v4592_v12 }
  0xd0   : > { %1458 = vmatpush1.bf16.msra.mxu0 %v4570_v5  ;;  %1540 = vmatpush1.bf16.msra.mxu1 %v4601_v15 }
  0xd1   : > { %1459 = vmatprep.subr.bf16.mxu0 %v4573_v6  ;;  %1541 = vmatprep.subr.bf16.mxu1 %v4604_v16 }
  0xd4   : > { %1460 = vmatpush1.bf16.msra.mxu0 %v4582_v9  ;;  %1542 = vmatpush1.bf16.msra.mxu1 %v4613_v19 }
  0xd5   : > { %1461 = vmatprep.subr.bf16.mxu0 %v4585_v10  ;;  %1543 = vmatprep.subr.bf16.mxu1 %v4616_v20 }
  0xd8   : > { %1462 = vmatpush1.bf16.msra.mxu0 %v4594_v13  ;;  %1544 = vmatpush1.bf16.msra.mxu1 %v4623_v22  ;;  %v4705_v13 = vld [vmem:[#allocation7 + $0x200] ss:$16 sps:$4 sm:$0xff]  }
  0xd9   : > { %1463 = vmatprep.subr.bf16.mxu0 %v4597_v14  ;;  %1545 = vmatprep.subr.bf16.mxu1 %v4626_v23  ;;  %6556 = vst [vmem:[#allocation39_spill] sm:$0xff] %v4705_v13 }
  0xdc   : > { %1464 = vmatpush1.bf16.msra.mxu0 %v4606_v17  ;;  %1546 = vmatpush1.bf16.msra.mxu1 %v4631_v24 }
  0xdd   : > { %1465 = vmatprep.subr.bf16.mxu0 %v4609_v18  ;;  %1547 = vmatprep.subr.bf16.mxu1 %v4633_v25 }
  0xe0   : > { %1466 = vmatpush1.bf16.msra.mxu0 %v4618_v21  ;;  %1548 = vmatpush1.bf16.msra.mxu1 %v4637_v26 }
  0xe1   : > { %1467 = vmatprep.subr.bf16.mxu0 %v4642_v27  ;;  %1549 = vmatprep.subr.bf16.mxu1 %v4644_v28  ;;  %v4666_v28 = vld [vmem:[#allocation7 + $0x204] ss:$16 sps:$4 sm:$0xff]  }
  0xe2   : > { %6551 = vst [vmem:[#allocation34_spill] sm:$0xff] %v4666_v28 }
  0xe4   : > { %1468 = vmatpush1.bf16.msra.mxu0 %v4646_v30  ;;  %1550 = vmatpush1.bf16.msra.mxu1 %v4648_v31  ;;  %v4668_v30 = vld [vmem:[#allocation7 + $0x20c] ss:$16 sps:$4 sm:$0xff]   ;;  %v375_v31 = vlaneseq }
  0xe5   : > { %1469 = vmatprep.subr.bf16.mxu0 %v4654_v32  ;;  %1551 = vmatprep.subr.bf16.mxu1 %v4656_v35  ;;  %6552 = vst [vmem:[#allocation35_spill] sm:$0xff] %v4668_v30  ;;  %v4677_v32 = vld [vmem:[%s6130_s4] sm:$0xf] }
  0xe6   : > { %v4672_v27 = vshrl.u32 %v375_v31, 7  ;;  %6553 = vst [vmem:[#allocation36_spill] sm:$0xff] %v4677_v32 }
  0xe8   : > { %1470 = vmatpush1.bf16.msra.mxu0 %v4658_v36  ;;  %1552 = vmatpush1.bf16.msra.mxu1 %v4660_v39  ;;  %v6162_v36 = vsub.s32 2, %v4672_v27  ;;  %v6177_v35 = vsub.s32 0, %v4672_v27  ;;  %v6179_v31 = vsub.s32 1, %v4672_v27  ;;  %v6180_v14 = vsub.s32 3, %v4672_v27 }
  0xe9   : > { %1480 = vmatprep.subr.bf16.mxu0 %v4666_v28  ;;  %1562 = vmatprep.subr.bf16.mxu1 %v4668_v30  ;;  %v4689_v30 = vld [vmem:[%s6128_s2] sm:$0xf] }
  0xea   : > { %v4683_v39 = vrot.slane %v4677_v32, %v6162_v36  ;;  %v378_v28 = vrot.slane %v4689_v30, %v6177_v35  ;;  %v382_v26 = vrot.slane %v4689_v30, %v6179_v31  ;;  %v4707_v31 = vld [vmem:[#allocation7 + $0x208] ss:$16 sps:$4 sm:$0xff]  }
  0xeb   : > { %6557 = vst [vmem:[#allocation40_spill] sm:$0xff] %v4707_v31 }
  0xec   : > { %6554 = vst [vmem:[#allocation37_spill] sm:$0xff] %v4683_v39 }
 0x17e   : > { %v589_v21 = vpop.f32.mrb[0].mxu0 }
 0x17f   : > { %v590_v36 = vadd.f32 %v589_v21, %v378_v28  ;;  %v591_v39 = vpop.f32.mrb[1].mxu0  ;;  %v4724_v28 = vld [vmem:[#allocation7 + $0x228] ss:$16 sps:$4 sm:$0xff]  }
 0x180   : > { %v592_v32 = vadd.f32 %v591_v39, %v382_v26  ;;  %v593_v25 = vpop.f32.mrb[2].mxu0  ;;  %v4722_v26 = vld [vmem:[#allocation7 + $0x220] ss:$16 sps:$4 sm:$0xff]  }
 0x181   : > { %v637_v18 = vmul.f32 0.01, %v590_v36  ;;  %v594_v24 = vpop.f32.mrb[3].mxu0  ;;  %v4711_v25 = vld [vmem:[#allocation7 + $0x224] ss:$16 sps:$4 sm:$0xff]  }
 0x182   : > { %v638_v17 = vmul.f32 0.01, %v592_v32  ;;  %6558 = vst [vmem:[#allocation41_spill] sm:$0xff] %v4711_v25  ;;  %v4713_v24 = vld [vmem:[#allocation7 + $0x22c] ss:$16 sps:$4 sm:$0xff]  }
 0x183   : > { %v4698_v23 = vmax.f32 %v590_v36, %v637_v18  ;;  %6559 = vst [vmem:[#allocation42_spill] sm:$0xff] %v4713_v24  ;;  %v390_v18 = vrot.slane %v4689_v30, %v6180_v14  ;;  %v4728_v36 = vld [vmem:[#allocation7 + $0x244] ss:$16 sps:$4 sm:$0xff]  }
 0x184   : > { %v4701_v22 = vmax.f32 %v592_v32, %v638_v17  ;;  %v4718_v17 = vpop.f32.mrb[0].mxu1  ;;  %6560 = vst [vmem:[#allocation43_spill] sm:$0xff] %v4728_v36 }
 0x185   : > { %v774_v21 = vpack.c.bf16 %v4698_v23, %v4698_v23  ;;  %v632_v32 = vpop.f32.mrb[1].mxu1 }
 0x186   : > { %6555 = vst [vmem:[#allocation38_spill] sm:$0xff] %v4701_v22  ;;  %v775_v35 = vpack.c.bf16 %v4701_v22, %v4701_v22  ;;  %v633_v39 = vadd.f32 %v632_v32, %v390_v18  ;;  %v4750_v32 = vld [vmem:[#allocation7 + $0x260] ss:$16 sps:$4 sm:$0xff]  }
 0x187   : > { %6565 = vst [vmem:[#allocation48_spill] sm:$0xff] %v4750_v32 }
 0x188   : > { %1471 = vmatprep.mubr.bf16.mxu0 %v775_v35  ;;  %1553 = vmatprep.mubr.bf16.mxu1 %v775_v35  ;;  %v4730_v35 = vld [vmem:[#allocation7 + $0x24c] ss:$16 sps:$4 sm:$0xff]   ;;  %v640_v22 = vmul.f32 0.01, %v633_v39 }
 0x189   : > { %1472 = vmatmul.mubr.bf16.vlgmr.msra.gmra.mrb[4].mxu0 %v774_v21  ;;  %1554 = vmatmul.mubr.bf16.vlgmr.msra.gmra.mrb[4].mxu1 %v774_v21  ;;  %6561 = vst [vmem:[#allocation44_spill] sm:$0xff] %v4730_v35  ;;  %v634_v21 = vpop.f32.mrb[2].mxu1 }
 0x18a   : > { %1481 = vmatpush1.bf16.msra.mxu0 %v4705_v13  ;;  %1563 = vmatpush1.bf16.msra.mxu1 %v4707_v31  ;;  %v635_v14 = vpop.f32.mrb[3].mxu1  ;;  %v4734_v31 = vld [vmem:[#allocation7 + $0x240] ss:$16 sps:$4 sm:$0xff]   ;;  %v4736_v13 = vld [vmem:[#allocation7 + $0x248] ss:$16 sps:$4 sm:$0xff]   ;;  %v4744_v18 = vmax.f32 %v633_v39, %v640_v22 }
 0x18b   : > { %1482 = vmatprep.subr.bf16.mxu0 %v4711_v25  ;;  %1564 = vmatprep.subr.bf16.mxu1 %v4713_v24  ;;  %6562 = vst [vmem:[#allocation45_spill] sm:$0xff] %v4736_v13  ;;  %v4740_v24 = vld [vmem:[#allocation7 + $0x264] ss:$16 sps:$4 sm:$0xff]   ;;  %v4742_v25 = vld [vmem:[#allocation7 + $0x26c] ss:$16 sps:$4 sm:$0xff]  }
 0x18c   : > { %6563 = vst [vmem:[#allocation46_spill] sm:$0xff] %v4740_v24  ;;  %6564 = vst [vmem:[#allocation47_spill] sm:$0xff] %v4742_v25  ;;  %v777_v14 = vpack.c.bf16 %v4744_v18, %v4744_v18  ;;  %v4752_v21 = vld [vmem:[#allocation7 + $0x268] ss:$16 sps:$4 sm:$0xff]   ;;  %v4762_v22 = vld [vmem:[#allocation7 + $0x280] ss:$16 sps:$4 sm:$0xff]  }
 0x18d   : > { %6566 = vst [vmem:[#allocation49_spill] sm:$0xff] %v4752_v21  ;;  %6569 = vst [vmem:[#allocation52_spill] sm:$0xff] %v4762_v22  ;;  %v4764_v39 = vld [vmem:[#allocation7 + $0x288] ss:$16 sps:$4 sm:$0xff]  }
 0x18e   : > { %1483 = vmatpush1.bf16.msra.mxu0 %v4722_v26  ;;  %1565 = vmatpush1.bf16.msra.mxu1 %v4724_v28  ;;  %6570 = vst [vmem:[#allocation53_spill] sm:$0xff] %v4764_v39 }
 0x18f   : > { %1484 = vmatprep.subr.bf16.mxu0 %v4728_v36  ;;  %1566 = vmatprep.subr.bf16.mxu1 %v4730_v35  ;;  %v4756_v35 = vld [vmem:[#allocation7 + $0x284] ss:$16 sps:$4 sm:$0xff]   ;;  %v4758_v36 = vld [vmem:[#allocation7 + $0x28c] ss:$16 sps:$4 sm:$0xff]  }
 0x190   : > { %6567 = vst [vmem:[#allocation50_spill] sm:$0xff] %v4756_v35  ;;  %6568 = vst [vmem:[#allocation51_spill] sm:$0xff] %v4758_v36  ;;  %1512 = vmatprep.mubr.bf16.mxu0 %v777_v14  ;;  %1594 = vmatprep.mubr.bf16.mxu1 %v777_v14  ;;  %v4774_v14 = vld [vmem:[#allocation7 + $0x2a0] ss:$16 sps:$4 sm:$0xff]  }
 0x191   : > { %6573 = vst [vmem:[#allocation56_spill] sm:$0xff] %v4774_v14 }
 0x192   : > { %1485 = vmatpush1.bf16.msra.mxu0 %v4734_v31  ;;  %1567 = vmatpush1.bf16.msra.mxu1 %v4736_v13  ;;  %v4869_v13 = vld [vmem:[#allocation7 + $0x3ac] ss:$16 sps:$4 sm:$0xff]  }
 0x193   : > { %1486 = vmatprep.subr.bf16.mxu0 %v4740_v24  ;;  %1568 = vmatprep.subr.bf16.mxu1 %v4742_v25  ;;  %v4768_v24 = vld [vmem:[#allocation7 + $0x2a4] ss:$16 sps:$4 sm:$0xff]   ;;  %v4770_v25 = vld [vmem:[#allocation7 + $0x2ac] ss:$16 sps:$4 sm:$0xff]   ;;  %6604 = vst [vmem:[#allocation86_spill] sm:$0xff] %v4869_v13 }
 0x194   : > { %6571 = vst [vmem:[#allocation54_spill] sm:$0xff] %v4768_v24  ;;  %6572 = vst [vmem:[#allocation55_spill] sm:$0xff] %v4770_v25 }
 0x196   : > { %1487 = vmatpush1.bf16.msra.mxu0 %v4750_v32  ;;  %1569 = vmatpush1.bf16.msra.mxu1 %v4752_v21  ;;  %v4776_v32 = vld [vmem:[#allocation7 + $0x2a8] ss:$16 sps:$4 sm:$0xff]   ;;  %v4780_v21 = vld [vmem:[#allocation7 + $0x2c4] ss:$16 sps:$4 sm:$0xff]  }
 0x197   : > { %1488 = vmatprep.subr.bf16.mxu0 %v4756_v35  ;;  %1570 = vmatprep.subr.bf16.mxu1 %v4758_v36  ;;  %6574 = vst [vmem:[#allocation57_spill] sm:$0xff] %v4776_v32  ;;  %6575 = vst [vmem:[#allocation58_spill] sm:$0xff] %v4780_v21  ;;  %v4782_v35 = vld [vmem:[#allocation7 + $0x2cc] ss:$16 sps:$4 sm:$0xff]   ;;  %v4786_v36 = vld [vmem:[#allocation7 + $0x2c0] ss:$16 sps:$4 sm:$0xff]  }
 0x198   : > { %6576 = vst [vmem:[#allocation59_spill] sm:$0xff] %v4782_v35  ;;  %6577 = vst [vmem:[#allocation60_spill] sm:$0xff] %v4786_v36 }
 0x19a   : > { %1489 = vmatpush1.bf16.msra.mxu0 %v4762_v22  ;;  %1571 = vmatpush1.bf16.msra.mxu1 %v4764_v39  ;;  %v4788_v22 = vld [vmem:[#allocation7 + $0x2c8] ss:$16 sps:$4 sm:$0xff]   ;;  %v4792_v39 = vld [vmem:[#allocation7 + $0x2e4] ss:$16 sps:$4 sm:$0xff]  }
 0x19b   : > { %1490 = vmatprep.subr.bf16.mxu0 %v4768_v24  ;;  %1572 = vmatprep.subr.bf16.mxu1 %v4770_v25  ;;  %6578 = vst [vmem:[#allocation61_spill] sm:$0xff] %v4788_v22  ;;  %6579 = vst [vmem:[#allocation62_spill] sm:$0xff] %v4792_v39  ;;  %v4794_v24 = vld [vmem:[#allocation7 + $0x2ec] ss:$16 sps:$4 sm:$0xff]   ;;  %v4798_v25 = vld [vmem:[#allocation7 + $0x2e0] ss:$16 sps:$4 sm:$0xff]  }
 0x19c   : > { %6580 = vst [vmem:[#allocation63_spill] sm:$0xff] %v4794_v24  ;;  %6581 = vst [vmem:[#allocation64_spill] sm:$0xff] %v4798_v25 }
 0x19e   : > { %1491 = vmatpush1.bf16.msra.mxu0 %v4774_v14  ;;  %1573 = vmatpush1.bf16.msra.mxu1 %v4776_v32  ;;  %v4800_v14 = vld [vmem:[#allocation7 + $0x2e8] ss:$16 sps:$4 sm:$0xff]   ;;  %v4804_v32 = vld [vmem:[#allocation7 + $0x304] ss:$16 sps:$4 sm:$0xff]  }
 0x19f   : > { %1492 = vmatprep.subr.bf16.mxu0 %v4780_v21  ;;  %1574 = vmatprep.subr.bf16.mxu1 %v4782_v35  ;;  %6582 = vst [vmem:[#allocation65_spill] sm:$0xff] %v4800_v14  ;;  %6583 = vst [vmem:[#allocation66_spill] sm:$0xff] %v4804_v32  ;;  %v4806_v21 = vld [vmem:[#allocation7 + $0x30c] ss:$16 sps:$4 sm:$0xff]   ;;  %v4810_v35 = vld [vmem:[#allocation7 + $0x300] ss:$16 sps:$4 sm:$0xff]  }
 0x1a0   : > { %6584 = vst [vmem:[#allocation67_spill] sm:$0xff] %v4806_v21  ;;  %6585 = vst [vmem:[#allocation68_spill] sm:$0xff] %v4810_v35 }
 0x1a2   : > { %1493 = vmatpush1.bf16.msra.mxu0 %v4786_v36  ;;  %1575 = vmatpush1.bf16.msra.mxu1 %v4788_v22  ;;  %v4812_v36 = vld [vmem:[#allocation7 + $0x308] ss:$16 sps:$4 sm:$0xff]   ;;  %v4816_v22 = vld [vmem:[#allocation7 + $0x324] ss:$16 sps:$4 sm:$0xff]  }
 0x1a3   : > { %1494 = vmatprep.subr.bf16.mxu0 %v4792_v39  ;;  %1576 = vmatprep.subr.bf16.mxu1 %v4794_v24  ;;  %6586 = vst [vmem:[#allocation69_spill] sm:$0xff] %v4812_v36  ;;  %6587 = vst [vmem:[#allocation70_spill] sm:$0xff] %v4816_v22  ;;  %v4818_v39 = vld [vmem:[#allocation7 + $0x32c] ss:$16 sps:$4 sm:$0xff]   ;;  %v4822_v24 = vld [vmem:[#allocation7 + $0x320] ss:$16 sps:$4 sm:$0xff]  }
 0x1a4   : > { %6588 = vst [vmem:[#allocation71_spill] sm:$0xff] %v4818_v39  ;;  %6589 = vst [vmem:[#allocation72_spill] sm:$0xff] %v4822_v24 }
 0x1a6   : > { %1495 = vmatpush1.bf16.msra.mxu0 %v4798_v25  ;;  %1577 = vmatpush1.bf16.msra.mxu1 %v4800_v14  ;;  %v4824_v25 = vld [vmem:[#allocation7 + $0x328] ss:$16 sps:$4 sm:$0xff]   ;;  %v4828_v14 = vld [vmem:[#allocation7 + $0x344] ss:$16 sps:$4 sm:$0xff]  }
 0x1a7   : > { %1496 = vmatprep.subr.bf16.mxu0 %v4804_v32  ;;  %1578 = vmatprep.subr.bf16.mxu1 %v4806_v21  ;;  %6590 = vst [vmem:[#allocation73_spill] sm:$0xff] %v4824_v25  ;;  %6591 = vst [vmem:[#allocation74_spill] sm:$0xff] %v4828_v14  ;;  %v4830_v32 = vld [vmem:[#allocation7 + $0x34c] ss:$16 sps:$4 sm:$0xff]   ;;  %v4834_v21 = vld [vmem:[#allocation7 + $0x340] ss:$16 sps:$4 sm:$0xff]  }
 0x1a8   : > { %6592 = vst [vmem:[#allocation75_spill] sm:$0xff] %v4830_v32  ;;  %6593 = vst [vmem:[#allocation76_spill] sm:$0xff] %v4834_v21 }
 0x1aa   : > { %1497 = vmatpush1.bf16.msra.mxu0 %v4810_v35  ;;  %1579 = vmatpush1.bf16.msra.mxu1 %v4812_v36  ;;  %v4836_v35 = vld [vmem:[#allocation7 + $0x348] ss:$16 sps:$4 sm:$0xff]   ;;  %v4840_v36 = vld [vmem:[#allocation7 + $0x364] ss:$16 sps:$4 sm:$0xff]  }
 0x1ab   : > { %1498 = vmatprep.subr.bf16.mxu0 %v4816_v22  ;;  %1580 = vmatprep.subr.bf16.mxu1 %v4818_v39  ;;  %6594 = vst [vmem:[#allocation77_spill] sm:$0xff] %v4836_v35  ;;  %6595 = vst [vmem:[#allocation78_spill] sm:$0xff] %v4840_v36  ;;  %v4842_v22 = vld [vmem:[#allocation7 + $0x36c] ss:$16 sps:$4 sm:$0xff]   ;;  %v4846_v39 = vld [vmem:[#allocation7 + $0x360] ss:$16 sps:$4 sm:$0xff]  }
 0x1ac   : > { %6596 = vst [vmem:[#allocation79_spill] sm:$0xff] %v4842_v22  ;;  %6597 = vst [vmem:[#allocation80_spill] sm:$0xff] %v4846_v39 }
 0x1ae   : > { %1499 = vmatpush1.bf16.msra.mxu0 %v4822_v24  ;;  %1581 = vmatpush1.bf16.msra.mxu1 %v4824_v25  ;;  %v4848_v24 = vld [vmem:[#allocation7 + $0x368] ss:$16 sps:$4 sm:$0xff]   ;;  %v4852_v25 = vld [vmem:[#allocation7 + $0x384] ss:$16 sps:$4 sm:$0xff]  }
 0x1af   : > { %1500 = vmatprep.subr.bf16.mxu0 %v4828_v14  ;;  %1582 = vmatprep.subr.bf16.mxu1 %v4830_v32  ;;  %6598 = vst [vmem:[#allocation81_spill] sm:$0xff] %v4848_v24  ;;  %6599 = vst [vmem:[#allocation82_spill] sm:$0xff] %v4852_v25  ;;  %v4854_v14 = vld [vmem:[#allocation7 + $0x38c] ss:$16 sps:$4 sm:$0xff]   ;;  %v4858_v32 = vld [vmem:[#allocation7 + $0x380] ss:$16 sps:$4 sm:$0xff]  }
 0x1b0   : > { %6600 = vst [vmem:[#allocation83_spill] sm:$0xff] %v4854_v14  ;;  %6601 = vst [vmem:[#allocation84_spill] sm:$0xff] %v4858_v32 }
 0x1b2   : > { %1501 = vmatpush1.bf16.msra.mxu0 %v4834_v21  ;;  %1583 = vmatpush1.bf16.msra.mxu1 %v4836_v35  ;;  %v4860_v21 = vld [vmem:[#allocation7 + $0x388] ss:$16 sps:$4 sm:$0xff]   ;;  %v4867_v35 = vld [vmem:[#allocation7 + $0x3a4] ss:$16 sps:$4 sm:$0xff]  }
 0x1b3   : > { %1502 = vmatprep.subr.bf16.mxu0 %v4840_v36  ;;  %1584 = vmatprep.subr.bf16.mxu1 %v4842_v22  ;;  %6602 = vst [vmem:[#allocation85_spill] sm:$0xff] %v4860_v21  ;;  %v6603_v36 = vsub.s32 2, %v4672_v27 }
 0x1b5   : > { %v386_v22 = vrot.slane %v4689_v30, %v6603_v36  ;;  %v4882_v30 = vld [vmem:[#allocation7 + $0x3cc] ss:$16 sps:$4 sm:$0xff]   ;;  %v4886_v36 = vld [vmem:[#allocation7 + $0x3c0] ss:$16 sps:$4 sm:$0xff]  }
 0x1b6   : > { %1503 = vmatpush1.bf16.msra.mxu0 %v4846_v39  ;;  %1585 = vmatpush1.bf16.msra.mxu1 %v4848_v24  ;;  %v4873_v24 = vld [vmem:[#allocation7 + $0x3a0] ss:$16 sps:$4 sm:$0xff]   ;;  %v4875_v39 = vld [vmem:[#allocation7 + $0x3a8] ss:$16 sps:$4 sm:$0xff]   ;;  %6607 = vst [vmem:[#allocation89_spill] sm:$0xff] %v4882_v30  ;;  %6608 = vst [vmem:[#allocation90_spill] sm:$0xff] %v4886_v36 }
 0x1b7   : > { %1504 = vmatprep.subr.bf16.mxu0 %v4852_v25  ;;  %1586 = vmatprep.subr.bf16.mxu1 %v4854_v14  ;;  %6605 = vst [vmem:[#allocation87_spill] sm:$0xff] %v4873_v24  ;;  %6606 = vst [vmem:[#allocation88_spill] sm:$0xff] %v4875_v39  ;;  %v631_v25 = vadd.f32 %v4718_v17, %v386_v22  ;;  %v4880_v14 = vld [vmem:[#allocation7 + $0x3c4] ss:$16 sps:$4 sm:$0xff]   ;;  %v4894_v22 = vld [vmem:[#allocation7 + $0x3ec] ss:$16 sps:$4 sm:$0xff]  }
 0x1b8   : > { %v4892_v17 = vld [vmem:[#allocation7 + $0x3e4] ss:$16 sps:$4 sm:$0xff]  }
 0x1ba   : > { %1505 = vmatpush1.bf16.msra.mxu0 %v4858_v32  ;;  %1587 = vmatpush1.bf16.msra.mxu1 %v4860_v21  ;;  %v4888_v21 = vld [vmem:[#allocation7 + $0x3c8] ss:$16 sps:$4 sm:$0xff]   ;;  %v639_v32 = vmul.f32 0.01, %v631_v25 }
 0x1bb   : > { %1506 = vmatprep.subr.bf16.mxu0 %v4867_v35  ;;  %1588 = vmatprep.subr.bf16.mxu1 %v4869_v13 }
 0x1bc   : > { %v4902_v13 = vmax.f32 %v631_v25, %v639_v32 }
 0x1be   : > { %1507 = vmatpush1.bf16.msra.mxu0 %v4873_v24  ;;  %1589 = vmatpush1.bf16.msra.mxu1 %v4875_v39  ;;  %v4898_v24 = vld [vmem:[#allocation7 + $0x3e0] ss:$16 sps:$4 sm:$0xff]   ;;  %v4900_v39 = vld [vmem:[#allocation7 + $0x3e8] ss:$16 sps:$4 sm:$0xff]  }
 0x1bf   : > { %1508 = vmatprep.subr.bf16.mxu0 %v4880_v14  ;;  %1590 = vmatprep.subr.bf16.mxu1 %v4882_v30  ;;  %6609 = vst [vmem:[#allocation91_spill] sm:$0xff] %v4898_v24  ;;  %6610 = vst [vmem:[#allocation92_spill] sm:$0xff] %v4900_v39  ;;  %v776_v30 = vpack.c.bf16 %v4902_v13, %v4902_v13 }
 0x1c2   : > { %1509 = vmatpush1.bf16.msra.mxu0 %v4886_v36  ;;  %1591 = vmatpush1.bf16.msra.mxu1 %v4888_v21 }
 0x1c3   : > { %1510 = vmatprep.subr.bf16.mxu0 %v4892_v17  ;;  %1592 = vmatprep.subr.bf16.mxu1 %v4894_v22 }
 0x1c6   : > { %1511 = vmatpush1.bf16.msra.mxu0 %v4898_v24  ;;  %1593 = vmatpush1.bf16.msra.mxu1 %v4900_v39 }
 0x1c7   : > { %1619 = vmatprep.subr.bf16.mxu0 %v4474_v29  ;;  %1701 = vmatprep.subr.bf16.mxu1 %v4487_v40  ;;  %v6611_v29 = vld [vmem:[#allocation16_spill] sm:$0xff]  ;;  %v6616_v40 = vld [vmem:[#allocation23_spill] sm:$0xff] }
 0x1c9   : > { %1513 = vmatmul.mubr.bf16.vlgmr.msra.gmra.mrb[4].mxu0 %v776_v30  ;;  %1595 = vmatmul.mubr.bf16.vlgmr.msra.gmra.mrb[4].mxu1 %v776_v30  ;;  %v6635_v30 = vld [vmem:[#allocation38_spill] sm:$0xff] }
 0x1ca   : > { %1620 = vmatpush1.bf16.msra.mxu0 %v4476_v33  ;;  %1702 = vmatpush1.bf16.msra.mxu1 %v4495_v43  ;;  %v6612_v33 = vld [vmem:[#allocation21_spill] sm:$0xff]  ;;  %v6619_v43 = vld [vmem:[#allocation20_spill] sm:$0xff] }
 0x1cb   : > { %1621 = vmatprep.subr.bf16.mxu0 %v4479_v34  ;;  %1703 = vmatprep.subr.bf16.mxu1 %v4497_v44  ;;  %v6613_v34 = vld [vmem:[#allocation17_spill] sm:$0xff] }
 0x1cc   : > { %v6620_v44 = vld [vmem:[#allocation25_spill] sm:$0xff] }
 0x1ce   : > { %1622 = vmatpush1.bf16.msra.mxu0 %v4482_v37  ;;  %1704 = vmatpush1.bf16.msra.mxu1 %v4507_v47  ;;  %v6614_v37 = vld [vmem:[#allocation22_spill] sm:$0xff]  ;;  %v6623_v47 = vld [vmem:[#allocation28_spill] sm:$0xff] }
 0x1cf   : > { %1623 = vmatprep.subr.bf16.mxu0 %v4485_v38  ;;  %1705 = vmatprep.subr.bf16.mxu1 %v4510_v48  ;;  %v6615_v38 = vld [vmem:[#allocation18_spill] sm:$0xff]  ;;  %v6624_v48 = vld [vmem:[#allocation29_spill] sm:$0xff] }
 0x1d2   : > { %1624 = vmatpush1.bf16.msra.mxu0 %v4490_v41  ;;  %1706 = vmatpush1.bf16.msra.mxu1 %v4519_v51  ;;  %v6617_v41 = vld [vmem:[#allocation19_spill] sm:$0xff]  ;;  %v6627_v51 = vld [vmem:[#allocation32_spill] sm:$0xff] }
 0x1d3   : > { %1625 = vmatprep.subr.bf16.mxu0 %v4493_v42  ;;  %1707 = vmatprep.subr.bf16.mxu1 %v4521_v52  ;;  %v6618_v42 = vld [vmem:[#allocation24_spill] sm:$0xff]  ;;  %v6628_v52 = vld [vmem:[#allocation33_spill] sm:$0xff] }
 0x1d6   : > { %1626 = vmatpush1.bf16.msra.mxu0 %v4501_v45  ;;  %1708 = vmatpush1.bf16.msra.mxu1 %v4531_v55  ;;  %v6621_v45 = vld [vmem:[#allocation26_spill] sm:$0xff]  ;;  %v6631_v55 = vsub.s32 0, %v4672_v27 }
 0x1d7   : > { %1627 = vmatprep.subr.bf16.mxu0 %v4504_v46  ;;  %1709 = vmatprep.subr.bf16.mxu1 %v4534_v56  ;;  %v6622_v46 = vld [vmem:[#allocation27_spill] sm:$0xff]  ;;  %v6632_v56 = vld [vmem:[#allocation36_spill] sm:$0xff] }
 0x1da   : > { %1628 = vmatpush1.bf16.msra.mxu0 %v4513_v49  ;;  %1710 = vmatpush1.bf16.msra.mxu1 %v4543_v59  ;;  %v6625_v49 = vld [vmem:[#allocation30_spill] sm:$0xff] }
 0x1db   : > { %1629 = vmatprep.subr.bf16.mxu0 %v4516_v50  ;;  %1711 = vmatprep.subr.bf16.mxu1 %v4545_v60  ;;  %v6626_v50 = vld [vmem:[#allocation31_spill] sm:$0xff]  ;;  %v6634_v60 = vsub.s32 3, %v4672_v27 }
 0x1de   : > { %1630 = vmatpush1.bf16.msra.mxu0 %v4525_v53  ;;  %1712 = vmatpush1.bf16.msra.mxu1 %v4553_v63  ;;  %v6629_v53 = vld [vmem:[#allocation34_spill] sm:$0xff] }
 0x1df   : > { %1631 = vmatprep.subr.bf16.mxu0 %v4528_v54  ;;  %1713 = vmatprep.subr.bf16.mxu1 %v4556_v0  ;;  %v6630_v54 = vld [vmem:[#allocation35_spill] sm:$0xff] }
 0x1e2   : > { %1632 = vmatpush1.bf16.msra.mxu0 %v4537_v57  ;;  %1714 = vmatpush1.bf16.msra.mxu1 %v4565_v3  ;;  %v4979_v57 = vrot.slane %v6632_v56, %v6631_v55  ;;  %v6636_v55 = vld [vmem:[#allocation39_spill] sm:$0xff] }
 0x1e3   : > { %1633 = vmatprep.subr.bf16.mxu0 %v4540_v58  ;;  %1715 = vmatprep.subr.bf16.mxu1 %v4568_v4  ;;  %v6633_v58 = vsub.s32 1, %v4672_v27 }
 0x1e5   : > { %v4984_v59 = vrot.slane %v6632_v56, %v6633_v58  ;;  %v6639_v58 = vld [vmem:[#allocation42_spill] sm:$0xff] }
 0x1e6   : > { %1634 = vmatpush1.bf16.msra.mxu0 %v4547_v61  ;;  %1716 = vmatpush1.bf16.msra.mxu1 %v4577_v7  ;;  %v4989_v61 = vrot.slane %v6632_v56, %v6634_v60  ;;  %v6637_v56 = vld [vmem:[#allocation40_spill] sm:$0xff]  ;;  %v6640_v60 = vld [vmem:[#allocation43_spill] sm:$0xff] }
 0x1e7   : > { %1635 = vmatprep.subr.bf16.mxu0 %v4551_v62  ;;  %1717 = vmatprep.subr.bf16.mxu1 %v4580_v8 }
 0x1ea   : > { %1636 = vmatpush1.bf16.msra.mxu0 %v4558_v1  ;;  %1718 = vmatpush1.bf16.msra.mxu1 %v4589_v11 }
 0x1eb   : > { %1637 = vmatprep.subr.bf16.mxu0 %v4561_v2  ;;  %1719 = vmatprep.subr.bf16.mxu1 %v4592_v12 }
 0x1ee   : > { %1638 = vmatpush1.bf16.msra.mxu0 %v4570_v5  ;;  %1720 = vmatpush1.bf16.msra.mxu1 %v4601_v15 }
 0x1ef   : > { %1639 = vmatprep.subr.bf16.mxu0 %v4573_v6  ;;  %1721 = vmatprep.subr.bf16.mxu1 %v4604_v16 }
 0x1f2   : > { %1640 = vmatpush1.bf16.msra.mxu0 %v4582_v9  ;;  %1722 = vmatpush1.bf16.msra.mxu1 %v4613_v19 }
 0x1f3   : > { %1641 = vmatprep.subr.bf16.mxu0 %v4585_v10  ;;  %1723 = vmatprep.subr.bf16.mxu1 %v4616_v20 }
 0x1f6   : > { %1642 = vmatpush1.bf16.msra.mxu0 %v6611_v29  ;;  %1724 = vmatpush1.bf16.msra.mxu1 %v6612_v33 }
 0x1f7   : > { %1643 = vmatprep.subr.bf16.mxu0 %v6613_v34  ;;  %1725 = vmatprep.subr.bf16.mxu1 %v6614_v37 }
 0x1fa   : > { %1644 = vmatpush1.bf16.msra.mxu0 %v6615_v38  ;;  %1726 = vmatpush1.bf16.msra.mxu1 %v6616_v40 }
 0x1fb   : > { %1645 = vmatprep.subr.bf16.mxu0 %v6617_v41  ;;  %1727 = vmatprep.subr.bf16.mxu1 %v6618_v42 }
 0x1fe   : > { %1646 = vmatpush1.bf16.msra.mxu0 %v6619_v43  ;;  %1728 = vmatpush1.bf16.msra.mxu1 %v6620_v44 }
 0x1ff   : > { %1647 = vmatprep.subr.bf16.mxu0 %v6621_v45  ;;  %1729 = vmatprep.subr.bf16.mxu1 %v6622_v46 }
 0x202   : > { %1648 = vmatpush1.bf16.msra.mxu0 %v6623_v47  ;;  %1730 = vmatpush1.bf16.msra.mxu1 %v6624_v48 }
 0x203   : > { %1649 = vmatprep.subr.bf16.mxu0 %v6625_v49  ;;  %1731 = vmatprep.subr.bf16.mxu1 %v6626_v50 }
 0x206   : > { %1650 = vmatpush1.bf16.msra.mxu0 %v6627_v51  ;;  %1732 = vmatpush1.bf16.msra.mxu1 %v6628_v52 }
 0x207   : > { %1660 = vmatprep.subr.bf16.mxu0 %v6629_v53  ;;  %1742 = vmatprep.subr.bf16.mxu1 %v6630_v54 }
 0x29c   : > { %v1514_v62 = vpop.f32.mrb[4].mxu0  ;;  %v4991_v63 = vpop.f32.mrb[4].mxu1 }
 0x29d   : > { %v3411_v0 = vadd.f32 %v1514_v62, %v4979_v57  ;;  %v1516_v1 = vpop.f32.mrb[5].mxu0  ;;  %v1598_v2 = vpop.f32.mrb[5].mxu1  ;;  %v6641_v62 = vld [vmem:[#allocation44_spill] sm:$0xff] }
 0x29e   : > { %v3412_v3 = vadd.f32 %v1516_v1, %v4984_v59  ;;  %v3414_v4 = vadd.f32 %v1598_v2, %v4989_v61  ;;  %v1518_v5 = vpop.f32.mrb[6].mxu0  ;;  %v1600_v6 = vpop.f32.mrb[6].mxu1  ;;  %v6643_v1 = vld [vmem:[#allocation46_spill] sm:$0xff]  ;;  %v6644_v2 = vld [vmem:[#allocation47_spill] sm:$0xff] }
 0x29f   : > { %v1603_v7 = vmul.f32 0.01, %v3411_v0  ;;  %v1519_v8 = vpop.f32.mrb[7].mxu0  ;;  %v1601_v9 = vpop.f32.mrb[7].mxu1  ;;  %v6647_v5 = vld [vmem:[#allocation50_spill] sm:$0xff]  ;;  %v6648_v6 = vld [vmem:[#allocation51_spill] sm:$0xff] }
 0x2a0   : > { %v1604_v10 = vmul.f32 0.01, %v3412_v3  ;;  %v1606_v11 = vmul.f32 0.01, %v3414_v4  ;;  %v6650_v8 = vld [vmem:[#allocation53_spill] sm:$0xff]  ;;  %v6651_v9 = vld [vmem:[#allocation54_spill] sm:$0xff] }
 0x2a1   : > { %v1607_v12 = vmax.f32 %v3411_v0, %v1603_v7  ;;  %v6642_v0 = vld [vmem:[#allocation45_spill] sm:$0xff]  ;;  %v6649_v7 = vld [vmem:[#allocation52_spill] sm:$0xff] }
 0x2a2   : > { %v1608_v27 = vmax.f32 %v3412_v3, %v1604_v10  ;;  %v1610_v25 = vmax.f32 %v3414_v4, %v1606_v11  ;;  %v6645_v3 = vld [vmem:[#allocation48_spill] sm:$0xff]  ;;  %v6646_v4 = vld [vmem:[#allocation49_spill] sm:$0xff]  ;;  %v6652_v10 = vld [vmem:[#allocation55_spill] sm:$0xff] }
 0x2a3   : > { %v4997_v32 = vadd.f32 %v1607_v12, %v4698_v23  ;;  %v6653_v11 = vld [vmem:[#allocation56_spill] sm:$0xff]  ;;  %v6654_v12 = vld [vmem:[#allocation57_spill] sm:$0xff] }
 0x2a4   : > { %v5000_v29 = vadd.f32 %v1608_v27, %v6635_v30  ;;  %v5003_v34 = vadd.f32 %v1610_v25, %v4744_v18  ;;  %v6638_v18 = vld [vmem:[#allocation41_spill] sm:$0xff]  ;;  %v6655_v27 = vld [vmem:[#allocation58_spill] sm:$0xff]  ;;  %v6656_v25 = vld [vmem:[#allocation59_spill] sm:$0xff] }
 0x2a5   : > { %v1615_v41 = vpack.c.bf16 %v4997_v32, %v4997_v32  ;;  %v6657_v30 = vld [vmem:[#allocation60_spill] sm:$0xff] }
 0x2a6   : > { %v1616_v38 = vpack.c.bf16 %v5000_v29, %v5000_v29  ;;  %v1618_v23 = vpack.c.bf16 %v5003_v34, %v5003_v34 }
 0x2a8   : > { %1651 = vmatprep.mubr.bf16.mxu0 %v1616_v38  ;;  %1733 = vmatprep.mubr.bf16.mxu1 %v1616_v38  ;;  %v6658_v38 = vld [vmem:[#allocation61_spill] sm:$0xff] }
 0x2a9   : > { %1652 = vmatmul.mubr.bf16.vlgmr.msra.gmra.mrb[8].mxu0 %v1615_v41  ;;  %1734 = vmatmul.mubr.bf16.vlgmr.msra.gmra.mrb[8].mxu1 %v1615_v41  ;;  %v6659_v41 = vld [vmem:[#allocation62_spill] sm:$0xff] }
 0x2aa   : > { %1661 = vmatpush1.bf16.msra.mxu0 %v6636_v55  ;;  %1743 = vmatpush1.bf16.msra.mxu1 %v6637_v56 }
 0x2ab   : > { %1692 = vmatprep.mubr.bf16.mxu0 %v1618_v23  ;;  %1774 = vmatprep.mubr.bf16.mxu1 %v1618_v23  ;;  %v6660_v23 = vld [vmem:[#allocation63_spill] sm:$0xff] }
 0x2ac   : > { %1662 = vmatprep.subr.bf16.mxu0 %v6638_v18  ;;  %1744 = vmatprep.subr.bf16.mxu1 %v6639_v58 }
 0x2ae   : > { %1663 = vmatpush1.bf16.msra.mxu0 %v4722_v26  ;;  %1745 = vmatpush1.bf16.msra.mxu1 %v4724_v28 }
 0x2af   : > { %1664 = vmatprep.subr.bf16.mxu0 %v6640_v60  ;;  %1746 = vmatprep.subr.bf16.mxu1 %v6641_v62 }
 0x2b2   : > { %1665 = vmatpush1.bf16.msra.mxu0 %v4734_v31  ;;  %1747 = vmatpush1.bf16.msra.mxu1 %v6642_v0 }
 0x2b3   : > { %1666 = vmatprep.subr.bf16.mxu0 %v6643_v1  ;;  %1748 = vmatprep.subr.bf16.mxu1 %v6644_v2 }
 0x2b6   : > { %1667 = vmatpush1.bf16.msra.mxu0 %v6645_v3  ;;  %1749 = vmatpush1.bf16.msra.mxu1 %v6646_v4 }
 0x2b7   : > { %1668 = vmatprep.subr.bf16.mxu0 %v6647_v5  ;;  %1750 = vmatprep.subr.bf16.mxu1 %v6648_v6 }
 0x2ba   : > { %1669 = vmatpush1.bf16.msra.mxu0 %v6649_v7  ;;  %1751 = vmatpush1.bf16.msra.mxu1 %v6650_v8  ;;  %v6661_v8 = vld [vmem:[#allocation64_spill] sm:$0xff] }
 0x2bb   : > { %1670 = vmatprep.subr.bf16.mxu0 %v6651_v9  ;;  %1752 = vmatprep.subr.bf16.mxu1 %v6652_v10  ;;  %v6662_v9 = vld [vmem:[#allocation65_spill] sm:$0xff]  ;;  %v6663_v10 = vld [vmem:[#allocation66_spill] sm:$0xff] }
 0x2be   : > { %1671 = vmatpush1.bf16.msra.mxu0 %v6653_v11  ;;  %1753 = vmatpush1.bf16.msra.mxu1 %v6654_v12  ;;  %v6664_v11 = vld [vmem:[#allocation67_spill] sm:$0xff]  ;;  %v6665_v12 = vld [vmem:[#allocation68_spill] sm:$0xff] }
 0x2bf   : > { %1672 = vmatprep.subr.bf16.mxu0 %v6655_v27  ;;  %1754 = vmatprep.subr.bf16.mxu1 %v6656_v25  ;;  %v6666_v27 = vld [vmem:[#allocation69_spill] sm:$0xff]  ;;  %v6667_v25 = vld [vmem:[#allocation70_spill] sm:$0xff] }
 0x2c2   : > { %1673 = vmatpush1.bf16.msra.mxu0 %v6657_v30  ;;  %1755 = vmatpush1.bf16.msra.mxu1 %v6658_v38  ;;  %v6668_v30 = vld [vmem:[#allocation71_spill] sm:$0xff]  ;;  %v6669_v38 = vld [vmem:[#allocation72_spill] sm:$0xff] }
 0x2c3   : > { %1674 = vmatprep.subr.bf16.mxu0 %v6659_v41  ;;  %1756 = vmatprep.subr.bf16.mxu1 %v6660_v23  ;;  %v6670_v41 = vld [vmem:[#allocation73_spill] sm:$0xff]  ;;  %v6671_v23 = vld [vmem:[#allocation74_spill] sm:$0xff] }
 0x2c6   : > { %1675 = vmatpush1.bf16.msra.mxu0 %v6661_v8  ;;  %1757 = vmatpush1.bf16.msra.mxu1 %v6662_v9  ;;  %v6672_v8 = vld [vmem:[#allocation75_spill] sm:$0xff]  ;;  %v6673_v9 = vld [vmem:[#allocation76_spill] sm:$0xff] }
 0x2c7   : > { %1676 = vmatprep.subr.bf16.mxu0 %v6663_v10  ;;  %1758 = vmatprep.subr.bf16.mxu1 %v6664_v11  ;;  %v6674_v10 = vld [vmem:[#allocation77_spill] sm:$0xff]  ;;  %v6675_v11 = vld [vmem:[#allocation78_spill] sm:$0xff] }
 0x2ca   : > { %1677 = vmatpush1.bf16.msra.mxu0 %v6665_v12  ;;  %1759 = vmatpush1.bf16.msra.mxu1 %v6666_v27  ;;  %v6676_v12 = vld [vmem:[#allocation79_spill] sm:$0xff]  ;;  %v6677_v27 = vld [vmem:[#allocation80_spill] sm:$0xff] }
 0x2cb   : > { %1678 = vmatprep.subr.bf16.mxu0 %v6667_v25  ;;  %1760 = vmatprep.subr.bf16.mxu1 %v6668_v30  ;;  %v6678_v25 = vld [vmem:[#allocation81_spill] sm:$0xff] }
 0x2cc   : > { %v6679_v30 = vld [vmem:[#allocation37_spill] sm:$0xff] }
 0x2ce   : > { %1679 = vmatpush1.bf16.msra.mxu0 %v6669_v38  ;;  %1761 = vmatpush1.bf16.msra.mxu1 %v6670_v41  ;;  %v3413_v38 = vadd.f32 %v4991_v63, %v6679_v30  ;;  %v6680_v41 = vld [vmem:[#allocation82_spill] sm:$0xff]  ;;  %v6687_v63 = vld [vmem:[#allocation89_spill] sm:$0xff] }
 0x2cf   : > { %1680 = vmatprep.subr.bf16.mxu0 %v6671_v23  ;;  %1762 = vmatprep.subr.bf16.mxu1 %v6672_v8  ;;  %v6681_v23 = vld [vmem:[#allocation83_spill] sm:$0xff]  ;;  %v6682_v8 = vld [vmem:[#allocation84_spill] sm:$0xff] }
 0x2d2   : > { %1681 = vmatpush1.bf16.msra.mxu0 %v6673_v9  ;;  %1763 = vmatpush1.bf16.msra.mxu1 %v6674_v10  ;;  %v6683_v9 = vld [vmem:[#allocation85_spill] sm:$0xff]  ;;  %v1605_v10 = vmul.f32 0.01, %v3413_v38 }
 0x2d3   : > { %1682 = vmatprep.subr.bf16.mxu0 %v6675_v11  ;;  %1764 = vmatprep.subr.bf16.mxu1 %v6676_v12  ;;  %v6684_v11 = vld [vmem:[#allocation86_spill] sm:$0xff]  ;;  %v6685_v12 = vld [vmem:[#allocation87_spill] sm:$0xff] }
 0x2d6   : > { %1683 = vmatpush1.bf16.msra.mxu0 %v6677_v27  ;;  %1765 = vmatpush1.bf16.msra.mxu1 %v6678_v25  ;;  %v6686_v27 = vld [vmem:[#allocation88_spill] sm:$0xff]  ;;  %v1609_v25 = vmax.f32 %v3413_v38, %v1605_v10 }
 0x2d7   : > { %1684 = vmatprep.subr.bf16.mxu0 %v6680_v41  ;;  %1766 = vmatprep.subr.bf16.mxu1 %v6681_v23  ;;  %v5080_v38 = vld [vmem:[#allocation7 + $0x4] ss:$16 sps:$4 sm:$0xff]  }
 0x2d8   : > { %6688 = vst [vmem:[#allocation16_spill] sm:$0xff] %v5080_v38 }
 0x2da   : > { %1685 = vmatpush1.bf16.msra.mxu0 %v6682_v8  ;;  %1767 = vmatpush1.bf16.msra.mxu1 %v6683_v9  ;;  %v5072_v9 = vadd.f32 %v1609_v25, %v4902_v13  ;;  %v5086_v13 = vld [vmem:[#allocation7] ss:$16 sps:$4 sm:$0xff]   ;;  %v5089_v25 = vld [vmem:[#allocation7 + $0x8] ss:$16 sps:$4 sm:$0xff]  }
 0x2db   : > { %1686 = vmatprep.subr.bf16.mxu0 %v4867_v35  ;;  %1768 = vmatprep.subr.bf16.mxu1 %v6684_v11  ;;  %6689 = vst [vmem:[#allocation21_spill] sm:$0xff] %v5086_v13  ;;  %6690 = vst [vmem:[#allocation17_spill] sm:$0xff] %v5089_v25 }
 0x2dc   : > { %v1617_v10 = vpack.c.bf16 %v5072_v9, %v5072_v9 }
 0x2de   : > { %1687 = vmatpush1.bf16.msra.mxu0 %v6685_v12  ;;  %1769 = vmatpush1.bf16.msra.mxu1 %v6686_v27 }
 0x2df   : > { %1688 = vmatprep.subr.bf16.mxu0 %v4880_v14  ;;  %1770 = vmatprep.subr.bf16.mxu1 %v6687_v63 }
 0x2e2   : > { %1689 = vmatpush1.bf16.msra.mxu0 %v4886_v36  ;;  %1771 = vmatpush1.bf16.msra.mxu1 %v4888_v21  ;;  %v5083_v36 = vld [vmem:[#allocation7 + $0xc] ss:$16 sps:$4 sm:$0xff]  }
 0x2e3   : > { %1690 = vmatprep.subr.bf16.mxu0 %v4892_v17  ;;  %1772 = vmatprep.subr.bf16.mxu1 %v4894_v22 }
 0x2e6   : > { %1691 = vmatpush1.bf16.msra.mxu0 %v4898_v24  ;;  %1773 = vmatpush1.bf16.msra.mxu1 %v4900_v39  ;;  %v5092_v39 = vld [vmem:[#allocation7 + $0x24] ss:$16 sps:$4 sm:$0xff]   ;;  %v5095_v24 = vld [vmem:[#allocation7 + $0x2c] ss:$16 sps:$4 sm:$0xff]  }
 0x2e7   : > { %1799 = vmatprep.subr.bf16.mxu0 %v5080_v38  ;;  %1881 = vmatprep.subr.bf16.mxu1 %v5083_v36  ;;  %6691 = vst [vmem:[#allocation22_spill] sm:$0xff] %v5092_v39  ;;  %6692 = vst [vmem:[#allocation18_spill] sm:$0xff] %v5095_v24  ;;  %v5098_v38 = vld [vmem:[#allocation7 + $0x20] ss:$16 sps:$4 sm:$0xff]  }
 0x2e8   : > { %6693 = vst [vmem:[#allocation23_spill] sm:$0xff] %v5098_v38 }
 0x2e9   : > { %1693 = vmatmul.mubr.bf16.vlgmr.msra.gmra.mrb[8].mxu0 %v1617_v10  ;;  %1775 = vmatmul.mubr.bf16.vlgmr.msra.gmra.mrb[8].mxu1 %v1617_v10  ;;  %v5101_v10 = vld [vmem:[#allocation7 + $0x28] ss:$16 sps:$4 sm:$0xff]  }
 0x2ea   : > { %1800 = vmatpush1.bf16.msra.mxu0 %v5086_v13  ;;  %1882 = vmatpush1.bf16.msra.mxu1 %v5089_v25  ;;  %6694 = vst [vmem:[#allocation19_spill] sm:$0xff] %v5101_v10  ;;  %v5104_v13 = vld [vmem:[#allocation7 + $0x44] ss:$16 sps:$4 sm:$0xff]   ;;  %v5107_v25 = vld [vmem:[#allocation7 + $0x4c] ss:$16 sps:$4 sm:$0xff]  }
 0x2eb   : > { %1801 = vmatprep.subr.bf16.mxu0 %v5092_v39  ;;  %1883 = vmatprep.subr.bf16.mxu1 %v5095_v24  ;;  %6695 = vst [vmem:[#allocation24_spill] sm:$0xff] %v5104_v13  ;;  %6696 = vst [vmem:[#allocation20_spill] sm:$0xff] %v5107_v25  ;;  %v5110_v39 = vld [vmem:[#allocation7 + $0x40] ss:$16 sps:$4 sm:$0xff]   ;;  %v5113_v24 = vld [vmem:[#allocation7 + $0x48] ss:$16 sps:$4 sm:$0xff]  }
 0x2ec   : > { %6697 = vst [vmem:[#allocation25_spill] sm:$0xff] %v5110_v39  ;;  %6698 = vst [vmem:[#allocation26_spill] sm:$0xff] %v5113_v24 }
 0x2ee   : > { %1802 = vmatpush1.bf16.msra.mxu0 %v5098_v38  ;;  %1884 = vmatpush1.bf16.msra.mxu1 %v5101_v10  ;;  %v5116_v38 = vld [vmem:[#allocation7 + $0x64] ss:$16 sps:$4 sm:$0xff]   ;;  %v5119_v10 = vld [vmem:[#allocation7 + $0x6c] ss:$16 sps:$4 sm:$0xff]  }
 0x2ef   : > { %1803 = vmatprep.subr.bf16.mxu0 %v5104_v13  ;;  %1885 = vmatprep.subr.bf16.mxu1 %v5107_v25  ;;  %6699 = vst [vmem:[#allocation27_spill] sm:$0xff] %v5116_v38  ;;  %6700 = vst [vmem:[#allocation28_spill] sm:$0xff] %v5119_v10  ;;  %v5122_v13 = vld [vmem:[#allocation7 + $0x60] ss:$16 sps:$4 sm:$0xff]   ;;  %v5125_v25 = vld [vmem:[#allocation7 + $0x68] ss:$16 sps:$4 sm:$0xff]  }
 0x2f0   : > { %6701 = vst [vmem:[#allocation29_spill] sm:$0xff] %v5122_v13  ;;  %6702 = vst [vmem:[#allocation30_spill] sm:$0xff] %v5125_v25 }
 0x2f2   : > { %1804 = vmatpush1.bf16.msra.mxu0 %v5110_v39  ;;  %1886 = vmatpush1.bf16.msra.mxu1 %v5113_v24  ;;  %v5128_v39 = vld [vmem:[#allocation7 + $0x84] ss:$16 sps:$4 sm:$0xff]   ;;  %v5131_v24 = vld [vmem:[#allocation7 + $0x8c] ss:$16 sps:$4 sm:$0xff]  }
 0x2f3   : > { %1805 = vmatprep.subr.bf16.mxu0 %v5116_v38  ;;  %1887 = vmatprep.subr.bf16.mxu1 %v5119_v10  ;;  %6703 = vst [vmem:[#allocation31_spill] sm:$0xff] %v5128_v39  ;;  %6704 = vst [vmem:[#allocation32_spill] sm:$0xff] %v5131_v24  ;;  %v5134_v38 = vld [vmem:[#allocation7 + $0x80] ss:$16 sps:$4 sm:$0xff]   ;;  %v5137_v10 = vld [vmem:[#allocation7 + $0x88] ss:$16 sps:$4 sm:$0xff]  }
 0x2f4   : > { %6705 = vst [vmem:[#allocation33_spill] sm:$0xff] %v5134_v38  ;;  %6706 = vst [vmem:[#allocation34_spill] sm:$0xff] %v5137_v10 }
 0x2f6   : > { %1806 = vmatpush1.bf16.msra.mxu0 %v5122_v13  ;;  %1888 = vmatpush1.bf16.msra.mxu1 %v5125_v25  ;;  %v5140_v13 = vld [vmem:[#allocation7 + $0xa4] ss:$16 sps:$4 sm:$0xff]   ;;  %v5143_v25 = vld [vmem:[#allocation7 + $0xac] ss:$16 sps:$4 sm:$0xff]  }
 0x2f7   : > { %1807 = vmatprep.subr.bf16.mxu0 %v5128_v39  ;;  %1889 = vmatprep.subr.bf16.mxu1 %v5131_v24  ;;  %6707 = vst [vmem:[#allocation35_spill] sm:$0xff] %v5140_v13  ;;  %6708 = vst [vmem:[#allocation36_spill] sm:$0xff] %v5143_v25  ;;  %v5146_v39 = vld [vmem:[#allocation7 + $0xa0] ss:$16 sps:$4 sm:$0xff]   ;;  %v5149_v24 = vld [vmem:[#allocation7 + $0xa8] ss:$16 sps:$4 sm:$0xff]  }
 0x2f8   : > { %6709 = vst [vmem:[#allocation38_spill] sm:$0xff] %v5146_v39  ;;  %6710 = vst [vmem:[#allocation39_spill] sm:$0xff] %v5149_v24 }
 0x2fa   : > { %1808 = vmatpush1.bf16.msra.mxu0 %v5134_v38  ;;  %1890 = vmatpush1.bf16.msra.mxu1 %v5137_v10  ;;  %v5152_v38 = vld [vmem:[#allocation7 + $0xc4] ss:$16 sps:$4 sm:$0xff]   ;;  %v5155_v10 = vld [vmem:[#allocation7 + $0xcc] ss:$16 sps:$4 sm:$0xff]  }
 0x2fb   : > { %1809 = vmatprep.subr.bf16.mxu0 %v5140_v13  ;;  %1891 = vmatprep.subr.bf16.mxu1 %v5143_v25  ;;  %6711 = vst [vmem:[#allocation40_spill] sm:$0xff] %v5152_v38  ;;  %6712 = vst [vmem:[#allocation41_spill] sm:$0xff] %v5155_v10  ;;  %v5158_v13 = vld [vmem:[#allocation7 + $0xc0] ss:$16 sps:$4 sm:$0xff]   ;;  %v5161_v25 = vld [vmem:[#allocation7 + $0xc8] ss:$16 sps:$4 sm:$0xff]  }
 0x2fc   : > { %6713 = vst [vmem:[#allocation42_spill] sm:$0xff] %v5158_v13  ;;  %6714 = vst [vmem:[#allocation43_spill] sm:$0xff] %v5161_v25 }
 0x2fe   : > { %1810 = vmatpush1.bf16.msra.mxu0 %v5146_v39  ;;  %1892 = vmatpush1.bf16.msra.mxu1 %v5149_v24  ;;  %v5164_v39 = vld [vmem:[#allocation7 + $0xe4] ss:$16 sps:$4 sm:$0xff]   ;;  %v5167_v24 = vld [vmem:[#allocation7 + $0xec] ss:$16 sps:$4 sm:$0xff]  }
 0x2ff   : > { %1811 = vmatprep.subr.bf16.mxu0 %v5152_v38  ;;  %1893 = vmatprep.subr.bf16.mxu1 %v5155_v10  ;;  %6715 = vst [vmem:[#allocation44_spill] sm:$0xff] %v5164_v39  ;;  %6716 = vst [vmem:[#allocation45_spill] sm:$0xff] %v5167_v24  ;;  %v5170_v38 = vld [vmem:[#allocation7 + $0xe0] ss:$16 sps:$4 sm:$0xff]   ;;  %v5173_v10 = vld [vmem:[#allocation7 + $0xe8] ss:$16 sps:$4 sm:$0xff]  }
 0x300   : > { %6717 = vst [vmem:[#allocation46_spill] sm:$0xff] %v5170_v38  ;;  %6718 = vst [vmem:[#allocation47_spill] sm:$0xff] %v5173_v10 }
 0x302   : > { %1812 = vmatpush1.bf16.msra.mxu0 %v5158_v13  ;;  %1894 = vmatpush1.bf16.msra.mxu1 %v5161_v25  ;;  %v5176_v13 = vld [vmem:[#allocation7 + $0x104] ss:$16 sps:$4 sm:$0xff]   ;;  %v5179_v25 = vld [vmem:[#allocation7 + $0x10c] ss:$16 sps:$4 sm:$0xff]  }
 0x303   : > { %1813 = vmatprep.subr.bf16.mxu0 %v5164_v39  ;;  %1895 = vmatprep.subr.bf16.mxu1 %v5167_v24  ;;  %6719 = vst [vmem:[#allocation48_spill] sm:$0xff] %v5176_v13  ;;  %6720 = vst [vmem:[#allocation49_spill] sm:$0xff] %v5179_v25  ;;  %v5182_v39 = vld [vmem:[#allocation7 + $0x100] ss:$16 sps:$4 sm:$0xff]   ;;  %v5185_v24 = vld [vmem:[#allocation7 + $0x108] ss:$16 sps:$4 sm:$0xff]  }
 0x304   : > { %6721 = vst [vmem:[#allocation50_spill] sm:$0xff] %v5182_v39  ;;  %6722 = vst [vmem:[#allocation51_spill] sm:$0xff] %v5185_v24 }
 0x306   : > { %1814 = vmatpush1.bf16.msra.mxu0 %v5170_v38  ;;  %1896 = vmatpush1.bf16.msra.mxu1 %v5173_v10  ;;  %v5188_v38 = vld [vmem:[#allocation7 + $0x124] ss:$16 sps:$4 sm:$0xff]   ;;  %v5191_v10 = vld [vmem:[#allocation7 + $0x12c] ss:$16 sps:$4 sm:$0xff]  }
 0x307   : > { %1815 = vmatprep.subr.bf16.mxu0 %v5176_v13  ;;  %1897 = vmatprep.subr.bf16.mxu1 %v5179_v25  ;;  %6723 = vst [vmem:[#allocation52_spill] sm:$0xff] %v5188_v38  ;;  %6724 = vst [vmem:[#allocation37_spill] sm:$0xff] %v5191_v10  ;;  %v5194_v13 = vld [vmem:[#allocation7 + $0x120] ss:$16 sps:$4 sm:$0xff]   ;;  %v5198_v25 = vld [vmem:[#allocation7 + $0x144] ss:$16 sps:$4 sm:$0xff]  }
 0x308   : > { %6725 = vst [vmem:[#allocation82_spill] sm:$0xff] %v5194_v13  ;;  %6726 = vst [vmem:[#allocation83_spill] sm:$0xff] %v5198_v25 }
 0x30a   : > { %1816 = vmatpush1.bf16.msra.mxu0 %v5182_v39  ;;  %1898 = vmatpush1.bf16.msra.mxu1 %v5185_v24  ;;  %v5202_v24 = vld [vmem:[#allocation7 + $0x140] ss:$16 sps:$4 sm:$0xff]  }
 0x30b   : > { %1817 = vmatprep.subr.bf16.mxu0 %v5188_v38  ;;  %1899 = vmatprep.subr.bf16.mxu1 %v5191_v10  ;;  %6727 = vst [vmem:[#allocation84_spill] sm:$0xff] %v5202_v24  ;;  %v5206_v38 = vld [vmem:[#allocation7 + $0x164] ss:$16 sps:$4 sm:$0xff]  }
 0x30c   : > { %6728 = vst [vmem:[#allocation86_spill] sm:$0xff] %v5206_v38 }
 0x30e   : > { %1818 = vmatpush1.bf16.msra.mxu0 %v5194_v13  ;;  %1900 = vmatpush1.bf16.msra.mxu1 %v4601_v15  ;;  %v5210_v13 = vld [vmem:[#allocation7 + $0x160] ss:$16 sps:$4 sm:$0xff]   ;;  %v5214_v15 = vld [vmem:[#allocation7 + $0x184] ss:$16 sps:$4 sm:$0xff]  }
 0x30f   : > { %1819 = vmatprep.subr.bf16.mxu0 %v5198_v25  ;;  %1901 = vmatprep.subr.bf16.mxu1 %v4604_v16  ;;  %6729 = vst [vmem:[#allocation87_spill] sm:$0xff] %v5210_v13  ;;  %6730 = vst [vmem:[#allocation88_spill] sm:$0xff] %v5214_v15  ;;  %v5218_v16 = vld [vmem:[#allocation7 + $0x180] ss:$16 sps:$4 sm:$0xff]  }
 0x310   : > { %6731 = vst [vmem:[#allocation89_spill] sm:$0xff] %v5218_v16 }
 0x312   : > { %1820 = vmatpush1.bf16.msra.mxu0 %v5202_v24  ;;  %1902 = vmatpush1.bf16.msra.mxu1 %v4613_v19  ;;  %v5222_v19 = vld [vmem:[#allocation7 + $0x1a4] ss:$16 sps:$4 sm:$0xff]  }
 0x313   : > { %1821 = vmatprep.subr.bf16.mxu0 %v5206_v38  ;;  %1903 = vmatprep.subr.bf16.mxu1 %v4616_v20  ;;  %6732 = vst [vmem:[#allocation93_spill] sm:$0xff] %v5222_v19 }
 0x316   : > { %1822 = vmatpush1.bf16.msra.mxu0 %v5210_v13  ;;  %1904 = vmatpush1.bf16.msra.mxu1 %v6612_v33 }
 0x317   : > { %1823 = vmatprep.subr.bf16.mxu0 %v5214_v15  ;;  %1905 = vmatprep.subr.bf16.mxu1 %v6614_v37 }
 0x31a   : > { %1824 = vmatpush1.bf16.msra.mxu0 %v5218_v16  ;;  %1906 = vmatpush1.bf16.msra.mxu1 %v6616_v40 }
 0x31b   : > { %1825 = vmatprep.subr.bf16.mxu0 %v5222_v19  ;;  %1907 = vmatprep.subr.bf16.mxu1 %v6618_v42 }
 0x31e   : > { %1826 = vmatpush1.bf16.msra.mxu0 %v6619_v43  ;;  %1908 = vmatpush1.bf16.msra.mxu1 %v6620_v44 }
 0x31f   : > { %1827 = vmatprep.subr.bf16.mxu0 %v6621_v45  ;;  %1909 = vmatprep.subr.bf16.mxu1 %v6622_v46 }
 0x322   : > { %1828 = vmatpush1.bf16.msra.mxu0 %v6623_v47  ;;  %1910 = vmatpush1.bf16.msra.mxu1 %v6624_v48 }
 0x323   : > { %1829 = vmatprep.subr.bf16.mxu0 %v6625_v49  ;;  %1911 = vmatprep.subr.bf16.mxu1 %v6626_v50 }
 0x326   : > { %1830 = vmatpush1.bf16.msra.mxu0 %v6627_v51  ;;  %1912 = vmatpush1.bf16.msra.mxu1 %v6628_v52 }
 0x327   : > { %1840 = vmatprep.subr.bf16.mxu0 %v6629_v53  ;;  %1922 = vmatprep.subr.bf16.mxu1 %v6630_v54 }
 0x3bc   : > { %v1694_v20 = vpop.f32.mrb[8].mxu0  ;;  %v5238_v33 = vpop.f32.mrb[8].mxu1 }
 0x3bd   : > { %v3415_v37 = vadd.f32 %v1694_v20, %v4979_v57  ;;  %v1696_v40 = vpop.f32.mrb[9].mxu0  ;;  %v1778_v42 = vpop.f32.mrb[9].mxu1 }
 0x3be   : > { %v3416_v43 = vadd.f32 %v1696_v40, %v4984_v59  ;;  %v3418_v44 = vadd.f32 %v1778_v42, %v4989_v61  ;;  %v1698_v45 = vpop.f32.mrb[10].mxu0  ;;  %v1780_v46 = vpop.f32.mrb[10].mxu1 }
 0x3bf   : > { %v1783_v47 = vmul.f32 0.01, %v3415_v37  ;;  %v1699_v48 = vpop.f32.mrb[11].mxu0  ;;  %v1781_v49 = vpop.f32.mrb[11].mxu1  ;;  %v6755_v46 = vld [vmem:[#allocation75_spill] sm:$0xff] }
 0x3c0   : > { %v1784_v50 = vmul.f32 0.01, %v3416_v43  ;;  %v1786_v51 = vmul.f32 0.01, %v3418_v44  ;;  %v6757_v48 = vld [vmem:[#allocation77_spill] sm:$0xff]  ;;  %v6758_v49 = vld [vmem:[#allocation78_spill] sm:$0xff] }
 0x3c1   : > { %v1787_v52 = vmax.f32 %v3415_v37, %v1783_v47  ;;  %v6752_v37 = vld [vmem:[#allocation72_spill] sm:$0xff] }
 0x3c2   : > { %v1788_v53 = vmax.f32 %v3416_v43, %v1784_v50  ;;  %v1790_v54 = vmax.f32 %v3418_v44, %v1786_v51  ;;  %v6753_v43 = vld [vmem:[#allocation73_spill] sm:$0xff]  ;;  %v6754_v44 = vld [vmem:[#allocation74_spill] sm:$0xff]  ;;  %v6756_v47 = vld [vmem:[#allocation76_spill] sm:$0xff] }
 0x3c3   : > { %v5244_v19 = vadd.f32 %v1787_v52, %v4997_v32  ;;  %v6759_v50 = vld [vmem:[#allocation79_spill] sm:$0xff]  ;;  %v6760_v51 = vld [vmem:[#allocation80_spill] sm:$0xff]  ;;  %v6761_v52 = vld [vmem:[#allocation81_spill] sm:$0xff] }
 0x3c4   : > { %v5247_v20 = vadd.f32 %v1788_v53, %v5000_v29  ;;  %v5250_v40 = vadd.f32 %v1790_v54, %v5003_v34  ;;  %v6736_v29 = vld [vmem:[#allocation56_spill] sm:$0xff]  ;;  %v6737_v34 = vld [vmem:[#allocation57_spill] sm:$0xff]  ;;  %v3417_v53 = vadd.f32 %v5238_v33, %v6679_v30 }
 0x3c5   : > { %v1795_v45 = vpack.c.bf16 %v5244_v19, %v5244_v19  ;;  %v6762_v54 = vld [vmem:[#allocation85_spill] sm:$0xff]  ;;  %v6765_v33 = vld [vmem:[#allocation92_spill] sm:$0xff] }
 0x3c6   : > { %v1796_v42 = vpack.c.bf16 %v5247_v20, %v5247_v20  ;;  %v1798_v32 = vpack.c.bf16 %v5250_v40, %v5250_v40 }
 0x3c8   : > { %1831 = vmatprep.mubr.bf16.mxu0 %v1796_v42  ;;  %1913 = vmatprep.mubr.bf16.mxu1 %v1796_v42  ;;  %v1785_v42 = vmul.f32 0.01, %v3417_v53 }
 0x3c9   : > { %1832 = vmatmul.mubr.bf16.vlgmr.msra.gmra.mrb[12].mxu0 %v1795_v45  ;;  %1914 = vmatmul.mubr.bf16.vlgmr.msra.gmra.mrb[12].mxu1 %v1795_v45 }
 0x3ca   : > { %1841 = vmatpush1.bf16.msra.mxu0 %v6636_v55  ;;  %1923 = vmatpush1.bf16.msra.mxu1 %v6637_v56  ;;  %v6738_v55 = vld [vmem:[#allocation58_spill] sm:$0xff]  ;;  %v6739_v56 = vld [vmem:[#allocation59_spill] sm:$0xff]  ;;  %v1789_v45 = vmax.f32 %v3417_v53, %v1785_v42  ;;  %v6798_v42 = vld [vmem:[#allocation49_spill] sm:$0xff] }
 0x3cb   : > { %1872 = vmatprep.mubr.bf16.mxu0 %v1798_v32  ;;  %1954 = vmatprep.mubr.bf16.mxu1 %v1798_v32  ;;  %v6796_v53 = vld [vmem:[#allocation47_spill] sm:$0xff] }
 0x3cc   : > { %1842 = vmatprep.subr.bf16.mxu0 %v6638_v18  ;;  %1924 = vmatprep.subr.bf16.mxu1 %v6639_v58  ;;  %v6740_v18 = vld [vmem:[#allocation60_spill] sm:$0xff]  ;;  %v6741_v58 = vld [vmem:[#allocation61_spill] sm:$0xff] }
 0x3ce   : > { %1843 = vmatpush1.bf16.msra.mxu0 %v4722_v26  ;;  %1925 = vmatpush1.bf16.msra.mxu1 %v4724_v28  ;;  %v6733_v26 = vld [vmem:[#allocation53_spill] sm:$0xff]  ;;  %v6734_v28 = vld [vmem:[#allocation54_spill] sm:$0xff] }
 0x3cf   : > { %1844 = vmatprep.subr.bf16.mxu0 %v6640_v60  ;;  %1926 = vmatprep.subr.bf16.mxu1 %v6641_v62  ;;  %v6742_v60 = vld [vmem:[#allocation62_spill] sm:$0xff]  ;;  %v6743_v62 = vld [vmem:[#allocation63_spill] sm:$0xff] }
 0x3d2   : > { %1845 = vmatpush1.bf16.msra.mxu0 %v4734_v31  ;;  %1927 = vmatpush1.bf16.msra.mxu1 %v6642_v0  ;;  %v6735_v31 = vld [vmem:[#allocation55_spill] sm:$0xff]  ;;  %v6744_v0 = vld [vmem:[#allocation64_spill] sm:$0xff] }
 0x3d3   : > { %1846 = vmatprep.subr.bf16.mxu0 %v6643_v1  ;;  %1928 = vmatprep.subr.bf16.mxu1 %v6644_v2  ;;  %v6745_v1 = vld [vmem:[#allocation65_spill] sm:$0xff]  ;;  %v6746_v2 = vld [vmem:[#allocation66_spill] sm:$0xff] }
 0x3d6   : > { %1847 = vmatpush1.bf16.msra.mxu0 %v6645_v3  ;;  %1929 = vmatpush1.bf16.msra.mxu1 %v6646_v4  ;;  %v6747_v3 = vld [vmem:[#allocation67_spill] sm:$0xff]  ;;  %v6748_v4 = vld [vmem:[#allocation68_spill] sm:$0xff] }
 0x3d7   : > { %1848 = vmatprep.subr.bf16.mxu0 %v6647_v5  ;;  %1930 = vmatprep.subr.bf16.mxu1 %v6648_v6  ;;  %v6749_v5 = vld [vmem:[#allocation69_spill] sm:$0xff]  ;;  %v6750_v6 = vld [vmem:[#allocation70_spill] sm:$0xff] }
 0x3da   : > { %1849 = vmatpush1.bf16.msra.mxu0 %v6649_v7  ;;  %1931 = vmatpush1.bf16.msra.mxu1 %v6733_v26  ;;  %v6751_v7 = vld [vmem:[#allocation71_spill] sm:$0xff]  ;;  %v6766_v26 = vld [vmem:[#allocation16_spill] sm:$0xff] }
 0x3db   : > { %1850 = vmatprep.subr.bf16.mxu0 %v6734_v28  ;;  %1932 = vmatprep.subr.bf16.mxu1 %v6735_v31  ;;  %v6767_v28 = vld [vmem:[#allocation21_spill] sm:$0xff]  ;;  %v6769_v31 = vld [vmem:[#allocation22_spill] sm:$0xff] }
 0x3de   : > { %1851 = vmatpush1.bf16.msra.mxu0 %v6736_v29  ;;  %1933 = vmatpush1.bf16.msra.mxu1 %v6737_v34  ;;  %v6770_v29 = vld [vmem:[#allocation18_spill] sm:$0xff]  ;;  %v6771_v34 = vld [vmem:[#allocation23_spill] sm:$0xff] }
 0x3df   : > { %1852 = vmatprep.subr.bf16.mxu0 %v6738_v55  ;;  %1934 = vmatprep.subr.bf16.mxu1 %v6739_v56  ;;  %v6772_v55 = vld [vmem:[#allocation19_spill] sm:$0xff]  ;;  %v6773_v56 = vld [vmem:[#allocation24_spill] sm:$0xff] }
 0x3e2   : > { %1853 = vmatpush1.bf16.msra.mxu0 %v6740_v18  ;;  %1935 = vmatpush1.bf16.msra.mxu1 %v6741_v58  ;;  %v6774_v18 = vld [vmem:[#allocation20_spill] sm:$0xff]  ;;  %v6775_v58 = vld [vmem:[#allocation25_spill] sm:$0xff] }
 0x3e3   : > { %1854 = vmatprep.subr.bf16.mxu0 %v6742_v60  ;;  %1936 = vmatprep.subr.bf16.mxu1 %v6743_v62  ;;  %v6776_v60 = vld [vmem:[#allocation26_spill] sm:$0xff]  ;;  %v6777_v62 = vld [vmem:[#allocation27_spill] sm:$0xff] }
 0x3e6   : > { %1855 = vmatpush1.bf16.msra.mxu0 %v6744_v0  ;;  %1937 = vmatpush1.bf16.msra.mxu1 %v6745_v1  ;;  %v6778_v0 = vld [vmem:[#allocation28_spill] sm:$0xff]  ;;  %v6779_v1 = vld [vmem:[#allocation29_spill] sm:$0xff] }
 0x3e7   : > { %1856 = vmatprep.subr.bf16.mxu0 %v6746_v2  ;;  %1938 = vmatprep.subr.bf16.mxu1 %v6747_v3  ;;  %v6780_v2 = vld [vmem:[#allocation30_spill] sm:$0xff]  ;;  %v6781_v3 = vld [vmem:[#allocation31_spill] sm:$0xff] }
 0x3ea   : > { %1857 = vmatpush1.bf16.msra.mxu0 %v6748_v4  ;;  %1939 = vmatpush1.bf16.msra.mxu1 %v6749_v5  ;;  %v6782_v4 = vld [vmem:[#allocation32_spill] sm:$0xff]  ;;  %v6783_v5 = vld [vmem:[#allocation33_spill] sm:$0xff] }
 0x3eb   : > { %1858 = vmatprep.subr.bf16.mxu0 %v6750_v6  ;;  %1940 = vmatprep.subr.bf16.mxu1 %v6751_v7  ;;  %v6784_v6 = vld [vmem:[#allocation34_spill] sm:$0xff]  ;;  %v6785_v7 = vld [vmem:[#allocation35_spill] sm:$0xff] }
 0x3ee   : > { %1859 = vmatpush1.bf16.msra.mxu0 %v6752_v37  ;;  %1941 = vmatpush1.bf16.msra.mxu1 %v6753_v43  ;;  %v6786_v37 = vld [vmem:[#allocation36_spill] sm:$0xff]  ;;  %v6787_v43 = vld [vmem:[#allocation38_spill] sm:$0xff] }
 0x3ef   : > { %1860 = vmatprep.subr.bf16.mxu0 %v6754_v44  ;;  %1942 = vmatprep.subr.bf16.mxu1 %v6755_v46  ;;  %v6788_v44 = vld [vmem:[#allocation39_spill] sm:$0xff]  ;;  %v6789_v46 = vld [vmem:[#allocation40_spill] sm:$0xff] }
 0x3f2   : > { %1861 = vmatpush1.bf16.msra.mxu0 %v6756_v47  ;;  %1943 = vmatpush1.bf16.msra.mxu1 %v6757_v48  ;;  %v6790_v47 = vld [vmem:[#allocation41_spill] sm:$0xff]  ;;  %v6791_v48 = vld [vmem:[#allocation42_spill] sm:$0xff] }
 0x3f3   : > { %1862 = vmatprep.subr.bf16.mxu0 %v6758_v49  ;;  %1944 = vmatprep.subr.bf16.mxu1 %v6759_v50  ;;  %v6792_v49 = vld [vmem:[#allocation43_spill] sm:$0xff]  ;;  %v6793_v50 = vld [vmem:[#allocation44_spill] sm:$0xff] }
 0x3f6   : > { %1863 = vmatpush1.bf16.msra.mxu0 %v6760_v51  ;;  %1945 = vmatpush1.bf16.msra.mxu1 %v6761_v52  ;;  %v6794_v51 = vld [vmem:[#allocation45_spill] sm:$0xff]  ;;  %v6795_v52 = vld [vmem:[#allocation46_spill] sm:$0xff] }
 0x3f7   : > { %1864 = vmatprep.subr.bf16.mxu0 %v6680_v41  ;;  %1946 = vmatprep.subr.bf16.mxu1 %v6681_v23  ;;  %v6763_v41 = vld [vmem:[#allocation90_spill] sm:$0xff]  ;;  %v6764_v23 = vld [vmem:[#allocation91_spill] sm:$0xff] }
 0x3fa   : > { %1865 = vmatpush1.bf16.msra.mxu0 %v6682_v8  ;;  %1947 = vmatpush1.bf16.msra.mxu1 %v6762_v54  ;;  %v5319_v8 = vadd.f32 %v1789_v45, %v5072_v9  ;;  %v6768_v9 = vld [vmem:[#allocation17_spill] sm:$0xff]  ;;  %v6797_v54 = vld [vmem:[#allocation48_spill] sm:$0xff]  ;;  %v6799_v45 = vld [vmem:[#allocation51_spill] sm:$0xff] }
 0x3fb   : > { %1866 = vmatprep.subr.bf16.mxu0 %v4867_v35  ;;  %1948 = vmatprep.subr.bf16.mxu1 %v6684_v11 }
 0x3fc   : > { %v1797_v32 = vpack.c.bf16 %v5319_v8, %v5319_v8 }
 0x3fe   : > { %1867 = vmatpush1.bf16.msra.mxu0 %v6685_v12  ;;  %1949 = vmatpush1.bf16.msra.mxu1 %v6686_v27 }
 0x3ff   : > { %1868 = vmatprep.subr.bf16.mxu0 %v4880_v14  ;;  %1950 = vmatprep.subr.bf16.mxu1 %v6687_v63 }
 0x402   : > { %1869 = vmatpush1.bf16.msra.mxu0 %v6763_v41  ;;  %1951 = vmatpush1.bf16.msra.mxu1 %v4888_v21 }
 0x403   : > { %1870 = vmatprep.subr.bf16.mxu0 %v4892_v17  ;;  %1952 = vmatprep.subr.bf16.mxu1 %v4894_v22 }
 0x406   : > { %1871 = vmatpush1.bf16.msra.mxu0 %v6764_v23  ;;  %1953 = vmatpush1.bf16.msra.mxu1 %v6765_v33 }
 0x407   : > { %1979 = vmatprep.subr.bf16.mxu0 %v6766_v26  ;;  %2061 = vmatprep.subr.bf16.mxu1 %v5083_v36 }
 0x409   : > { %1873 = vmatmul.mubr.bf16.vlgmr.msra.gmra.mrb[12].mxu0 %v1797_v32  ;;  %1955 = vmatmul.mubr.bf16.vlgmr.msra.gmra.mrb[12].mxu1 %v1797_v32  ;;  %v6800_v32 = vld [vmem:[#allocation52_spill] sm:$0xff] }
 0x40a   : > { %1980 = vmatpush1.bf16.msra.mxu0 %v6767_v28  ;;  %2062 = vmatpush1.bf16.msra.mxu1 %v6768_v9 }
 0x40b   : > { %1981 = vmatprep.subr.bf16.mxu0 %v6769_v31  ;;  %2063 = vmatprep.subr.bf16.mxu1 %v6770_v29 }
 0x40e   : > { %1982 = vmatpush1.bf16.msra.mxu0 %v6771_v34  ;;  %2064 = vmatpush1.bf16.msra.mxu1 %v6772_v55 }
 0x40f   : > { %1983 = vmatprep.subr.bf16.mxu0 %v6773_v56  ;;  %2065 = vmatprep.subr.bf16.mxu1 %v6774_v18 }
 0x412   : > { %1984 = vmatpush1.bf16.msra.mxu0 %v6775_v58  ;;  %2066 = vmatpush1.bf16.msra.mxu1 %v6776_v60 }
 0x413   : > { %1985 = vmatprep.subr.bf16.mxu0 %v6777_v62  ;;  %2067 = vmatprep.subr.bf16.mxu1 %v6778_v0 }
 0x416   : > { %1986 = vmatpush1.bf16.msra.mxu0 %v6779_v1  ;;  %2068 = vmatpush1.bf16.msra.mxu1 %v6780_v2 }
 0x417   : > { %1987 = vmatprep.subr.bf16.mxu0 %v6781_v3  ;;  %2069 = vmatprep.subr.bf16.mxu1 %v6782_v4 }
 0x41a   : > { %1988 = vmatpush1.bf16.msra.mxu0 %v6783_v5  ;;  %2070 = vmatpush1.bf16.msra.mxu1 %v6784_v6 }
 0x41b   : > { %1989 = vmatprep.subr.bf16.mxu0 %v6785_v7  ;;  %2071 = vmatprep.subr.bf16.mxu1 %v6786_v37 }
 0x41e   : > { %1990 = vmatpush1.bf16.msra.mxu0 %v6787_v43  ;;  %2072 = vmatpush1.bf16.msra.mxu1 %v6788_v44 }
 0x41f   : > { %1991 = vmatprep.subr.bf16.mxu0 %v6789_v46  ;;  %2073 = vmatprep.subr.bf16.mxu1 %v6790_v47 }
 0x422   : > { %1992 = vmatpush1.bf16.msra.mxu0 %v6791_v48  ;;  %2074 = vmatpush1.bf16.msra.mxu1 %v6792_v49  ;;  %v6801_v49 = vld [vmem:[#allocation82_spill] sm:$0xff] }
 0x423   : > { %1993 = vmatprep.subr.bf16.mxu0 %v6793_v50  ;;  %2075 = vmatprep.subr.bf16.mxu1 %v6794_v51  ;;  %v5366_v50 = vld [vmem:[#allocation7 + $0x128] ss:$16 sps:$4 sm:$0xff]  }
 0x424   : > { %6802 = vst [vmem:[#allocation53_spill] sm:$0xff] %v5366_v50 }
 0x426   : > { %1994 = vmatpush1.bf16.msra.mxu0 %v6795_v52  ;;  %2076 = vmatpush1.bf16.msra.mxu1 %v6796_v53  ;;  %v5370_v53 = vld [vmem:[#allocation7 + $0x14c] ss:$16 sps:$4 sm:$0xff]  }
 0x427   : > { %1995 = vmatprep.subr.bf16.mxu0 %v6797_v54  ;;  %2077 = vmatprep.subr.bf16.mxu1 %v6798_v42  ;;  %6803 = vst [vmem:[#allocation54_spill] sm:$0xff] %v5370_v53 }
 0x42a   : > { %1996 = vmatpush1.bf16.msra.mxu0 %v5182_v39  ;;  %2078 = vmatpush1.bf16.msra.mxu1 %v6799_v45  ;;  %v5374_v39 = vld [vmem:[#allocation7 + $0x148] ss:$16 sps:$4 sm:$0xff]  }
 0x42b   : > { %1997 = vmatprep.subr.bf16.mxu0 %v6800_v32  ;;  %2079 = vmatprep.subr.bf16.mxu1 %v5191_v10  ;;  %6804 = vst [vmem:[#allocation55_spill] sm:$0xff] %v5374_v39  ;;  %v5378_v10 = vld [vmem:[#allocation7 + $0x16c] ss:$16 sps:$4 sm:$0xff]  }
 0x42c   : > { %6805 = vst [vmem:[#allocation56_spill] sm:$0xff] %v5378_v10 }
 0x42e   : > { %1998 = vmatpush1.bf16.msra.mxu0 %v6801_v49  ;;  %2080 = vmatpush1.bf16.msra.mxu1 %v5366_v50  ;;  %v5382_v50 = vld [vmem:[#allocation7 + $0x168] ss:$16 sps:$4 sm:$0xff]  }
 0x42f   : > { %1999 = vmatprep.subr.bf16.mxu0 %v5198_v25  ;;  %2081 = vmatprep.subr.bf16.mxu1 %v5370_v53  ;;  %6806 = vst [vmem:[#allocation57_spill] sm:$0xff] %v5382_v50  ;;  %v5386_v53 = vld [vmem:[#allocation7 + $0x18c] ss:$16 sps:$4 sm:$0xff]  }
 0x430   : > { %6807 = vst [vmem:[#allocation58_spill] sm:$0xff] %v5386_v53 }
 0x432   : > { %2000 = vmatpush1.bf16.msra.mxu0 %v5202_v24  ;;  %2082 = vmatpush1.bf16.msra.mxu1 %v5374_v39  ;;  %v5390_v39 = vld [vmem:[#allocation7 + $0x188] ss:$16 sps:$4 sm:$0xff]  }
 0x433   : > { %2001 = vmatprep.subr.bf16.mxu0 %v5206_v38  ;;  %2083 = vmatprep.subr.bf16.mxu1 %v5378_v10  ;;  %6808 = vst [vmem:[#allocation59_spill] sm:$0xff] %v5390_v39  ;;  %v6809_v38 = vld [vmem:[#allocation93_spill] sm:$0xff] }
 0x434   : > { %v5394_v10 = vld [vmem:[#allocation7 + $0x1ac] ss:$16 sps:$4 sm:$0xff]  }
 0x435   : > { %6810 = vst [vmem:[#allocation60_spill] sm:$0xff] %v5394_v10 }
 0x436   : > { %2002 = vmatpush1.bf16.msra.mxu0 %v5210_v13  ;;  %2084 = vmatpush1.bf16.msra.mxu1 %v5382_v50  ;;  %v5397_v13 = vld [vmem:[#allocation7 + $0x1a0] ss:$16 sps:$4 sm:$0xff]  }
 0x437   : > { %2003 = vmatprep.subr.bf16.mxu0 %v5214_v15  ;;  %2085 = vmatprep.subr.bf16.mxu1 %v5386_v53  ;;  %6811 = vst [vmem:[#allocation61_spill] sm:$0xff] %v5397_v13  ;;  %v5400_v15 = vld [vmem:[#allocation7 + $0x1a8] ss:$16 sps:$4 sm:$0xff]   ;;  %v5403_v53 = vld [vmem:[#allocation7 + $0x1c4] ss:$16 sps:$4 sm:$0xff]  }
 0x438   : > { %6812 = vst [vmem:[#allocation62_spill] sm:$0xff] %v5400_v15  ;;  %6813 = vst [vmem:[#allocation63_spill] sm:$0xff] %v5403_v53 }
 0x43a   : > { %2004 = vmatpush1.bf16.msra.mxu0 %v5218_v16  ;;  %2086 = vmatpush1.bf16.msra.mxu1 %v5390_v39  ;;  %v5406_v16 = vld [vmem:[#allocation7 + $0x1cc] ss:$16 sps:$4 sm:$0xff]  }
 0x43b   : > { %2005 = vmatprep.subr.bf16.mxu0 %v6809_v38  ;;  %2087 = vmatprep.subr.bf16.mxu1 %v5394_v10  ;;  %6814 = vst [vmem:[#allocation64_spill] sm:$0xff] %v5406_v16  ;;  %v5409_v38 = vld [vmem:[#allocation7 + $0x1c0] ss:$16 sps:$4 sm:$0xff]   ;;  %v5412_v10 = vld [vmem:[#allocation7 + $0x1c8] ss:$16 sps:$4 sm:$0xff]  }
 0x43c   : > { %6815 = vst [vmem:[#allocation65_spill] sm:$0xff] %v5409_v38  ;;  %6816 = vst [vmem:[#allocation66_spill] sm:$0xff] %v5412_v10 }
 0x43e   : > { %2006 = vmatpush1.bf16.msra.mxu0 %v5397_v13  ;;  %2088 = vmatpush1.bf16.msra.mxu1 %v5400_v15  ;;  %v5415_v13 = vld [vmem:[#allocation7 + $0x1e4] ss:$16 sps:$4 sm:$0xff]   ;;  %v5418_v15 = vld [vmem:[#allocation7 + $0x1ec] ss:$16 sps:$4 sm:$0xff]  }
 0x43f   : > { %2007 = vmatprep.subr.bf16.mxu0 %v5403_v53  ;;  %2089 = vmatprep.subr.bf16.mxu1 %v5406_v16  ;;  %6817 = vst [vmem:[#allocation67_spill] sm:$0xff] %v5415_v13  ;;  %6818 = vst [vmem:[#allocation68_spill] sm:$0xff] %v5418_v15  ;;  %v5421_v53 = vld [vmem:[#allocation7 + $0x1e0] ss:$16 sps:$4 sm:$0xff]   ;;  %v5424_v16 = vld [vmem:[#allocation7 + $0x1e8] ss:$16 sps:$4 sm:$0xff]  }
 0x440   : > { %6819 = vst [vmem:[#allocation69_spill] sm:$0xff] %v5421_v53  ;;  %6820 = vst [vmem:[#allocation70_spill] sm:$0xff] %v5424_v16 }
 0x442   : > { %2008 = vmatpush1.bf16.msra.mxu0 %v5409_v38  ;;  %2090 = vmatpush1.bf16.msra.mxu1 %v5412_v10  ;;  %v5427_v38 = vld [vmem:[#allocation7 + $0x204] ss:$16 sps:$4 sm:$0xff]   ;;  %v5430_v10 = vld [vmem:[#allocation7 + $0x20c] ss:$16 sps:$4 sm:$0xff]  }
 0x443   : > { %2009 = vmatprep.subr.bf16.mxu0 %v5415_v13  ;;  %2091 = vmatprep.subr.bf16.mxu1 %v5418_v15  ;;  %6821 = vst [vmem:[#allocation71_spill] sm:$0xff] %v5427_v38  ;;  %6822 = vst [vmem:[#allocation72_spill] sm:$0xff] %v5430_v10 }
 0x446   : > { %2010 = vmatpush1.bf16.msra.mxu0 %v5421_v53  ;;  %2092 = vmatpush1.bf16.msra.mxu1 %v5424_v16 }
 0x447   : > { %2020 = vmatprep.subr.bf16.mxu0 %v5427_v38  ;;  %2102 = vmatprep.subr.bf16.mxu1 %v5430_v10 }
 0x4dc   : > { %v1874_v13 = vpop.f32.mrb[12].mxu0  ;;  %v5433_v39 = vpop.f32.mrb[12].mxu1 }
 0x4dd   : > { %v3419_v15 = vadd.f32 %v1874_v13, %v4979_v57  ;;  %v1876_v50 = vpop.f32.mrb[13].mxu0  ;;  %v1958_v24 = vpop.f32.mrb[13].mxu1 }
 0x4de   : > { %v3420_v53 = vadd.f32 %v1876_v50, %v4984_v59  ;;  %v3422_v25 = vadd.f32 %v1958_v24, %v4989_v61  ;;  %v1878_v16 = vpop.f32.mrb[14].mxu0  ;;  %v1960_v49 = vpop.f32.mrb[14].mxu1 }
 0x4df   : > { %v1963_v32 = vmul.f32 0.01, %v3419_v15  ;;  %v1879_v45 = vpop.f32.mrb[15].mxu0  ;;  %v1961_v38 = vpop.f32.mrb[15].mxu1  ;;  %v5459_v16 = vld [vmem:[#allocation7 + $0x224] ss:$16 sps:$4 sm:$0xff]  }
 0x4e0   : > { %v1964_v42 = vmul.f32 0.01, %v3420_v53  ;;  %v1966_v54 = vmul.f32 0.01, %v3422_v25  ;;  %v5471_v49 = vld [vmem:[#allocation7 + $0x244] ss:$16 sps:$4 sm:$0xff]  }
 0x4e1   : > { %v1967_v52 = vmax.f32 %v3419_v15, %v1963_v32  ;;  %v5453_v15 = vld [vmem:[#allocation7 + $0x200] ss:$16 sps:$4 sm:$0xff]   ;;  %v5492_v32 = vld [vmem:[#allocation7 + $0x268] ss:$16 sps:$4 sm:$0xff]  }
 0x4e2   : > { %v1968_v10 = vmax.f32 %v3420_v53, %v1964_v42  ;;  %v1970_v51 = vmax.f32 %v3422_v25, %v1966_v54  ;;  %v5480_v53 = vld [vmem:[#allocation7 + $0x248] ss:$16 sps:$4 sm:$0xff]   ;;  %v5483_v54 = vld [vmem:[#allocation7 + $0x264] ss:$16 sps:$4 sm:$0xff]   ;;  %v5486_v42 = vld [vmem:[#allocation7 + $0x26c] ss:$16 sps:$4 sm:$0xff]  }
 0x4e3   : > { %v5439_v48 = vadd.f32 %v1967_v52, %v5244_v19  ;;  %v5462_v19 = vld [vmem:[#allocation7 + $0x22c] ss:$16 sps:$4 sm:$0xff]   ;;  %v5477_v52 = vld [vmem:[#allocation7 + $0x240] ss:$16 sps:$4 sm:$0xff]   ;;  %6823 = vst [vmem:[#allocation73_spill] sm:$0xff] %v5486_v42  ;;  %6825 = vst [vmem:[#allocation75_spill] sm:$0xff] %v5492_v32 }
 0x4e4   : > { %v5442_v13 = vadd.f32 %v1968_v10, %v5247_v20  ;;  %v5445_v50 = vadd.f32 %v1970_v51, %v5250_v40  ;;  %v5456_v10 = vld [vmem:[#allocation7 + $0x208] ss:$16 sps:$4 sm:$0xff]   ;;  %v5465_v20 = vld [vmem:[#allocation7 + $0x220] ss:$16 sps:$4 sm:$0xff]   ;;  %v5474_v51 = vld [vmem:[#allocation7 + $0x24c] ss:$16 sps:$4 sm:$0xff]  }
 0x4e5   : > { %v1975_v38 = vpack.c.bf16 %v5439_v48, %v5439_v48  ;;  %v5468_v40 = vld [vmem:[#allocation7 + $0x228] ss:$16 sps:$4 sm:$0xff]   ;;  %v5489_v45 = vld [vmem:[#allocation7 + $0x260] ss:$16 sps:$4 sm:$0xff]  }
 0x4e6   : > { %v1976_v24 = vpack.c.bf16 %v5442_v13, %v5442_v13  ;;  %v1978_v25 = vpack.c.bf16 %v5445_v50, %v5445_v50  ;;  %6824 = vst [vmem:[#allocation74_spill] sm:$0xff] %v5489_v45 }
 0x4e8   : > { %2011 = vmatprep.mubr.bf16.mxu0 %v1976_v24  ;;  %2093 = vmatprep.mubr.bf16.mxu1 %v1976_v24  ;;  %v5495_v24 = vld [vmem:[#allocation7 + $0x284] ss:$16 sps:$4 sm:$0xff]  }
 0x4e9   : > { %2012 = vmatmul.mubr.bf16.vlgmr.msra.gmra.mrb[16].mxu0 %v1975_v38  ;;  %2094 = vmatmul.mubr.bf16.vlgmr.msra.gmra.mrb[16].mxu1 %v1975_v38  ;;  %6826 = vst [vmem:[#allocation76_spill] sm:$0xff] %v5495_v24  ;;  %v5498_v38 = vld [vmem:[#allocation7 + $0x28c] ss:$16 sps:$4 sm:$0xff]  }
 0x4ea   : > { %2021 = vmatpush1.bf16.msra.mxu0 %v5453_v15  ;;  %2103 = vmatpush1.bf16.msra.mxu1 %v5456_v10  ;;  %6827 = vst [vmem:[#allocation77_spill] sm:$0xff] %v5498_v38 }
 0x4eb   : > { %2052 = vmatprep.mubr.bf16.mxu0 %v1978_v25  ;;  %2134 = vmatprep.mubr.bf16.mxu1 %v1978_v25  ;;  %v5501_v25 = vld [vmem:[#allocation7 + $0x280] ss:$16 sps:$4 sm:$0xff]  }
 0x4ec   : > { %2022 = vmatprep.subr.bf16.mxu0 %v5459_v16  ;;  %2104 = vmatprep.subr.bf16.mxu1 %v5462_v19  ;;  %6828 = vst [vmem:[#allocation78_spill] sm:$0xff] %v5501_v25 }
 0x4ee   : > { %2023 = vmatpush1.bf16.msra.mxu0 %v5465_v20  ;;  %2105 = vmatpush1.bf16.msra.mxu1 %v5468_v40 }
 0x4ef   : > { %2024 = vmatprep.subr.bf16.mxu0 %v5471_v49  ;;  %2106 = vmatprep.subr.bf16.mxu1 %v5474_v51 }
 0x4f2   : > { %2025 = vmatpush1.bf16.msra.mxu0 %v5477_v52  ;;  %2107 = vmatpush1.bf16.msra.mxu1 %v5480_v53 }
 0x4f3   : > { %2026 = vmatprep.subr.bf16.mxu0 %v5483_v54  ;;  %2108 = vmatprep.subr.bf16.mxu1 %v5486_v42  ;;  %v5504_v42 = vld [vmem:[#allocation7 + $0x288] ss:$16 sps:$4 sm:$0xff]  }
 0x4f4   : > { %6829 = vst [vmem:[#allocation79_spill] sm:$0xff] %v5504_v42 }
 0x4f6   : > { %2027 = vmatpush1.bf16.msra.mxu0 %v5489_v45  ;;  %2109 = vmatpush1.bf16.msra.mxu1 %v5492_v32  ;;  %v5507_v45 = vld [vmem:[#allocation7 + $0x2a4] ss:$16 sps:$4 sm:$0xff]   ;;  %v5510_v32 = vld [vmem:[#allocation7 + $0x2ac] ss:$16 sps:$4 sm:$0xff]  }
 0x4f7   : > { %2028 = vmatprep.subr.bf16.mxu0 %v5495_v24  ;;  %2110 = vmatprep.subr.bf16.mxu1 %v5498_v38  ;;  %6830 = vst [vmem:[#allocation80_spill] sm:$0xff] %v5507_v45  ;;  %6831 = vst [vmem:[#allocation81_spill] sm:$0xff] %v5510_v32  ;;  %v5513_v24 = vld [vmem:[#allocation7 + $0x2a0] ss:$16 sps:$4 sm:$0xff]   ;;  %v5516_v38 = vld [vmem:[#allocation7 + $0x2a8] ss:$16 sps:$4 sm:$0xff]  }
 0x4f8   : > { %6832 = vst [vmem:[#allocation85_spill] sm:$0xff] %v5513_v24  ;;  %6833 = vst [vmem:[#allocation90_spill] sm:$0xff] %v5516_v38 }
 0x4fa   : > { %2029 = vmatpush1.bf16.msra.mxu0 %v5501_v25  ;;  %2111 = vmatpush1.bf16.msra.mxu1 %v5504_v42  ;;  %v5519_v25 = vld [vmem:[#allocation7 + $0x2c4] ss:$16 sps:$4 sm:$0xff]   ;;  %v5522_v42 = vld [vmem:[#allocation7 + $0x2cc] ss:$16 sps:$4 sm:$0xff]  }
 0x4fb   : > { %2030 = vmatprep.subr.bf16.mxu0 %v5507_v45  ;;  %2112 = vmatprep.subr.bf16.mxu1 %v5510_v32  ;;  %6834 = vst [vmem:[#allocation91_spill] sm:$0xff] %v5519_v25  ;;  %6835 = vst [vmem:[#allocation92_spill] sm:$0xff] %v5522_v42  ;;  %v5525_v45 = vld [vmem:[#allocation7 + $0x2c0] ss:$16 sps:$4 sm:$0xff]   ;;  %v5528_v32 = vld [vmem:[#allocation7 + $0x2c8] ss:$16 sps:$4 sm:$0xff]  }
 0x4fc   : > { %6836 = vst [vmem:[#allocation16_spill] sm:$0xff] %v5525_v45  ;;  %6837 = vst [vmem:[#allocation21_spill] sm:$0xff] %v5528_v32 }
 0x4fe   : > { %2031 = vmatpush1.bf16.msra.mxu0 %v5513_v24  ;;  %2113 = vmatpush1.bf16.msra.mxu1 %v5516_v38  ;;  %v5531_v24 = vld [vmem:[#allocation7 + $0x2e4] ss:$16 sps:$4 sm:$0xff]   ;;  %v5534_v38 = vld [vmem:[#allocation7 + $0x2ec] ss:$16 sps:$4 sm:$0xff]  }
 0x4ff   : > { %2032 = vmatprep.subr.bf16.mxu0 %v5519_v25  ;;  %2114 = vmatprep.subr.bf16.mxu1 %v5522_v42  ;;  %6838 = vst [vmem:[#allocation17_spill] sm:$0xff] %v5531_v24  ;;  %6839 = vst [vmem:[#allocation22_spill] sm:$0xff] %v5534_v38  ;;  %v5537_v25 = vld [vmem:[#allocation7 + $0x2e0] ss:$16 sps:$4 sm:$0xff]   ;;  %v5540_v42 = vld [vmem:[#allocation7 + $0x2e8] ss:$16 sps:$4 sm:$0xff]  }
 0x500   : > { %6840 = vst [vmem:[#allocation18_spill] sm:$0xff] %v5537_v25  ;;  %6841 = vst [vmem:[#allocation23_spill] sm:$0xff] %v5540_v42 }
 0x502   : > { %2033 = vmatpush1.bf16.msra.mxu0 %v5525_v45  ;;  %2115 = vmatpush1.bf16.msra.mxu1 %v5528_v32  ;;  %v5543_v45 = vld [vmem:[#allocation7 + $0x304] ss:$16 sps:$4 sm:$0xff]   ;;  %v5546_v32 = vld [vmem:[#allocation7 + $0x30c] ss:$16 sps:$4 sm:$0xff]  }
 0x503   : > { %2034 = vmatprep.subr.bf16.mxu0 %v5531_v24  ;;  %2116 = vmatprep.subr.bf16.mxu1 %v5534_v38  ;;  %6842 = vst [vmem:[#allocation19_spill] sm:$0xff] %v5543_v45  ;;  %6843 = vst [vmem:[#allocation24_spill] sm:$0xff] %v5546_v32  ;;  %v5549_v24 = vld [vmem:[#allocation7 + $0x300] ss:$16 sps:$4 sm:$0xff]   ;;  %v5552_v38 = vld [vmem:[#allocation7 + $0x308] ss:$16 sps:$4 sm:$0xff]  }
 0x504   : > { %6844 = vst [vmem:[#allocation20_spill] sm:$0xff] %v5549_v24  ;;  %6845 = vst [vmem:[#allocation25_spill] sm:$0xff] %v5552_v38 }
 0x506   : > { %2035 = vmatpush1.bf16.msra.mxu0 %v5537_v25  ;;  %2117 = vmatpush1.bf16.msra.mxu1 %v5540_v42  ;;  %v5555_v25 = vld [vmem:[#allocation7 + $0x324] ss:$16 sps:$4 sm:$0xff]   ;;  %v5558_v42 = vld [vmem:[#allocation7 + $0x32c] ss:$16 sps:$4 sm:$0xff]  }
 0x507   : > { %2036 = vmatprep.subr.bf16.mxu0 %v5543_v45  ;;  %2118 = vmatprep.subr.bf16.mxu1 %v5546_v32  ;;  %6846 = vst [vmem:[#allocation26_spill] sm:$0xff] %v5555_v25  ;;  %6847 = vst [vmem:[#allocation27_spill] sm:$0xff] %v5558_v42  ;;  %v5561_v45 = vld [vmem:[#allocation7 + $0x320] ss:$16 sps:$4 sm:$0xff]   ;;  %v5564_v32 = vld [vmem:[#allocation7 + $0x328] ss:$16 sps:$4 sm:$0xff]  }
 0x508   : > { %6848 = vst [vmem:[#allocation28_spill] sm:$0xff] %v5561_v45  ;;  %6849 = vst [vmem:[#allocation29_spill] sm:$0xff] %v5564_v32 }
 0x50a   : > { %2037 = vmatpush1.bf16.msra.mxu0 %v5549_v24  ;;  %2119 = vmatpush1.bf16.msra.mxu1 %v5552_v38  ;;  %v5567_v24 = vld [vmem:[#allocation7 + $0x344] ss:$16 sps:$4 sm:$0xff]   ;;  %v5570_v38 = vld [vmem:[#allocation7 + $0x34c] ss:$16 sps:$4 sm:$0xff]  }
 0x50b   : > { %2038 = vmatprep.subr.bf16.mxu0 %v5555_v25  ;;  %2120 = vmatprep.subr.bf16.mxu1 %v5558_v42  ;;  %6850 = vst [vmem:[#allocation30_spill] sm:$0xff] %v5567_v24  ;;  %6851 = vst [vmem:[#allocation31_spill] sm:$0xff] %v5570_v38  ;;  %v5573_v25 = vld [vmem:[#allocation7 + $0x340] ss:$16 sps:$4 sm:$0xff]   ;;  %v5576_v42 = vld [vmem:[#allocation7 + $0x348] ss:$16 sps:$4 sm:$0xff]  }
 0x50c   : > { %6852 = vst [vmem:[#allocation32_spill] sm:$0xff] %v5573_v25  ;;  %6853 = vst [vmem:[#allocation33_spill] sm:$0xff] %v5576_v42 }
 0x50e   : > { %2039 = vmatpush1.bf16.msra.mxu0 %v5561_v45  ;;  %2121 = vmatpush1.bf16.msra.mxu1 %v5564_v32  ;;  %v5579_v45 = vld [vmem:[#allocation7 + $0x364] ss:$16 sps:$4 sm:$0xff]   ;;  %v5582_v32 = vld [vmem:[#allocation7 + $0x36c] ss:$16 sps:$4 sm:$0xff]  }
 0x50f   : > { %2040 = vmatprep.subr.bf16.mxu0 %v5567_v24  ;;  %2122 = vmatprep.subr.bf16.mxu1 %v5570_v38  ;;  %6854 = vst [vmem:[#allocation34_spill] sm:$0xff] %v5579_v45  ;;  %6855 = vst [vmem:[#allocation35_spill] sm:$0xff] %v5582_v32  ;;  %v5585_v24 = vld [vmem:[#allocation7 + $0x360] ss:$16 sps:$4 sm:$0xff]   ;;  %v5588_v38 = vld [vmem:[#allocation7 + $0x368] ss:$16 sps:$4 sm:$0xff]  }
 0x510   : > { %6856 = vst [vmem:[#allocation36_spill] sm:$0xff] %v5585_v24  ;;  %6857 = vst [vmem:[#allocation38_spill] sm:$0xff] %v5588_v38 }
 0x512   : > { %2041 = vmatpush1.bf16.msra.mxu0 %v5573_v25  ;;  %2123 = vmatpush1.bf16.msra.mxu1 %v5576_v42  ;;  %v3421_v25 = vadd.f32 %v5433_v39, %v6679_v30  ;;  %v5593_v42 = vld [vmem:[#allocation7 + $0x384] ss:$16 sps:$4 sm:$0xff]  }
 0x513   : > { %2042 = vmatprep.subr.bf16.mxu0 %v5579_v45  ;;  %2124 = vmatprep.subr.bf16.mxu1 %v5582_v32  ;;  %6858 = vst [vmem:[#allocation39_spill] sm:$0xff] %v5593_v42  ;;  %v5596_v45 = vld [vmem:[#allocation7 + $0x38c] ss:$16 sps:$4 sm:$0xff]   ;;  %v5599_v32 = vld [vmem:[#allocation7 + $0x380] ss:$16 sps:$4 sm:$0xff]  }
 0x514   : > { %6859 = vst [vmem:[#allocation94_spill] sm:$0xff] %v5596_v45  ;;  %6860 = vst [vmem:[#allocation95_spill] sm:$0xff] %v5599_v32 }
 0x516   : > { %2043 = vmatpush1.bf16.msra.mxu0 %v5585_v24  ;;  %2125 = vmatpush1.bf16.msra.mxu1 %v5588_v38  ;;  %v5602_v24 = vld [vmem:[#allocation7 + $0x388] ss:$16 sps:$4 sm:$0xff]   ;;  %v1965_v38 = vmul.f32 0.01, %v3421_v25 }
 0x517   : > { %2044 = vmatprep.subr.bf16.mxu0 %v5593_v42  ;;  %2126 = vmatprep.subr.bf16.mxu1 %v5596_v45  ;;  %6861 = vst [vmem:[#allocation96_spill] sm:$0xff] %v5602_v24 }
 0x518   : > { %v1969_v39 = vmax.f32 %v3421_v25, %v1965_v38  ;;  %v6874_v38 = vld [vmem:[#allocation82_spill] sm:$0xff]  ;;  %v6875_v25 = vld [vmem:[#allocation53_spill] sm:$0xff] }
 0x51a   : > { %2045 = vmatpush1.bf16.msra.mxu0 %v5599_v32  ;;  %2127 = vmatpush1.bf16.msra.mxu1 %v5602_v24  ;;  %v5614_v24 = vadd.f32 %v1969_v39, %v5319_v8  ;;  %v6871_v8 = vld [vmem:[#allocation51_spill] sm:$0xff] }
 0x51b   : > { %2046 = vmatprep.subr.bf16.mxu0 %v4867_v35  ;;  %2128 = vmatprep.subr.bf16.mxu1 %v6684_v11  ;;  %v6866_v11 = vld [vmem:[#allocation46_spill] sm:$0xff]  ;;  %v6876_v39 = vld [vmem:[#allocation83_spill] sm:$0xff] }
 0x51c   : > { %v1977_v35 = vpack.c.bf16 %v5614_v24, %v5614_v24 }
 0x51e   : > { %2047 = vmatpush1.bf16.msra.mxu0 %v6685_v12  ;;  %2129 = vmatpush1.bf16.msra.mxu1 %v6686_v27  ;;  %v6867_v12 = vld [vmem:[#allocation47_spill] sm:$0xff]  ;;  %v6868_v27 = vld [vmem:[#allocation48_spill] sm:$0xff] }
 0x51f   : > { %2048 = vmatprep.subr.bf16.mxu0 %v4880_v14  ;;  %2130 = vmatprep.subr.bf16.mxu1 %v6687_v63  ;;  %v6863_v14 = vld [vmem:[#allocation43_spill] sm:$0xff]  ;;  %v6869_v63 = vld [vmem:[#allocation49_spill] sm:$0xff] }
 0x522   : > { %2049 = vmatpush1.bf16.msra.mxu0 %v6763_v41  ;;  %2131 = vmatpush1.bf16.msra.mxu1 %v4888_v21  ;;  %v6862_v21 = vld [vmem:[#allocation42_spill] sm:$0xff] }
 0x523   : > { %2050 = vmatprep.subr.bf16.mxu0 %v4892_v17  ;;  %2132 = vmatprep.subr.bf16.mxu1 %v4894_v22  ;;  %v6864_v17 = vld [vmem:[#allocation44_spill] sm:$0xff]  ;;  %v6865_v22 = vld [vmem:[#allocation45_spill] sm:$0xff]  ;;  %v6870_v41 = vld [vmem:[#allocation50_spill] sm:$0xff] }
 0x526   : > { %2051 = vmatpush1.bf16.msra.mxu0 %v6764_v23  ;;  %2133 = vmatpush1.bf16.msra.mxu1 %v6765_v33  ;;  %v6872_v23 = vld [vmem:[#allocation52_spill] sm:$0xff]  ;;  %v6873_v33 = vld [vmem:[#allocation37_spill] sm:$0xff] }
 0x527   : > { %2159 = vmatprep.subr.bf16.mxu0 %v6766_v26  ;;  %2241 = vmatprep.subr.bf16.mxu1 %v5083_v36 }
 0x529   : > { %2053 = vmatmul.mubr.bf16.vlgmr.msra.gmra.mrb[16].mxu0 %v1977_v35  ;;  %2135 = vmatmul.mubr.bf16.vlgmr.msra.gmra.mrb[16].mxu1 %v1977_v35  ;;  %v6877_v35 = vld [vmem:[#allocation54_spill] sm:$0xff] }
 0x52a   : > { %2160 = vmatpush1.bf16.msra.mxu0 %v6767_v28  ;;  %2242 = vmatpush1.bf16.msra.mxu1 %v6768_v9 }
 0x52b   : > { %2161 = vmatprep.subr.bf16.mxu0 %v6769_v31  ;;  %2243 = vmatprep.subr.bf16.mxu1 %v6770_v29 }
 0x52e   : > { %2162 = vmatpush1.bf16.msra.mxu0 %v6771_v34  ;;  %2244 = vmatpush1.bf16.msra.mxu1 %v6772_v55 }
 0x52f   : > { %2163 = vmatprep.subr.bf16.mxu0 %v6773_v56  ;;  %2245 = vmatprep.subr.bf16.mxu1 %v6774_v18 }
 0x532   : > { %2164 = vmatpush1.bf16.msra.mxu0 %v6775_v58  ;;  %2246 = vmatpush1.bf16.msra.mxu1 %v6776_v60 }
 0x533   : > { %2165 = vmatprep.subr.bf16.mxu0 %v6777_v62  ;;  %2247 = vmatprep.subr.bf16.mxu1 %v6778_v0 }
 0x536   : > { %2166 = vmatpush1.bf16.msra.mxu0 %v6779_v1  ;;  %2248 = vmatpush1.bf16.msra.mxu1 %v6780_v2 }
 0x537   : > { %2167 = vmatprep.subr.bf16.mxu0 %v6781_v3  ;;  %2249 = vmatprep.subr.bf16.mxu1 %v6782_v4 }
 0x53a   : > { %2168 = vmatpush1.bf16.msra.mxu0 %v6783_v5  ;;  %2250 = vmatpush1.bf16.msra.mxu1 %v6784_v6 }
 0x53b   : > { %2169 = vmatprep.subr.bf16.mxu0 %v6785_v7  ;;  %2251 = vmatprep.subr.bf16.mxu1 %v6786_v37 }
 0x53e   : > { %2170 = vmatpush1.bf16.msra.mxu0 %v6787_v43  ;;  %2252 = vmatpush1.bf16.msra.mxu1 %v6788_v44 }
 0x53f   : > { %2171 = vmatprep.subr.bf16.mxu0 %v6789_v46  ;;  %2253 = vmatprep.subr.bf16.mxu1 %v6790_v47 }
 0x542   : > { %2172 = vmatpush1.bf16.msra.mxu0 %v6862_v21  ;;  %2254 = vmatpush1.bf16.msra.mxu1 %v6863_v14 }
 0x543   : > { %2173 = vmatprep.subr.bf16.mxu0 %v6864_v17  ;;  %2255 = vmatprep.subr.bf16.mxu1 %v6865_v22 }
 0x546   : > { %2174 = vmatpush1.bf16.msra.mxu0 %v6866_v11  ;;  %2256 = vmatpush1.bf16.msra.mxu1 %v6867_v12  ;;  %v6878_v12 = vld [vmem:[#allocation84_spill] sm:$0xff] }
 0x547   : > { %2175 = vmatprep.subr.bf16.mxu0 %v6868_v27  ;;  %2257 = vmatprep.subr.bf16.mxu1 %v6869_v63  ;;  %v6879_v27 = vld [vmem:[#allocation55_spill] sm:$0xff]  ;;  %v6880_v63 = vld [vmem:[#allocation86_spill] sm:$0xff] }
 0x54a   : > { %2176 = vmatpush1.bf16.msra.mxu0 %v6870_v41  ;;  %2258 = vmatpush1.bf16.msra.mxu1 %v6871_v8  ;;  %v6881_v41 = vld [vmem:[#allocation56_spill] sm:$0xff]  ;;  %v6882_v8 = vld [vmem:[#allocation87_spill] sm:$0xff] }
 0x54b   : > { %2177 = vmatprep.subr.bf16.mxu0 %v6872_v23  ;;  %2259 = vmatprep.subr.bf16.mxu1 %v6873_v33  ;;  %v6883_v23 = vld [vmem:[#allocation57_spill] sm:$0xff]  ;;  %v6884_v33 = vld [vmem:[#allocation88_spill] sm:$0xff] }
 0x54e   : > { %2178 = vmatpush1.bf16.msra.mxu0 %v6874_v38  ;;  %2260 = vmatpush1.bf16.msra.mxu1 %v6875_v25  ;;  %v6885_v38 = vld [vmem:[#allocation58_spill] sm:$0xff]  ;;  %v6886_v25 = vld [vmem:[#allocation89_spill] sm:$0xff] }
 0x54f   : > { %2179 = vmatprep.subr.bf16.mxu0 %v6876_v39  ;;  %2261 = vmatprep.subr.bf16.mxu1 %v6877_v35  ;;  %v6887_v39 = vld [vmem:[#allocation59_spill] sm:$0xff]  ;;  %v6888_v35 = vld [vmem:[#allocation93_spill] sm:$0xff] }
 0x552   : > { %2180 = vmatpush1.bf16.msra.mxu0 %v6878_v12  ;;  %2262 = vmatpush1.bf16.msra.mxu1 %v6879_v27  ;;  %v6889_v12 = vld [vmem:[#allocation60_spill] sm:$0xff]  ;;  %v6890_v27 = vld [vmem:[#allocation61_spill] sm:$0xff] }
 0x553   : > { %2181 = vmatprep.subr.bf16.mxu0 %v6880_v63  ;;  %2263 = vmatprep.subr.bf16.mxu1 %v6881_v41  ;;  %v6891_v63 = vld [vmem:[#allocation62_spill] sm:$0xff]  ;;  %v6892_v41 = vld [vmem:[#allocation63_spill] sm:$0xff] }
 0x556   : > { %2182 = vmatpush1.bf16.msra.mxu0 %v6882_v8  ;;  %2264 = vmatpush1.bf16.msra.mxu1 %v6883_v23  ;;  %v6893_v8 = vld [vmem:[#allocation64_spill] sm:$0xff]  ;;  %v6894_v23 = vld [vmem:[#allocation65_spill] sm:$0xff] }
 0x557   : > { %2183 = vmatprep.subr.bf16.mxu0 %v6884_v33  ;;  %2265 = vmatprep.subr.bf16.mxu1 %v6885_v38  ;;  %v6895_v33 = vld [vmem:[#allocation66_spill] sm:$0xff]  ;;  %v6896_v38 = vld [vmem:[#allocation67_spill] sm:$0xff] }
 0x55a   : > { %2184 = vmatpush1.bf16.msra.mxu0 %v6886_v25  ;;  %2266 = vmatpush1.bf16.msra.mxu1 %v6887_v39  ;;  %v6897_v25 = vld [vmem:[#allocation68_spill] sm:$0xff]  ;;  %v6898_v39 = vld [vmem:[#allocation69_spill] sm:$0xff] }
 0x55b   : > { %2185 = vmatprep.subr.bf16.mxu0 %v6888_v35  ;;  %2267 = vmatprep.subr.bf16.mxu1 %v6889_v12  ;;  %v6899_v35 = vld [vmem:[#allocation70_spill] sm:$0xff]  ;;  %v6900_v12 = vld [vmem:[#allocation71_spill] sm:$0xff] }
 0x55e   : > { %2186 = vmatpush1.bf16.msra.mxu0 %v6890_v27  ;;  %2268 = vmatpush1.bf16.msra.mxu1 %v6891_v63  ;;  %v6901_v27 = vld [vmem:[#allocation72_spill] sm:$0xff] }
 0x55f   : > { %2187 = vmatprep.subr.bf16.mxu0 %v6892_v41  ;;  %2269 = vmatprep.subr.bf16.mxu1 %v6893_v8 }
 0x562   : > { %2188 = vmatpush1.bf16.msra.mxu0 %v6894_v23  ;;  %2270 = vmatpush1.bf16.msra.mxu1 %v6895_v33 }
 0x563   : > { %2189 = vmatprep.subr.bf16.mxu0 %v6896_v38  ;;  %2271 = vmatprep.subr.bf16.mxu1 %v6897_v25 }
 0x566   : > { %2190 = vmatpush1.bf16.msra.mxu0 %v6898_v39  ;;  %2272 = vmatpush1.bf16.msra.mxu1 %v6899_v35 }
 0x567   : > { %2200 = vmatprep.subr.bf16.mxu0 %v6900_v12  ;;  %2282 = vmatprep.subr.bf16.mxu1 %v6901_v27 }
 0x5fc   : > { %v2054_v63 = vpop.f32.mrb[16].mxu0  ;;  %v5688_v41 = vpop.f32.mrb[16].mxu1 }
 0x5fd   : > { %v3423_v8 = vadd.f32 %v2054_v63, %v4979_v57  ;;  %v2056_v23 = vpop.f32.mrb[17].mxu0  ;;  %v2138_v11 = vpop.f32.mrb[17].mxu1 }
 0x5fe   : > { %v3424_v33 = vadd.f32 %v2056_v23, %v4984_v59  ;;  %v3426_v38 = vadd.f32 %v2138_v11, %v4989_v61  ;;  %v2058_v25 = vpop.f32.mrb[18].mxu0  ;;  %v2140_v22 = vpop.f32.mrb[18].mxu1  ;;  %v6907_v11 = vld [vmem:[#allocation78_spill] sm:$0xff] }
 0x5ff   : > { %v2143_v39 = vmul.f32 0.01, %v3423_v8  ;;  %v2059_v17 = vpop.f32.mrb[19].mxu0  ;;  %v2141_v35 = vpop.f32.mrb[19].mxu1  ;;  %v6913_v25 = vld [vmem:[#allocation91_spill] sm:$0xff] }
 0x600   : > { %v2144_v14 = vmul.f32 0.01, %v3424_v33  ;;  %v2146_v12 = vmul.f32 0.01, %v3426_v38  ;;  %v6915_v35 = vld [vmem:[#allocation16_spill] sm:$0xff] }
 0x601   : > { %v2147_v21 = vmax.f32 %v3423_v8, %v2143_v39  ;;  %v6910_v8 = vld [vmem:[#allocation81_spill] sm:$0xff]  ;;  %v6914_v39 = vld [vmem:[#allocation92_spill] sm:$0xff] }
 0x602   : > { %v2148_v27 = vmax.f32 %v3424_v33, %v2144_v14  ;;  %v2150_v47 = vmax.f32 %v3426_v38, %v2146_v12  ;;  %v6906_v14 = vld [vmem:[#allocation77_spill] sm:$0xff]  ;;  %v6908_v12 = vld [vmem:[#allocation79_spill] sm:$0xff]  ;;  %v6912_v38 = vld [vmem:[#allocation90_spill] sm:$0xff] }
 0x603   : > { %v5694_v46 = vadd.f32 %v2147_v21, %v5439_v48  ;;  %v6905_v21 = vld [vmem:[#allocation76_spill] sm:$0xff]  ;;  %v6911_v33 = vld [vmem:[#allocation85_spill] sm:$0xff] }
 0x604   : > { %v5697_v63 = vadd.f32 %v2148_v27, %v5442_v13  ;;  %v5700_v23 = vadd.f32 %v2150_v47, %v5445_v50  ;;  %v6902_v47 = vld [vmem:[#allocation73_spill] sm:$0xff]  ;;  %v6903_v13 = vld [vmem:[#allocation74_spill] sm:$0xff]  ;;  %v6904_v50 = vld [vmem:[#allocation75_spill] sm:$0xff] }
 0x605   : > { %v2155_v17 = vpack.c.bf16 %v5694_v46, %v5694_v46  ;;  %v6909_v27 = vld [vmem:[#allocation80_spill] sm:$0xff] }
 0x606   : > { %v2156_v22 = vpack.c.bf16 %v5697_v63, %v5697_v63  ;;  %v2158_v48 = vpack.c.bf16 %v5700_v23, %v5700_v23 }
 0x608   : > { %2191 = vmatprep.mubr.bf16.mxu0 %v2156_v22  ;;  %2273 = vmatprep.mubr.bf16.mxu1 %v2156_v22  ;;  %v6916_v22 = vld [vmem:[#allocation21_spill] sm:$0xff] }
 0x609   : > { %2192 = vmatmul.mubr.bf16.vlgmr.msra.gmra.mrb[20].mxu0 %v2155_v17  ;;  %2274 = vmatmul.mubr.bf16.vlgmr.msra.gmra.mrb[20].mxu1 %v2155_v17  ;;  %v6917_v17 = vld [vmem:[#allocation17_spill] sm:$0xff] }
 0x60a   : > { %2201 = vmatpush1.bf16.msra.mxu0 %v5453_v15  ;;  %2283 = vmatpush1.bf16.msra.mxu1 %v5456_v10 }
 0x60b   : > { %2232 = vmatprep.mubr.bf16.mxu0 %v2158_v48  ;;  %2314 = vmatprep.mubr.bf16.mxu1 %v2158_v48  ;;  %v6918_v48 = vld [vmem:[#allocation22_spill] sm:$0xff] }
 0x60c   : > { %2202 = vmatprep.subr.bf16.mxu0 %v5459_v16  ;;  %2284 = vmatprep.subr.bf16.mxu1 %v5462_v19 }
 0x60e   : > { %2203 = vmatpush1.bf16.msra.mxu0 %v5465_v20  ;;  %2285 = vmatpush1.bf16.msra.mxu1 %v5468_v40 }
 0x60f   : > { %2204 = vmatprep.subr.bf16.mxu0 %v5471_v49  ;;  %2286 = vmatprep.subr.bf16.mxu1 %v5474_v51 }
 0x612   : > { %2205 = vmatpush1.bf16.msra.mxu0 %v5477_v52  ;;  %2287 = vmatpush1.bf16.msra.mxu1 %v5480_v53 }
 0x613   : > { %2206 = vmatprep.subr.bf16.mxu0 %v5483_v54  ;;  %2288 = vmatprep.subr.bf16.mxu1 %v6902_v47 }
 0x616   : > { %2207 = vmatpush1.bf16.msra.mxu0 %v6903_v13  ;;  %2289 = vmatpush1.bf16.msra.mxu1 %v6904_v50 }
 0x617   : > { %2208 = vmatprep.subr.bf16.mxu0 %v6905_v21  ;;  %2290 = vmatprep.subr.bf16.mxu1 %v6906_v14 }
 0x61a   : > { %2209 = vmatpush1.bf16.msra.mxu0 %v6907_v11  ;;  %2291 = vmatpush1.bf16.msra.mxu1 %v6908_v12  ;;  %v6919_v12 = vld [vmem:[#allocation18_spill] sm:$0xff] }
 0x61b   : > { %2210 = vmatprep.subr.bf16.mxu0 %v6909_v27  ;;  %2292 = vmatprep.subr.bf16.mxu1 %v6910_v8  ;;  %v6920_v27 = vld [vmem:[#allocation23_spill] sm:$0xff] }
 0x61c   : > { %v6921_v8 = vld [vmem:[#allocation19_spill] sm:$0xff] }
 0x61e   : > { %2211 = vmatpush1.bf16.msra.mxu0 %v6911_v33  ;;  %2293 = vmatpush1.bf16.msra.mxu1 %v6912_v38  ;;  %v6922_v33 = vld [vmem:[#allocation24_spill] sm:$0xff] }
 0x61f   : > { %2212 = vmatprep.subr.bf16.mxu0 %v6913_v25  ;;  %2294 = vmatprep.subr.bf16.mxu1 %v6914_v39  ;;  %v6923_v38 = vld [vmem:[#allocation20_spill] sm:$0xff]  ;;  %v6924_v25 = vld [vmem:[#allocation25_spill] sm:$0xff]  ;;  %v6925_v39 = vld [vmem:[#allocation26_spill] sm:$0xff] }
 0x622   : > { %2213 = vmatpush1.bf16.msra.mxu0 %v6915_v35  ;;  %2295 = vmatpush1.bf16.msra.mxu1 %v6916_v22  ;;  %v6926_v35 = vld [vmem:[#allocation27_spill] sm:$0xff]  ;;  %v6927_v22 = vld [vmem:[#allocation28_spill] sm:$0xff] }
 0x623   : > { %2214 = vmatprep.subr.bf16.mxu0 %v6917_v17  ;;  %2296 = vmatprep.subr.bf16.mxu1 %v6918_v48  ;;  %v6928_v17 = vld [vmem:[#allocation29_spill] sm:$0xff]  ;;  %v6929_v48 = vld [vmem:[#allocation30_spill] sm:$0xff] }
 0x626   : > { %2215 = vmatpush1.bf16.msra.mxu0 %v6919_v12  ;;  %2297 = vmatpush1.bf16.msra.mxu1 %v6920_v27  ;;  %v6930_v12 = vld [vmem:[#allocation31_spill] sm:$0xff]  ;;  %v6931_v27 = vld [vmem:[#allocation32_spill] sm:$0xff] }
 0x627   : > { %2216 = vmatprep.subr.bf16.mxu0 %v6921_v8  ;;  %2298 = vmatprep.subr.bf16.mxu1 %v6922_v33  ;;  %v6932_v8 = vld [vmem:[#allocation33_spill] sm:$0xff]  ;;  %v6933_v33 = vld [vmem:[#allocation34_spill] sm:$0xff] }
 0x62a   : > { %2217 = vmatpush1.bf16.msra.mxu0 %v6923_v38  ;;  %2299 = vmatpush1.bf16.msra.mxu1 %v6924_v25  ;;  %v6934_v38 = vld [vmem:[#allocation35_spill] sm:$0xff]  ;;  %v6935_v25 = vld [vmem:[#allocation36_spill] sm:$0xff] }
 0x62b   : > { %2218 = vmatprep.subr.bf16.mxu0 %v6925_v39  ;;  %2300 = vmatprep.subr.bf16.mxu1 %v6926_v35  ;;  %v6936_v39 = vld [vmem:[#allocation38_spill] sm:$0xff] }
 0x62e   : > { %2219 = vmatpush1.bf16.msra.mxu0 %v6927_v22  ;;  %2301 = vmatpush1.bf16.msra.mxu1 %v6928_v17  ;;  %v3425_v22 = vadd.f32 %v5688_v41, %v6679_v30  ;;  %v5769_v41 = vld [vmem:[#allocation7 + $0x3a8] ss:$16 sps:$4 sm:$0xff]  }
 0x62f   : > { %2220 = vmatprep.subr.bf16.mxu0 %v6929_v48  ;;  %2302 = vmatprep.subr.bf16.mxu1 %v6930_v12  ;;  %v5760_v12 = vld [vmem:[#allocation7 + $0x3a4] ss:$16 sps:$4 sm:$0xff]  }
 0x630   : > { %6938 = vst [vmem:[#allocation73_spill] sm:$0xff] %v5760_v12 }
 0x632   : > { %2221 = vmatpush1.bf16.msra.mxu0 %v6931_v27  ;;  %2303 = vmatpush1.bf16.msra.mxu1 %v6932_v8  ;;  %v6937_v27 = vld [vmem:[#allocation96_spill] sm:$0xff]  ;;  %v2145_v8 = vmul.f32 0.01, %v3425_v22 }
 0x633   : > { %2222 = vmatprep.subr.bf16.mxu0 %v6933_v33  ;;  %2304 = vmatprep.subr.bf16.mxu1 %v6934_v38  ;;  %v5763_v38 = vld [vmem:[#allocation7 + $0x3ac] ss:$16 sps:$4 sm:$0xff]  }
 0x634   : > { %6939 = vst [vmem:[#allocation74_spill] sm:$0xff] %v5763_v38 }
 0x636   : > { %2223 = vmatpush1.bf16.msra.mxu0 %v6935_v25  ;;  %2305 = vmatpush1.bf16.msra.mxu1 %v6936_v39  ;;  %v5766_v39 = vld [vmem:[#allocation7 + $0x3a0] ss:$16 sps:$4 sm:$0xff]  }
 0x637   : > { %2224 = vmatprep.subr.bf16.mxu0 %v5593_v42  ;;  %2306 = vmatprep.subr.bf16.mxu1 %v5596_v45  ;;  %6940 = vst [vmem:[#allocation75_spill] sm:$0xff] %v5766_v39  ;;  %v5772_v45 = vld [vmem:[#allocation7 + $0x3c4] ss:$16 sps:$4 sm:$0xff]  }
 0x63a   : > { %2225 = vmatpush1.bf16.msra.mxu0 %v5599_v32  ;;  %2307 = vmatpush1.bf16.msra.mxu1 %v6937_v27  ;;  %v2149_v32 = vmax.f32 %v3425_v22, %v2145_v8  ;;  %v5775_v27 = vld [vmem:[#allocation7 + $0x3cc] ss:$16 sps:$4 sm:$0xff]   ;;  %v5787_v8 = vld [vmem:[#allocation7 + $0x3e4] ss:$16 sps:$4 sm:$0xff]  }
 0x63b   : > { %2226 = vmatprep.subr.bf16.mxu0 %v5760_v12  ;;  %2308 = vmatprep.subr.bf16.mxu1 %v5763_v38  ;;  %6941 = vst [vmem:[#allocation76_spill] sm:$0xff] %v5775_v27  ;;  %v5778_v12 = vld [vmem:[#allocation7 + $0x3c0] ss:$16 sps:$4 sm:$0xff]   ;;  %v5781_v38 = vld [vmem:[#allocation7 + $0x3c8] ss:$16 sps:$4 sm:$0xff]   ;;  %6944 = vst [vmem:[#allocation27_spill] sm:$0xff] %v5787_v8 }
 0x63c   : > { %6942 = vst [vmem:[#allocation77_spill] sm:$0xff] %v5778_v12  ;;  %6943 = vst [vmem:[#allocation78_spill] sm:$0xff] %v5781_v38  ;;  %v5790_v22 = vld [vmem:[#allocation7 + $0x3ec] ss:$16 sps:$4 sm:$0xff]  }
 0x63d   : > { %6945 = vst [vmem:[#allocation36_spill] sm:$0xff] %v5790_v22 }
 0x63e   : > { %2227 = vmatpush1.bf16.msra.mxu0 %v5766_v39  ;;  %2309 = vmatpush1.bf16.msra.mxu1 %v5769_v41  ;;  %v5785_v39 = vadd.f32 %v2149_v32, %v5614_v24  ;;  %v6972_v24 = vld [vmem:[#allocation88_spill] sm:$0xff] }
 0x63f   : > { %2228 = vmatprep.subr.bf16.mxu0 %v5772_v45  ;;  %2310 = vmatprep.subr.bf16.mxu1 %v5775_v27  ;;  %v5793_v27 = vld [vmem:[#allocation7 + $0x3e0] ss:$16 sps:$4 sm:$0xff]  }
 0x640   : > { %6946 = vst [vmem:[#allocation97_spill] sm:$0xff] %v5793_v27  ;;  %v2157_v32 = vpack.c.bf16 %v5785_v39, %v5785_v39 }
 0x642   : > { %2229 = vmatpush1.bf16.msra.mxu0 %v5778_v12  ;;  %2311 = vmatpush1.bf16.msra.mxu1 %v5781_v38  ;;  %v5796_v12 = vld [vmem:[#allocation7 + $0x3e8] ss:$16 sps:$4 sm:$0xff]  }
 0x643   : > { %2230 = vmatprep.subr.bf16.mxu0 %v5787_v8  ;;  %2312 = vmatprep.subr.bf16.mxu1 %v5790_v22  ;;  %6947 = vst [vmem:[#allocation98_spill] sm:$0xff] %v5796_v12 }
 0x646   : > { %2231 = vmatpush1.bf16.msra.mxu0 %v5793_v27  ;;  %2313 = vmatpush1.bf16.msra.mxu1 %v5796_v12 }
 0x647   : > { %2339 = vmatprep.subr.bf16.mxu0 %v6766_v26  ;;  %2421 = vmatprep.subr.bf16.mxu1 %v5083_v36  ;;  %v6948_v36 = vld [vmem:[#allocation40_spill] sm:$0xff]  ;;  %v6949_v26 = vld [vmem:[#allocation41_spill] sm:$0xff] }
 0x649   : > { %2233 = vmatmul.mubr.bf16.vlgmr.msra.gmra.mrb[20].mxu0 %v2157_v32  ;;  %2315 = vmatmul.mubr.bf16.vlgmr.msra.gmra.mrb[20].mxu1 %v2157_v32  ;;  %v6973_v32 = vld [vmem:[#allocation58_spill] sm:$0xff] }
 0x64a   : > { %2340 = vmatpush1.bf16.msra.mxu0 %v6767_v28  ;;  %2422 = vmatpush1.bf16.msra.mxu1 %v6768_v9  ;;  %v6950_v28 = vld [vmem:[#allocation42_spill] sm:$0xff]  ;;  %v6951_v9 = vld [vmem:[#allocation43_spill] sm:$0xff] }
 0x64b   : > { %2341 = vmatprep.subr.bf16.mxu0 %v6769_v31  ;;  %2423 = vmatprep.subr.bf16.mxu1 %v6770_v29  ;;  %v6952_v31 = vld [vmem:[#allocation44_spill] sm:$0xff]  ;;  %v6953_v29 = vld [vmem:[#allocation45_spill] sm:$0xff] }
 0x64e   : > { %2342 = vmatpush1.bf16.msra.mxu0 %v6771_v34  ;;  %2424 = vmatpush1.bf16.msra.mxu1 %v6772_v55  ;;  %v6954_v34 = vld [vmem:[#allocation46_spill] sm:$0xff]  ;;  %v6955_v55 = vld [vmem:[#allocation47_spill] sm:$0xff] }
 0x64f   : > { %2343 = vmatprep.subr.bf16.mxu0 %v6773_v56  ;;  %2425 = vmatprep.subr.bf16.mxu1 %v6774_v18  ;;  %v6956_v56 = vld [vmem:[#allocation48_spill] sm:$0xff]  ;;  %v6957_v18 = vld [vmem:[#allocation49_spill] sm:$0xff] }
 0x652   : > { %2344 = vmatpush1.bf16.msra.mxu0 %v6775_v58  ;;  %2426 = vmatpush1.bf16.msra.mxu1 %v6776_v60  ;;  %v6958_v58 = vld [vmem:[#allocation50_spill] sm:$0xff]  ;;  %v6959_v60 = vld [vmem:[#allocation51_spill] sm:$0xff] }
 0x653   : > { %2345 = vmatprep.subr.bf16.mxu0 %v6777_v62  ;;  %2427 = vmatprep.subr.bf16.mxu1 %v6778_v0  ;;  %v6960_v62 = vld [vmem:[#allocation52_spill] sm:$0xff]  ;;  %v6961_v0 = vld [vmem:[#allocation37_spill] sm:$0xff] }
 0x656   : > { %2346 = vmatpush1.bf16.msra.mxu0 %v6779_v1  ;;  %2428 = vmatpush1.bf16.msra.mxu1 %v6780_v2  ;;  %v6962_v1 = vld [vmem:[#allocation82_spill] sm:$0xff]  ;;  %v6963_v2 = vld [vmem:[#allocation53_spill] sm:$0xff] }
 0x657   : > { %2347 = vmatprep.subr.bf16.mxu0 %v6781_v3  ;;  %2429 = vmatprep.subr.bf16.mxu1 %v6782_v4  ;;  %v6964_v3 = vld [vmem:[#allocation83_spill] sm:$0xff]  ;;  %v6965_v4 = vld [vmem:[#allocation54_spill] sm:$0xff] }
 0x65a   : > { %2348 = vmatpush1.bf16.msra.mxu0 %v6783_v5  ;;  %2430 = vmatpush1.bf16.msra.mxu1 %v6784_v6  ;;  %v6966_v5 = vld [vmem:[#allocation84_spill] sm:$0xff]  ;;  %v6967_v6 = vld [vmem:[#allocation55_spill] sm:$0xff] }
 0x65b   : > { %2349 = vmatprep.subr.bf16.mxu0 %v6785_v7  ;;  %2431 = vmatprep.subr.bf16.mxu1 %v6786_v37  ;;  %v6968_v7 = vld [vmem:[#allocation86_spill] sm:$0xff]  ;;  %v6969_v37 = vld [vmem:[#allocation56_spill] sm:$0xff] }
 0x65e   : > { %2350 = vmatpush1.bf16.msra.mxu0 %v6787_v43  ;;  %2432 = vmatpush1.bf16.msra.mxu1 %v6788_v44  ;;  %v6970_v43 = vld [vmem:[#allocation87_spill] sm:$0xff]  ;;  %v6971_v44 = vld [vmem:[#allocation57_spill] sm:$0xff] }
 0x65f   : > { %2351 = vmatprep.subr.bf16.mxu0 %v6948_v36  ;;  %2433 = vmatprep.subr.bf16.mxu1 %v6949_v26  ;;  %v6974_v36 = vld [vmem:[#allocation89_spill] sm:$0xff]  ;;  %v6975_v26 = vld [vmem:[#allocation59_spill] sm:$0xff] }
 0x662   : > { %2352 = vmatpush1.bf16.msra.mxu0 %v6950_v28  ;;  %2434 = vmatpush1.bf16.msra.mxu1 %v6951_v9  ;;  %v6976_v28 = vld [vmem:[#allocation93_spill] sm:$0xff]  ;;  %v6977_v9 = vld [vmem:[#allocation60_spill] sm:$0xff] }
 0x663   : > { %2353 = vmatprep.subr.bf16.mxu0 %v6952_v31  ;;  %2435 = vmatprep.subr.bf16.mxu1 %v6953_v29  ;;  %v6978_v31 = vld [vmem:[#allocation61_spill] sm:$0xff]  ;;  %v6979_v29 = vld [vmem:[#allocation62_spill] sm:$0xff] }
 0x666   : > { %2354 = vmatpush1.bf16.msra.mxu0 %v6954_v34  ;;  %2436 = vmatpush1.bf16.msra.mxu1 %v6955_v55  ;;  %v6980_v34 = vld [vmem:[#allocation63_spill] sm:$0xff]  ;;  %v6981_v55 = vld [vmem:[#allocation64_spill] sm:$0xff] }
 0x667   : > { %2355 = vmatprep.subr.bf16.mxu0 %v6956_v56  ;;  %2437 = vmatprep.subr.bf16.mxu1 %v6957_v18  ;;  %v6982_v56 = vld [vmem:[#allocation65_spill] sm:$0xff]  ;;  %v6983_v18 = vld [vmem:[#allocation66_spill] sm:$0xff] }
 0x66a   : > { %2356 = vmatpush1.bf16.msra.mxu0 %v6958_v58  ;;  %2438 = vmatpush1.bf16.msra.mxu1 %v6959_v60  ;;  %v6984_v58 = vld [vmem:[#allocation67_spill] sm:$0xff]  ;;  %v6985_v60 = vld [vmem:[#allocation68_spill] sm:$0xff] }
 0x66b   : > { %2357 = vmatprep.subr.bf16.mxu0 %v6960_v62  ;;  %2439 = vmatprep.subr.bf16.mxu1 %v6961_v0  ;;  %v6986_v62 = vld [vmem:[#allocation69_spill] sm:$0xff]  ;;  %v6987_v0 = vld [vmem:[#allocation70_spill] sm:$0xff] }
 0x66e   : > { %2358 = vmatpush1.bf16.msra.mxu0 %v6962_v1  ;;  %2440 = vmatpush1.bf16.msra.mxu1 %v6963_v2  ;;  %v6988_v1 = vld [vmem:[#allocation71_spill] sm:$0xff] }
 0x66f   : > { %2359 = vmatprep.subr.bf16.mxu0 %v6964_v3  ;;  %2441 = vmatprep.subr.bf16.mxu1 %v6965_v4  ;;  %v6989_v3 = vld [vmem:[#allocation72_spill] sm:$0xff] }
 0x672   : > { %2360 = vmatpush1.bf16.msra.mxu0 %v6966_v5  ;;  %2442 = vmatpush1.bf16.msra.mxu1 %v6967_v6 }
 0x673   : > { %2361 = vmatprep.subr.bf16.mxu0 %v6968_v7  ;;  %2443 = vmatprep.subr.bf16.mxu1 %v6969_v37 }
 0x676   : > { %2362 = vmatpush1.bf16.msra.mxu0 %v6970_v43  ;;  %2444 = vmatpush1.bf16.msra.mxu1 %v6971_v44 }
 0x677   : > { %2363 = vmatprep.subr.bf16.mxu0 %v6972_v24  ;;  %2445 = vmatprep.subr.bf16.mxu1 %v6973_v32 }
 0x67a   : > { %2364 = vmatpush1.bf16.msra.mxu0 %v6974_v36  ;;  %2446 = vmatpush1.bf16.msra.mxu1 %v6975_v26 }
 0x67b   : > { %2365 = vmatprep.subr.bf16.mxu0 %v6976_v28  ;;  %2447 = vmatprep.subr.bf16.mxu1 %v6977_v9 }
 0x67e   : > { %2366 = vmatpush1.bf16.msra.mxu0 %v6978_v31  ;;  %2448 = vmatpush1.bf16.msra.mxu1 %v6979_v29 }
 0x67f   : > { %2367 = vmatprep.subr.bf16.mxu0 %v6980_v34  ;;  %2449 = vmatprep.subr.bf16.mxu1 %v6981_v55 }
 0x682   : > { %2368 = vmatpush1.bf16.msra.mxu0 %v6982_v56  ;;  %2450 = vmatpush1.bf16.msra.mxu1 %v6983_v18 }
 0x683   : > { %2369 = vmatprep.subr.bf16.mxu0 %v6984_v58  ;;  %2451 = vmatprep.subr.bf16.mxu1 %v6985_v60 }
 0x686   : > { %2370 = vmatpush1.bf16.msra.mxu0 %v6986_v62  ;;  %2452 = vmatpush1.bf16.msra.mxu1 %v6987_v0 }
 0x687   : > { %2380 = vmatprep.subr.bf16.mxu0 %v6988_v1  ;;  %2462 = vmatprep.subr.bf16.mxu1 %v6989_v3 }
 0x71c   : > { %v2234_v5 = vpop.f32.mrb[20].mxu0  ;;  %v5867_v7 = vpop.f32.mrb[20].mxu1 }
 0x71d   : > { %v3427_v43 = vadd.f32 %v2234_v5, %v4979_v57  ;;  %v2236_v24 = vpop.f32.mrb[21].mxu0  ;;  %v2318_v36 = vpop.f32.mrb[21].mxu1 }
 0x71e   : > { %v3428_v28 = vadd.f32 %v2236_v24, %v4984_v59  ;;  %v3430_v58 = vadd.f32 %v2318_v36, %v4989_v61  ;;  %v2238_v60 = vpop.f32.mrb[22].mxu0  ;;  %v2320_v18 = vpop.f32.mrb[22].mxu1  ;;  %v7002_v36 = vld [vmem:[#allocation23_spill] sm:$0xff] }
 0x71f   : > { %v2323_v62 = vmul.f32 0.01, %v3427_v43  ;;  %v2239_v56 = vpop.f32.mrb[23].mxu0  ;;  %v2321_v0 = vpop.f32.mrb[23].mxu1  ;;  %v6996_v60 = vld [vmem:[#allocation92_spill] sm:$0xff] }
 0x720   : > { %v2324_v55 = vmul.f32 0.01, %v3428_v28  ;;  %v2326_v1 = vmul.f32 0.01, %v3430_v58  ;;  %v6998_v0 = vld [vmem:[#allocation21_spill] sm:$0xff] }
 0x721   : > { %v2327_v34 = vmax.f32 %v3427_v43, %v2323_v62  ;;  %v6997_v62 = vld [vmem:[#allocation16_spill] sm:$0xff]  ;;  %v7001_v43 = vld [vmem:[#allocation18_spill] sm:$0xff] }
 0x722   : > { %v2328_v3 = vmax.f32 %v3428_v28, %v2324_v55  ;;  %v2330_v29 = vmax.f32 %v3430_v58, %v2326_v1  ;;  %v6994_v55 = vld [vmem:[#allocation90_spill] sm:$0xff]  ;;  %v6995_v58 = vld [vmem:[#allocation91_spill] sm:$0xff]  ;;  %v6999_v1 = vld [vmem:[#allocation17_spill] sm:$0xff] }
 0x723   : > { %v5873_v31 = vadd.f32 %v2327_v34, %v5694_v46  ;;  %v6993_v34 = vld [vmem:[#allocation85_spill] sm:$0xff]  ;;  %v7003_v28 = vld [vmem:[#allocation19_spill] sm:$0xff] }
 0x724   : > { %v5876_v5 = vadd.f32 %v2328_v3, %v5697_v63  ;;  %v5879_v24 = vadd.f32 %v2330_v29, %v5700_v23  ;;  %v6990_v63 = vld [vmem:[#allocation79_spill] sm:$0xff]  ;;  %v6991_v23 = vld [vmem:[#allocation80_spill] sm:$0xff]  ;;  %v6992_v29 = vld [vmem:[#allocation81_spill] sm:$0xff] }
 0x725   : > { %v2335_v56 = vpack.c.bf16 %v5873_v31, %v5873_v31  ;;  %v7000_v3 = vld [vmem:[#allocation22_spill] sm:$0xff] }
 0x726   : > { %v2336_v18 = vpack.c.bf16 %v5876_v5, %v5876_v5  ;;  %v2338_v46 = vpack.c.bf16 %v5879_v24, %v5879_v24 }
 0x728   : > { %2371 = vmatprep.mubr.bf16.mxu0 %v2336_v18  ;;  %2453 = vmatprep.mubr.bf16.mxu1 %v2336_v18  ;;  %v7004_v18 = vld [vmem:[#allocation24_spill] sm:$0xff] }
 0x729   : > { %2372 = vmatmul.mubr.bf16.vlgmr.msra.gmra.mrb[24].mxu0 %v2335_v56  ;;  %2454 = vmatmul.mubr.bf16.vlgmr.msra.gmra.mrb[24].mxu1 %v2335_v56  ;;  %v7005_v56 = vld [vmem:[#allocation20_spill] sm:$0xff] }
 0x72a   : > { %2381 = vmatpush1.bf16.msra.mxu0 %v5453_v15  ;;  %2463 = vmatpush1.bf16.msra.mxu1 %v5456_v10 }
 0x72b   : > { %2412 = vmatprep.mubr.bf16.mxu0 %v2338_v46  ;;  %2494 = vmatprep.mubr.bf16.mxu1 %v2338_v46  ;;  %v7006_v46 = vld [vmem:[#allocation25_spill] sm:$0xff] }
 0x72c   : > { %2382 = vmatprep.subr.bf16.mxu0 %v5459_v16  ;;  %2464 = vmatprep.subr.bf16.mxu1 %v5462_v19 }
 0x72e   : > { %2383 = vmatpush1.bf16.msra.mxu0 %v5465_v20  ;;  %2465 = vmatpush1.bf16.msra.mxu1 %v5468_v40 }
 0x72f   : > { %2384 = vmatprep.subr.bf16.mxu0 %v5471_v49  ;;  %2466 = vmatprep.subr.bf16.mxu1 %v5474_v51 }
 0x732   : > { %2385 = vmatpush1.bf16.msra.mxu0 %v5477_v52  ;;  %2467 = vmatpush1.bf16.msra.mxu1 %v5480_v53 }
 0x733   : > { %2386 = vmatprep.subr.bf16.mxu0 %v5483_v54  ;;  %2468 = vmatprep.subr.bf16.mxu1 %v6902_v47 }
 0x736   : > { %2387 = vmatpush1.bf16.msra.mxu0 %v6903_v13  ;;  %2469 = vmatpush1.bf16.msra.mxu1 %v6904_v50 }
 0x737   : > { %2388 = vmatprep.subr.bf16.mxu0 %v6905_v21  ;;  %2470 = vmatprep.subr.bf16.mxu1 %v6906_v14 }
 0x73a   : > { %2389 = vmatpush1.bf16.msra.mxu0 %v6907_v11  ;;  %2471 = vmatpush1.bf16.msra.mxu1 %v6990_v63 }
 0x73b   : > { %2390 = vmatprep.subr.bf16.mxu0 %v6991_v23  ;;  %2472 = vmatprep.subr.bf16.mxu1 %v6992_v29 }
 0x73e   : > { %2391 = vmatpush1.bf16.msra.mxu0 %v6993_v34  ;;  %2473 = vmatpush1.bf16.msra.mxu1 %v6994_v55 }
 0x73f   : > { %2392 = vmatprep.subr.bf16.mxu0 %v6995_v58  ;;  %2474 = vmatprep.subr.bf16.mxu1 %v6996_v60  ;;  %v7007_v60 = vld [vmem:[#allocation26_spill] sm:$0xff] }
 0x742   : > { %2393 = vmatpush1.bf16.msra.mxu0 %v6997_v62  ;;  %2475 = vmatpush1.bf16.msra.mxu1 %v6998_v0  ;;  %v7008_v0 = vld [vmem:[#allocation28_spill] sm:$0xff] }
 0x743   : > { %2394 = vmatprep.subr.bf16.mxu0 %v6999_v1  ;;  %2476 = vmatprep.subr.bf16.mxu1 %v7000_v3 }
 0x746   : > { %2395 = vmatpush1.bf16.msra.mxu0 %v7001_v43  ;;  %2477 = vmatpush1.bf16.msra.mxu1 %v7002_v36  ;;  %v7009_v43 = vld [vmem:[#allocation31_spill] sm:$0xff]  ;;  %v7010_v36 = vld [vmem:[#allocation32_spill] sm:$0xff] }
 0x747   : > { %2396 = vmatprep.subr.bf16.mxu0 %v7003_v28  ;;  %2478 = vmatprep.subr.bf16.mxu1 %v7004_v18  ;;  %v7011_v28 = vld [vmem:[#allocation33_spill] sm:$0xff] }
 0x74a   : > { %2397 = vmatpush1.bf16.msra.mxu0 %v7005_v56  ;;  %2479 = vmatpush1.bf16.msra.mxu1 %v7006_v46  ;;  %v7012_v56 = vld [vmem:[#allocation35_spill] sm:$0xff] }
 0x74b   : > { %2398 = vmatprep.subr.bf16.mxu0 %v7007_v60  ;;  %2480 = vmatprep.subr.bf16.mxu1 %v6926_v35  ;;  %v7013_v60 = vld [vmem:[#allocation38_spill] sm:$0xff] }
 0x74e   : > { %2399 = vmatpush1.bf16.msra.mxu0 %v7008_v0  ;;  %2481 = vmatpush1.bf16.msra.mxu1 %v6928_v17  ;;  %v3429_v0 = vadd.f32 %v5867_v7, %v6679_v30  ;;  %v7017_v17 = vld [vmem:[#allocation73_spill] sm:$0xff]  ;;  %v7020_v7 = vld [vmem:[#allocation76_spill] sm:$0xff] }
 0x74f   : > { %2400 = vmatprep.subr.bf16.mxu0 %v6929_v48  ;;  %2482 = vmatprep.subr.bf16.mxu1 %v7009_v43  ;;  %v7014_v48 = vld [vmem:[#allocation94_spill] sm:$0xff]  ;;  %v7015_v43 = vld [vmem:[#allocation95_spill] sm:$0xff] }
 0x752   : > { %2401 = vmatpush1.bf16.msra.mxu0 %v7010_v36  ;;  %2483 = vmatpush1.bf16.msra.mxu1 %v7011_v28  ;;  %v7016_v36 = vld [vmem:[#allocation96_spill] sm:$0xff]  ;;  %v2325_v28 = vmul.f32 0.01, %v3429_v0 }
 0x753   : > { %2402 = vmatprep.subr.bf16.mxu0 %v6933_v33  ;;  %2484 = vmatprep.subr.bf16.mxu1 %v7012_v56  ;;  %v7018_v33 = vld [vmem:[#allocation74_spill] sm:$0xff]  ;;  %v7019_v56 = vld [vmem:[#allocation75_spill] sm:$0xff] }
 0x756   : > { %2403 = vmatpush1.bf16.msra.mxu0 %v6935_v25  ;;  %2485 = vmatpush1.bf16.msra.mxu1 %v7013_v60  ;;  %v2329_v60 = vmax.f32 %v3429_v0, %v2325_v28  ;;  %v3977_v28 = vld [vmem:[#allocation7 + $0x4] ss:$16 sps:$4 sm:$0xff]  }
 0x757   : > { %2404 = vmatprep.subr.bf16.mxu0 %v5593_v42  ;;  %2486 = vmatprep.subr.bf16.mxu1 %v7014_v48  ;;  %v7021_v42 = vld [vmem:[#allocation77_spill] sm:$0xff] }
 0x75a   : > { %2405 = vmatpush1.bf16.msra.mxu0 %v7015_v43  ;;  %2487 = vmatpush1.bf16.msra.mxu1 %v7016_v36  ;;  %v5948_v36 = vadd.f32 %v2329_v60, %v5785_v39  ;;  %v3980_v39 = vld [vmem:[#allocation7 + $0x8] ss:$16 sps:$4 sm:$0xff]   ;;  %v3981_v60 = vld [vmem:[#allocation7 + $0x24] ss:$16 sps:$4 sm:$0xff]  }
 0x75b   : > { %2406 = vmatprep.subr.bf16.mxu0 %v7017_v17  ;;  %2488 = vmatprep.subr.bf16.mxu1 %v7018_v33 }
 0x75c   : > { %7022 = vst [vmem:[#allocation40_spill] sm:$0xff] %v5948_v36  ;;  %v2337_v0 = vpack.c.bf16 %v5948_v36, %v5948_v36  ;;  %v3986_v36 = vld [vmem:[#allocation7 + $0x4c] ss:$16 sps:$4 sm:$0xff]  }
 0x75e   : > { %2407 = vmatpush1.bf16.msra.mxu0 %v7019_v56  ;;  %2489 = vmatpush1.bf16.msra.mxu1 %v5769_v41 }
 0x75f   : > { %2408 = vmatprep.subr.bf16.mxu0 %v5772_v45  ;;  %2490 = vmatprep.subr.bf16.mxu1 %v7020_v7  ;;  %v3978_v7 = vld [vmem:[#allocation7 + $0xc] ss:$16 sps:$4 sm:$0xff]  }
 0x762   : > { %2409 = vmatpush1.bf16.msra.mxu0 %v7021_v42  ;;  %2491 = vmatpush1.bf16.msra.mxu1 %v5781_v38  ;;  %v3979_v38 = vld [vmem:[#allocation7] ss:$16 sps:$4 sm:$0xff]  }
 0x763   : > { %2410 = vmatprep.subr.bf16.mxu0 %v5787_v8  ;;  %2492 = vmatprep.subr.bf16.mxu1 %v5790_v22  ;;  %v3982_v22 = vld [vmem:[#allocation7 + $0x2c] ss:$16 sps:$4 sm:$0xff]   ;;  %v3985_v8 = vld [vmem:[#allocation7 + $0x44] ss:$16 sps:$4 sm:$0xff]  }
 0x766   : > { %2411 = vmatpush1.bf16.msra.mxu0 %v5793_v27  ;;  %2493 = vmatpush1.bf16.msra.mxu1 %v5796_v12  ;;  %v3983_v27 = vld [vmem:[#allocation7 + $0x20] ss:$16 sps:$4 sm:$0xff]   ;;  %v3984_v12 = vld [vmem:[#allocation7 + $0x28] ss:$16 sps:$4 sm:$0xff]  }
 0x767   : > { %2519 = vmatprep.subr.bf16.mxu0 %v3977_v28  ;;  %2601 = vmatprep.subr.bf16.mxu1 %v3978_v7  ;;  %v3987_v28 = vld [vmem:[#allocation7 + $0x40] ss:$16 sps:$4 sm:$0xff]   ;;  %v3988_v7 = vld [vmem:[#allocation7 + $0x48] ss:$16 sps:$4 sm:$0xff]  }
 0x769   : > { %2413 = vmatmul.mubr.bf16.vlgmr.msra.gmra.mrb[24].mxu0 %v2337_v0  ;;  %2495 = vmatmul.mubr.bf16.vlgmr.msra.gmra.mrb[24].mxu1 %v2337_v0  ;;  %v3989_v0 = vld [vmem:[#allocation7 + $0x64] ss:$16 sps:$4 sm:$0xff]  }
 0x76a   : > { %2520 = vmatpush1.bf16.msra.mxu0 %v3979_v38  ;;  %2602 = vmatpush1.bf16.msra.mxu1 %v3980_v39  ;;  %v3990_v38 = vld [vmem:[#allocation7 + $0x6c] ss:$16 sps:$4 sm:$0xff]   ;;  %v3991_v39 = vld [vmem:[#allocation7 + $0x60] ss:$16 sps:$4 sm:$0xff]  }
 0x76b   : > { %2521 = vmatprep.subr.bf16.mxu0 %v3981_v60  ;;  %2603 = vmatprep.subr.bf16.mxu1 %v3982_v22  ;;  %v3992_v60 = vld [vmem:[#allocation7 + $0x68] ss:$16 sps:$4 sm:$0xff]   ;;  %v3993_v22 = vld [vmem:[#allocation7 + $0x84] ss:$16 sps:$4 sm:$0xff]  }
 0x76e   : > { %2522 = vmatpush1.bf16.msra.mxu0 %v3983_v27  ;;  %2604 = vmatpush1.bf16.msra.mxu1 %v3984_v12  ;;  %v3994_v27 = vld [vmem:[#allocation7 + $0x8c] ss:$16 sps:$4 sm:$0xff]   ;;  %v3995_v12 = vld [vmem:[#allocation7 + $0x80] ss:$16 sps:$4 sm:$0xff]  }
 0x76f   : > { %2523 = vmatprep.subr.bf16.mxu0 %v3985_v8  ;;  %2605 = vmatprep.subr.bf16.mxu1 %v3986_v36  ;;  %v3996_v8 = vld [vmem:[#allocation7 + $0x88] ss:$16 sps:$4 sm:$0xff]   ;;  %v3997_v36 = vld [vmem:[#allocation7 + $0xa4] ss:$16 sps:$4 sm:$0xff]  }
 0x772   : > { %2524 = vmatpush1.bf16.msra.mxu0 %v3987_v28  ;;  %2606 = vmatpush1.bf16.msra.mxu1 %v3988_v7  ;;  %v3998_v28 = vld [vmem:[#allocation7 + $0xac] ss:$16 sps:$4 sm:$0xff]   ;;  %v3999_v7 = vld [vmem:[#allocation7 + $0xa0] ss:$16 sps:$4 sm:$0xff]  }
 0x773   : > { %2525 = vmatprep.subr.bf16.mxu0 %v3989_v0  ;;  %2607 = vmatprep.subr.bf16.mxu1 %v3990_v38  ;;  %v4000_v0 = vld [vmem:[#allocation7 + $0xa8] ss:$16 sps:$4 sm:$0xff]   ;;  %v4001_v38 = vld [vmem:[#allocation7 + $0xc4] ss:$16 sps:$4 sm:$0xff]  }
 0x776   : > { %2526 = vmatpush1.bf16.msra.mxu0 %v3991_v39  ;;  %2608 = vmatpush1.bf16.msra.mxu1 %v3992_v60  ;;  %v4002_v39 = vld [vmem:[#allocation7 + $0xcc] ss:$16 sps:$4 sm:$0xff]   ;;  %v4003_v60 = vld [vmem:[#allocation7 + $0xc0] ss:$16 sps:$4 sm:$0xff]  }
 0x777   : > { %2527 = vmatprep.subr.bf16.mxu0 %v3993_v22  ;;  %2609 = vmatprep.subr.bf16.mxu1 %v3994_v27  ;;  %v4004_v22 = vld [vmem:[#allocation7 + $0xc8] ss:$16 sps:$4 sm:$0xff]   ;;  %v4005_v27 = vld [vmem:[#allocation7 + $0xe4] ss:$16 sps:$4 sm:$0xff]  }
 0x77a   : > { %2528 = vmatpush1.bf16.msra.mxu0 %v3995_v12  ;;  %2610 = vmatpush1.bf16.msra.mxu1 %v3996_v8  ;;  %v4006_v12 = vld [vmem:[#allocation7 + $0xec] ss:$16 sps:$4 sm:$0xff]   ;;  %v4007_v8 = vld [vmem:[#allocation7 + $0xe0] ss:$16 sps:$4 sm:$0xff]  }
 0x77b   : > { %2529 = vmatprep.subr.bf16.mxu0 %v3997_v36  ;;  %2611 = vmatprep.subr.bf16.mxu1 %v3998_v28  ;;  %v4008_v36 = vld [vmem:[#allocation7 + $0xe8] ss:$16 sps:$4 sm:$0xff]   ;;  %v4009_v28 = vld [vmem:[#allocation7 + $0x104] ss:$16 sps:$4 sm:$0xff]  }
 0x77e   : > { %2530 = vmatpush1.bf16.msra.mxu0 %v3999_v7  ;;  %2612 = vmatpush1.bf16.msra.mxu1 %v4000_v0  ;;  %v4010_v7 = vld [vmem:[#allocation7 + $0x10c] ss:$16 sps:$4 sm:$0xff]   ;;  %v4011_v0 = vld [vmem:[#allocation7 + $0x100] ss:$16 sps:$4 sm:$0xff]  }
 0x77f   : > { %2531 = vmatprep.subr.bf16.mxu0 %v4001_v38  ;;  %2613 = vmatprep.subr.bf16.mxu1 %v4002_v39  ;;  %v4012_v38 = vld [vmem:[#allocation7 + $0x108] ss:$16 sps:$4 sm:$0xff]   ;;  %v4013_v39 = vld [vmem:[#allocation7 + $0x124] ss:$16 sps:$4 sm:$0xff]  }
 0x782   : > { %2532 = vmatpush1.bf16.msra.mxu0 %v4003_v60  ;;  %2614 = vmatpush1.bf16.msra.mxu1 %v4004_v22  ;;  %v4014_v60 = vld [vmem:[#allocation7 + $0x12c] ss:$16 sps:$4 sm:$0xff]   ;;  %v4015_v22 = vld [vmem:[#allocation7 + $0x120] ss:$16 sps:$4 sm:$0xff]  }
 0x783   : > { %2533 = vmatprep.subr.bf16.mxu0 %v4005_v27  ;;  %2615 = vmatprep.subr.bf16.mxu1 %v4006_v12  ;;  %v4016_v27 = vld [vmem:[#allocation7 + $0x144] ss:$16 sps:$4 sm:$0xff]   ;;  %v4017_v12 = vld [vmem:[#allocation7 + $0x140] ss:$16 sps:$4 sm:$0xff]  }
 0x786   : > { %2534 = vmatpush1.bf16.msra.mxu0 %v4007_v8  ;;  %2616 = vmatpush1.bf16.msra.mxu1 %v4008_v36  ;;  %v4018_v8 = vld [vmem:[#allocation7 + $0x164] ss:$16 sps:$4 sm:$0xff]   ;;  %v4019_v36 = vld [vmem:[#allocation7 + $0x160] ss:$16 sps:$4 sm:$0xff]  }
 0x787   : > { %2535 = vmatprep.subr.bf16.mxu0 %v4009_v28  ;;  %2617 = vmatprep.subr.bf16.mxu1 %v4010_v7  ;;  %v4020_v28 = vld [vmem:[#allocation7 + $0x184] ss:$16 sps:$4 sm:$0xff]  }
 0x788   : > { %v7024_v7 = vld [vmem:[#allocation62_spill] sm:$0xff] }
 0x78a   : > { %2536 = vmatpush1.bf16.msra.mxu0 %v4011_v0  ;;  %2618 = vmatpush1.bf16.msra.mxu1 %v4012_v38  ;;  %v7026_v0 = vld [vmem:[#allocation64_spill] sm:$0xff]  ;;  %v7028_v38 = vld [vmem:[#allocation66_spill] sm:$0xff] }
 0x78b   : > { %2537 = vmatprep.subr.bf16.mxu0 %v4013_v39  ;;  %2619 = vmatprep.subr.bf16.mxu1 %v4014_v60  ;;  %v7030_v39 = vld [vmem:[#allocation68_spill] sm:$0xff]  ;;  %v7032_v60 = vld [vmem:[#allocation70_spill] sm:$0xff] }
 0x78e   : > { %2538 = vmatpush1.bf16.msra.mxu0 %v4015_v22  ;;  %2620 = vmatpush1.bf16.msra.mxu1 %v6963_v2  ;;  %v4021_v2 = vld [vmem:[#allocation7 + $0x180] ss:$16 sps:$4 sm:$0xff]  }
 0x78f   : > { %2539 = vmatprep.subr.bf16.mxu0 %v4016_v27  ;;  %2621 = vmatprep.subr.bf16.mxu1 %v6965_v4  ;;  %v4022_v4 = vld [vmem:[#allocation7 + $0x1a4] ss:$16 sps:$4 sm:$0xff]  }
 0x790   : > { %v7034_v22 = vld [vmem:[#allocation72_spill] sm:$0xff] }
 0x792   : > { %2540 = vmatpush1.bf16.msra.mxu0 %v4017_v12  ;;  %2622 = vmatpush1.bf16.msra.mxu1 %v6967_v6  ;;  %v7023_v6 = vld [vmem:[#allocation61_spill] sm:$0xff] }
 0x793   : > { %2541 = vmatprep.subr.bf16.mxu0 %v4018_v8  ;;  %2623 = vmatprep.subr.bf16.mxu1 %v6969_v37  ;;  %v7025_v37 = vld [vmem:[#allocation63_spill] sm:$0xff] }
 0x796   : > { %2542 = vmatpush1.bf16.msra.mxu0 %v4019_v36  ;;  %2624 = vmatpush1.bf16.msra.mxu1 %v6971_v44  ;;  %v7027_v44 = vld [vmem:[#allocation65_spill] sm:$0xff] }
 0x797   : > { %2543 = vmatprep.subr.bf16.mxu0 %v4020_v28  ;;  %2625 = vmatprep.subr.bf16.mxu1 %v6973_v32  ;;  %v7029_v32 = vld [vmem:[#allocation67_spill] sm:$0xff] }
 0x79a   : > { %2544 = vmatpush1.bf16.msra.mxu0 %v4021_v2  ;;  %2626 = vmatpush1.bf16.msra.mxu1 %v6975_v26  ;;  %v7031_v26 = vld [vmem:[#allocation69_spill] sm:$0xff] }
 0x79b   : > { %2545 = vmatprep.subr.bf16.mxu0 %v4022_v4  ;;  %2627 = vmatprep.subr.bf16.mxu1 %v6977_v9  ;;  %v7033_v9 = vld [vmem:[#allocation71_spill] sm:$0xff] }
 0x79e   : > { %2546 = vmatpush1.bf16.msra.mxu0 %v7023_v6  ;;  %2628 = vmatpush1.bf16.msra.mxu1 %v7024_v7 }
 0x79f   : > { %2547 = vmatprep.subr.bf16.mxu0 %v7025_v37  ;;  %2629 = vmatprep.subr.bf16.mxu1 %v7026_v0 }
 0x7a2   : > { %2548 = vmatpush1.bf16.msra.mxu0 %v7027_v44  ;;  %2630 = vmatpush1.bf16.msra.mxu1 %v7028_v38 }
 0x7a3   : > { %2549 = vmatprep.subr.bf16.mxu0 %v7029_v32  ;;  %2631 = vmatprep.subr.bf16.mxu1 %v7030_v39 }
 0x7a6   : > { %2550 = vmatpush1.bf16.msra.mxu0 %v7031_v26  ;;  %2632 = vmatpush1.bf16.msra.mxu1 %v7032_v60 }
 0x7a7   : > { %2560 = vmatprep.subr.bf16.mxu0 %v7033_v9  ;;  %2642 = vmatprep.subr.bf16.mxu1 %v7034_v22 }
 0x83c   : > { %v2414_v27 = vpop.f32.mrb[24].mxu0  ;;  %v5976_v12 = vpop.f32.mrb[24].mxu1 }
 0x83d   : > { %v3431_v8 = vadd.f32 %v2414_v27, %v4979_v57  ;;  %v2416_v36 = vpop.f32.mrb[25].mxu0  ;;  %v2498_v28 = vpop.f32.mrb[25].mxu1 }
 0x83e   : > { %v3432_v2 = vadd.f32 %v2416_v36, %v4984_v59  ;;  %v3434_v4 = vadd.f32 %v2498_v28, %v4989_v61  ;;  %v2418_v6 = vpop.f32.mrb[26].mxu0  ;;  %v2500_v7 = vpop.f32.mrb[26].mxu1 }
 0x83f   : > { %v2503_v37 = vmul.f32 0.01, %v3431_v8  ;;  %v2419_v0 = vpop.f32.mrb[27].mxu0  ;;  %v2501_v44 = vpop.f32.mrb[27].mxu1  ;;  %v3831_v6 = vld [vmem:[#allocation8 + $0x18] sm:$0xff]  }
 0x840   : > { %v2504_v38 = vmul.f32 0.01, %v3432_v2  ;;  %v2506_v32 = vmul.f32 0.01, %v3434_v4  ;;  %v3832_v7 = vld [vmem:[#allocation8 + $0x98] sm:$0xff]   ;;  %v3834_v0 = vld [vmem:[#allocation8 + $0xe0] sm:$0xff]  }
 0x841   : > { %v2507_v39 = vmax.f32 %v3431_v8, %v2503_v37  ;;  %v3828_v8 = vld [vmem:[#allocation8 + $0x90] sm:$0xff]   ;;  %v3833_v37 = vld [vmem:[#allocation8 + $0x60] sm:$0xff]  }
 0x842   : > { %v2508_v26 = vmax.f32 %v3432_v2, %v2504_v38  ;;  %v2510_v60 = vmax.f32 %v3434_v4, %v2506_v32  ;;  %v3829_v2 = vld [vmem:[#allocation8 + $0x58] sm:$0xff]   ;;  %v3835_v44 = vld [vmem:[#allocation8 + $0x20] sm:$0xff]   ;;  %v3837_v32 = vld [vmem:[#allocation8 + $0x68] sm:$0xff]  }
 0x843   : > { %v5982_v9 = vadd.f32 %v2507_v39, %v5873_v31  ;;  %v3830_v4 = vld [vmem:[#allocation8 + $0xd8] sm:$0xff]   ;;  %v3836_v38 = vld [vmem:[#allocation8 + $0xa0] sm:$0xff]   ;;  %v3838_v39 = vld [vmem:[#allocation8 + $0xe8] sm:$0xff]  }
 0x844   : > { %v5985_v22 = vadd.f32 %v2508_v26, %v5876_v5  ;;  %v5988_v27 = vadd.f32 %v2510_v60, %v5879_v24  ;;  %v7052_v5 = vld [vmem:[#allocation96_spill] sm:$0xff]  ;;  %v3839_v26 = vld [vmem:[#allocation8 + $0x28] sm:$0xff]  }
 0x845   : > { %v2515_v28 = vpack.c.bf16 %v5982_v9, %v5982_v9  ;;  %v3840_v60 = vld [vmem:[#allocation8 + $0xa8] sm:$0xff]  }
 0x846   : > { %v2516_v36 = vpack.c.bf16 %v5985_v22, %v5985_v22  ;;  %v2518_v31 = vpack.c.bf16 %v5988_v27, %v5988_v27 }
 0x848   : > { %2551 = vmatprep.mubr.bf16.mxu0 %v2516_v36  ;;  %2633 = vmatprep.mubr.bf16.mxu1 %v2516_v36  ;;  %v3841_v36 = vld [vmem:[#allocation8 + $0x70] sm:$0xff]  }
 0x849   : > { %2552 = vmatmul.mubr.bf16.vlgmr.msra.gmra.mrb[28].mxu0 %v2515_v28  ;;  %2634 = vmatmul.mubr.bf16.vlgmr.msra.gmra.mrb[28].mxu1 %v2515_v28  ;;  %v3842_v28 = vld [vmem:[#allocation8 + $0xf0] sm:$0xff]  }
 0x84a   : > { %2561 = vmatpush1.bf16.msra.mxu0 %v5453_v15  ;;  %2643 = vmatpush1.bf16.msra.mxu1 %v5456_v10  ;;  %v7035_v15 = vld [vmem:[#allocation92_spill] sm:$0xff]  ;;  %v7036_v10 = vld [vmem:[#allocation21_spill] sm:$0xff] }
 0x84b   : > { %2592 = vmatprep.mubr.bf16.mxu0 %v2518_v31  ;;  %2674 = vmatprep.mubr.bf16.mxu1 %v2518_v31  ;;  %v3843_v31 = vld [vmem:[#allocation8 + $0x30] sm:$0xff]  }
 0x84c   : > { %2562 = vmatprep.subr.bf16.mxu0 %v5459_v16  ;;  %2644 = vmatprep.subr.bf16.mxu1 %v5462_v19  ;;  %v7037_v16 = vld [vmem:[#allocation18_spill] sm:$0xff]  ;;  %v7038_v19 = vld [vmem:[#allocation23_spill] sm:$0xff] }
 0x84e   : > { %2563 = vmatpush1.bf16.msra.mxu0 %v5465_v20  ;;  %2645 = vmatpush1.bf16.msra.mxu1 %v5468_v40  ;;  %v7039_v20 = vld [vmem:[#allocation19_spill] sm:$0xff]  ;;  %v7040_v40 = vld [vmem:[#allocation20_spill] sm:$0xff] }
 0x84f   : > { %2564 = vmatprep.subr.bf16.mxu0 %v5471_v49  ;;  %2646 = vmatprep.subr.bf16.mxu1 %v5474_v51  ;;  %v7041_v49 = vld [vmem:[#allocation26_spill] sm:$0xff]  ;;  %v7042_v51 = vld [vmem:[#allocation28_spill] sm:$0xff] }
 0x852   : > { %2565 = vmatpush1.bf16.msra.mxu0 %v5477_v52  ;;  %2647 = vmatpush1.bf16.msra.mxu1 %v5480_v53  ;;  %v7043_v52 = vld [vmem:[#allocation29_spill] sm:$0xff]  ;;  %v7044_v53 = vld [vmem:[#allocation30_spill] sm:$0xff] }
 0x853   : > { %2566 = vmatprep.subr.bf16.mxu0 %v5483_v54  ;;  %2648 = vmatprep.subr.bf16.mxu1 %v6902_v47  ;;  %v7045_v54 = vld [vmem:[#allocation31_spill] sm:$0xff]  ;;  %v7046_v47 = vld [vmem:[#allocation32_spill] sm:$0xff] }
 0x856   : > { %2567 = vmatpush1.bf16.msra.mxu0 %v6903_v13  ;;  %2649 = vmatpush1.bf16.msra.mxu1 %v6904_v50  ;;  %v7047_v13 = vld [vmem:[#allocation33_spill] sm:$0xff]  ;;  %v7048_v50 = vld [vmem:[#allocation34_spill] sm:$0xff] }
 0x857   : > { %2568 = vmatprep.subr.bf16.mxu0 %v6905_v21  ;;  %2650 = vmatprep.subr.bf16.mxu1 %v6906_v14  ;;  %v7049_v21 = vld [vmem:[#allocation35_spill] sm:$0xff]  ;;  %v7050_v14 = vld [vmem:[#allocation38_spill] sm:$0xff] }
 0x85a   : > { %2569 = vmatpush1.bf16.msra.mxu0 %v6907_v11  ;;  %2651 = vmatpush1.bf16.msra.mxu1 %v6990_v63  ;;  %v3433_v11 = vadd.f32 %v5976_v12, %v6679_v30  ;;  %v7053_v63 = vld [vmem:[#allocation76_spill] sm:$0xff] }
 0x85b   : > { %2570 = vmatprep.subr.bf16.mxu0 %v6991_v23  ;;  %2652 = vmatprep.subr.bf16.mxu1 %v6992_v29  ;;  %v7055_v23 = vld [vmem:[#allocation40_spill] sm:$0xff] }
 0x85c   : > { %v2505_v24 = vmul.f32 0.01, %v3433_v11  ;;  %v3827_v12 = vld [vmem:[#allocation8 + $0x10] sm:$0xff]  }
 0x85e   : > { %2571 = vmatpush1.bf16.msra.mxu0 %v6993_v34  ;;  %2653 = vmatpush1.bf16.msra.mxu1 %v6994_v55  ;;  %v7056_v34 = vld [vmem:[#allocation27_spill] sm:$0xff]  ;;  %v3818_v55 = vld [vmem:[#allocation8 + $0xc0] sm:$0xff]  }
 0x85f   : > { %2572 = vmatprep.subr.bf16.mxu0 %v6995_v58  ;;  %2654 = vmatprep.subr.bf16.mxu1 %v7035_v15  ;;  %v7058_v58 = vld [vmem:[#allocation97_spill] sm:$0xff]  ;;  %v3844_v15 = vld [vmem:[#allocation8 + $0xb0] sm:$0xff]  }
 0x862   : > { %2573 = vmatpush1.bf16.msra.mxu0 %v6997_v62  ;;  %2655 = vmatpush1.bf16.msra.mxu1 %v7036_v10  ;;  %v3820_v62 = vld [vmem:[#allocation8 + $0x80] sm:$0xff]   ;;  %v3845_v10 = vld [vmem:[#allocation8 + $0x78] sm:$0xff]  }
 0x863   : > { %2574 = vmatprep.subr.bf16.mxu0 %v6999_v1  ;;  %2656 = vmatprep.subr.bf16.mxu1 %v7000_v3  ;;  %v3821_v1 = vld [vmem:[#allocation8 + $0x48] sm:$0xff]  }
 0x864   : > { %v3822_v3 = vld [vmem:[#allocation8 + $0xc8] sm:$0xff]  }
 0x866   : > { %2575 = vmatpush1.bf16.msra.mxu0 %v7037_v16  ;;  %2657 = vmatpush1.bf16.msra.mxu1 %v7038_v19  ;;  %v3846_v16 = vld [vmem:[#allocation8 + $0xf8] sm:$0xff]  }
 0x867   : > { %2576 = vmatprep.subr.bf16.mxu0 %v7039_v20  ;;  %2658 = vmatprep.subr.bf16.mxu1 %v7004_v18  ;;  %v3824_v18 = vld [vmem:[#allocation8 + $0x88] sm:$0xff]   ;;  %v3847_v19 = vld [vmem:[#allocation8 + $0x38] sm:$0xff]  }
 0x868   : > { %v3848_v20 = vld [vmem:[#allocation8 + $0xb8] sm:$0xff]  }
 0x86a   : > { %2577 = vmatpush1.bf16.msra.mxu0 %v7040_v40  ;;  %2659 = vmatpush1.bf16.msra.mxu1 %v7006_v46  ;;  %v3826_v46 = vld [vmem:[#allocation8 + $0xd0] sm:$0xff]  }
 0x86b   : > { %2578 = vmatprep.subr.bf16.mxu0 %v7041_v49  ;;  %2660 = vmatprep.subr.bf16.mxu1 %v6926_v35  ;;  %v7051_v35 = vld [vmem:[#allocation39_spill] sm:$0xff] }
 0x86e   : > { %2579 = vmatpush1.bf16.msra.mxu0 %v7042_v51  ;;  %2661 = vmatpush1.bf16.msra.mxu1 %v7043_v52 }
 0x86f   : > { %2580 = vmatprep.subr.bf16.mxu0 %v7044_v53  ;;  %2662 = vmatprep.subr.bf16.mxu1 %v7045_v54 }
 0x872   : > { %2581 = vmatpush1.bf16.msra.mxu0 %v7046_v47  ;;  %2663 = vmatpush1.bf16.msra.mxu1 %v7047_v13 }
 0x873   : > { %2582 = vmatprep.subr.bf16.mxu0 %v7048_v50  ;;  %2664 = vmatprep.subr.bf16.mxu1 %v7049_v21 }
 0x876   : > { %2583 = vmatpush1.bf16.msra.mxu0 %v6935_v25  ;;  %2665 = vmatpush1.bf16.msra.mxu1 %v7050_v14  ;;  %v2509_v25 = vmax.f32 %v3433_v11, %v2505_v24 }
 0x877   : > { %2584 = vmatprep.subr.bf16.mxu0 %v7051_v35  ;;  %2666 = vmatprep.subr.bf16.mxu1 %v7014_v48  ;;  %v7054_v48 = vld [vmem:[#allocation78_spill] sm:$0xff] }
 0x878   : > { %v6057_v29 = vadd.f32 %v2509_v25, %v7055_v23 }
 0x87a   : > { %2585 = vmatpush1.bf16.msra.mxu0 %v7015_v43  ;;  %2667 = vmatpush1.bf16.msra.mxu1 %v7052_v5  ;;  %v3823_v43 = vld [vmem:[#allocation8 + $0x8] sm:$0xff]  }
 0x87b   : > { %2586 = vmatprep.subr.bf16.mxu0 %v7017_v17  ;;  %2668 = vmatprep.subr.bf16.mxu1 %v7018_v33  ;;  %v7057_v17 = vld [vmem:[#allocation36_spill] sm:$0xff]  ;;  %v3817_v33 = vld [vmem:[#allocation8 + $0x40] sm:$0xff]  }
 0x87e   : > { %2587 = vmatpush1.bf16.msra.mxu0 %v7019_v56  ;;  %2669 = vmatpush1.bf16.msra.mxu1 %v5769_v41  ;;  %v7059_v41 = vld [vmem:[#allocation98_spill] sm:$0xff]  ;;  %v3825_v56 = vld [vmem:[#allocation8 + $0x50] sm:$0xff]  }
 0x87f   : > { %2588 = vmatprep.subr.bf16.mxu0 %v5772_v45  ;;  %2670 = vmatprep.subr.bf16.mxu1 %v7053_v63  ;;  %v3819_v45 = vld [vmem:[#allocation8] sm:$0xff]  }
 0x882   : > { %2589 = vmatpush1.bf16.msra.mxu0 %v7021_v42  ;;  %2671 = vmatpush1.bf16.msra.mxu1 %v7054_v48  ;;  %v2517_v42 = vpack.c.bf16 %v6057_v29, %v6057_v29 }
 0x883   : > { %2590 = vmatprep.subr.bf16.mxu0 %v7056_v34  ;;  %2672 = vmatprep.subr.bf16.mxu1 %v7057_v17 }
 0x886   : > { %2591 = vmatpush1.bf16.msra.mxu0 %v7058_v58  ;;  %2673 = vmatpush1.bf16.msra.mxu1 %v7059_v41 }
 0x887   : > { %3367 = vmatprep.subr.bf16.mxu0 %v3817_v33  ;;  %3389 = vmatprep.subr.bf16.mxu1 %v3818_v55 }
 0x889   : > { %2593 = vmatmul.mubr.bf16.vlgmr.msra.gmra.mrb[28].mxu0 %v2517_v42  ;;  %2675 = vmatmul.mubr.bf16.vlgmr.msra.gmra.mrb[28].mxu1 %v2517_v42 }
 0x88a   : > { %3368 = vmatpush3.bf16.msra.mxu0 %v3819_v45  ;;  %3390 = vmatpush3.bf16.msra.mxu1 %v3820_v62 }
 0x88b   : > { %3369 = vmatprep.subr.bf16.mxu0 %v3821_v1  ;;  %3391 = vmatprep.subr.bf16.mxu1 %v3822_v3 }
 0x88e   : > { %3370 = vmatpush3.bf16.msra.mxu0 %v3823_v43  ;;  %3392 = vmatpush3.bf16.msra.mxu1 %v3824_v18 }
 0x88f   : > { %3371 = vmatprep.subr.bf16.mxu0 %v3825_v56  ;;  %3393 = vmatprep.subr.bf16.mxu1 %v3826_v46 }
 0x892   : > { %3372 = vmatpush3.bf16.msra.mxu0 %v3827_v12  ;;  %3394 = vmatpush3.bf16.msra.mxu1 %v3828_v8 }
 0x893   : > { %3373 = vmatprep.subr.bf16.mxu0 %v3829_v2  ;;  %3395 = vmatprep.subr.bf16.mxu1 %v3830_v4 }
 0x896   : > { %3374 = vmatpush3.bf16.msra.mxu0 %v3831_v6  ;;  %3396 = vmatpush3.bf16.msra.mxu1 %v3832_v7 }
 0x897   : > { %3375 = vmatprep.subr.bf16.mxu0 %v3833_v37  ;;  %3397 = vmatprep.subr.bf16.mxu1 %v3834_v0 }
 0x89a   : > { %3376 = vmatpush3.bf16.msra.mxu0 %v3835_v44  ;;  %3398 = vmatpush3.bf16.msra.mxu1 %v3836_v38 }
 0x89b   : > { %3377 = vmatprep.subr.bf16.mxu0 %v3837_v32  ;;  %3399 = vmatprep.subr.bf16.mxu1 %v3838_v39 }
 0x89e   : > { %3378 = vmatpush3.bf16.msra.mxu0 %v3839_v26  ;;  %3400 = vmatpush3.bf16.msra.mxu1 %v3840_v60 }
 0x89f   : > { %3379 = vmatprep.subr.bf16.mxu0 %v3841_v36  ;;  %3401 = vmatprep.subr.bf16.mxu1 %v3842_v28 }
 0x8a2   : > { %3380 = vmatpush3.bf16.msra.mxu0 %v3843_v31  ;;  %3402 = vmatpush3.bf16.msra.mxu1 %v3844_v15 }
 0x8a3   : > { %3381 = vmatprep.subr.bf16.mxu0 %v3845_v10  ;;  %3403 = vmatprep.subr.bf16.mxu1 %v3846_v16 }
 0x8a6   : > { %3382 = vmatpush3.bf16.msra.mxu0 %v3847_v19  ;;  %3404 = vmatpush3.bf16.msra.mxu1 %v3848_v20 }
 0x95c   : > { %v2594_v40 = vpop.f32.mrb[28].mxu0  ;;  %v2676_v49 = vpop.f32.mrb[28].mxu1 }
 0x95d   : > { %v3435_v51 = vadd.f32 %v2594_v40, %v4979_v57  ;;  %v3437_v52 = vadd.f32 %v2676_v49, %v6679_v30  ;;  %v2596_v53 = vpop.f32.mrb[29].mxu0  ;;  %v2678_v54 = vpop.f32.mrb[29].mxu1 }
 0x95e   : > { %v3436_v47 = vadd.f32 %v2596_v53, %v4984_v59  ;;  %v3438_v13 = vadd.f32 %v2678_v54, %v4989_v61  ;;  %v2598_v50 = vpop.f32.mrb[30].mxu0  ;;  %v2680_v21 = vpop.f32.mrb[30].mxu1 }
 0x95f   : > { %v2683_v14 = vmul.f32 0.01, %v3435_v51  ;;  %v2685_v11 = vmul.f32 0.01, %v3437_v52  ;;  %v2599_v35 = vpop.f32.mrb[31].mxu0  ;;  %v2681_v5 = vpop.f32.mrb[31].mxu1 }
 0x960   : > { %v2684_v24 = vmul.f32 0.01, %v3436_v47  ;;  %v2686_v25 = vmul.f32 0.01, %v3438_v13 }
 0x961   : > { %v2687_v63 = vmax.f32 %v3435_v51, %v2683_v14  ;;  %v2689_v48 = vmax.f32 %v3437_v52, %v2685_v11 }
 0x962   : > { %v2688_v23 = vmax.f32 %v3436_v47, %v2684_v24  ;;  %v2690_v57 = vmax.f32 %v3438_v13, %v2686_v25 }
 0x963   : > { %v2691_v30 = vadd.f32 %v2687_v63, %v5982_v9  ;;  %v2693_v34 = vadd.f32 %v2689_v48, %v6057_v29  ;;  %v3330_v9 = vld [vmem:[%s6132_s6] ss:$0 sm:$0xff] }
 0x964   : > { %v2692_v59 = vadd.f32 %v2688_v23, %v5985_v22  ;;  %v2694_v61 = vadd.f32 %v2690_v57, %v5988_v27 }
 0x965   : > { %v2695_v55 = vpack.c.bf16 %v2691_v30, %v2691_v30  ;;  %v2697_v58 = vpack.c.bf16 %v2693_v34, %v2693_v34 }
 0x966   : > { %v2696_v17 = vpack.c.bf16 %v2692_v59, %v2692_v59  ;;  %v2698_v33 = vpack.c.bf16 %v2694_v61, %v2694_v61 }
 0x968   : > { %2994 = vmatprep.mubr.bf16.mxu0 %v2696_v17  ;;  %3034 = vmatprep.mubr.bf16.mxu1 %v2698_v33 }
 0x969   : > { %2995 = vmatmul.mubr.bf16.vlgmr.msra.gmra.mrb[32].mxu0 %v2695_v55  ;;  %3035 = vmatmul.mubr.bf16.vlgmr.msra.gmra.mrb[32].mxu1 %v2697_v58 }
 0xa3c   : > { %v3383_v41 = vpop.f32.mrb[32].mxu0  ;;  %v3405_v45 = vpop.f32.mrb[32].mxu1 }
 0xa3d   : > { %v3384_v29 = vpop.f32.mrb[33].mxu0  ;;  %v3406_v22 = vpop.f32.mrb[33].mxu1 }
 0xa3e   : > { %v3385_v27 = vadd.f32 %v3384_v29, %v3383_v41  ;;  %v3407_v62 = vadd.f32 %v3406_v22, %v3405_v45  ;;  %v3386_v42 = vpop.f32.mrb[34].mxu0  ;;  %v3408_v1 = vpop.f32.mrb[34].mxu1 }
 0xa3f   : > { %v3387_v3 = vpop.f32.mrb[35].mxu0  ;;  %v3409_v43 = vpop.f32.mrb[35].mxu1 }
 0xa40   : > { %v2997_v18 = vadd.f32 %v3385_v27, %v3330_v9 }
 0xa42   : > { %v3037_v56 = vadd.f32 %v3407_v62, %v2997_v18 }
 0xa44   : > { %3042 = vst [vmem:[%s337_s12] sm:$0xff] %v3037_v56 }
 0xa45   : > { %4150 = shalt.err (!%p4147_p4)
}
 0xa46   : > { %s4151_s15 = scalar_lea.hbm %s6082_s21, 128  ;;  %s4155_s22 = scalar_lea.hbm %s6133_s7, 256 }
 0xa47   : > { %p4152_p0 = scmp.ne.s32.totalorder %s6082_s21, %s4151_s15  ;;  %p4156_p8 = scmp.lt.u32.totalorder %s6082_s21, %s6133_s7 }
 0xa48   : > { %p4157_p13 = scmp.lt.u32.totalorder %s4155_s22, %s4151_s15  ;;  %p4159_p10 = scmp.lt.u32.totalorder %s4151_s15, %s6082_s21 }
 0xa49   : > { %p4153_p9 = pnand %p4152_p0, %p4408_p5 }
 0xa4a   : > { %p4158_p6 = por %p4157_p13, %p4156_p8 }
 0xa4b   : > { %p4154_p11 = pneg %p4153_p9 }
 0xa4c   : > { %p4160_p3 = por %p4159_p10, %p4158_p6 }
 0xa4e   : > { %p4161_p7 = pnand %p4160_p3, %p4154_p11 }
 0xa50   : > { %4164 = shalt.err (!%p4161_p7)
}
 0xa51   : > { %3509 = dma.vmem_to_hbm [thread:$0]  (%p4408_p5), %s6084_s29, 128, %s6082_s21, %s3044_s16  }
 0xa52 PF: > { %s7060_s12 = sld [smem:[#allocation15_spill]]  ;;  %s3069_s11 = sand.u32 1, %s4199_s24  }
 0xa53   : > { %p7062_p2 = scmp.ge.s32.totalorder %s4211_s27, 2  ;;  %s3070_s17 = scalar_lea.sflag [#allocation4], %s3069_s11 }
 0xa58   : > { %p7061_p12 = scmp.ne.s32.totalorder %s7060_s12, 0 }
 0xa5a   : > { %p3526_p1 = pnand %p7062_p2, %p7061_p12 }
 0xa5c   : > { %4194 = dma.done.wait (!%p3526_p1), %s3070_s17, 128  }
 0xa5d   : > { %4196 = vsyncadd (!%p3526_p1), %s3070_s17, 4294967168  ;;  %p22_p4 = scmp.ge.s32.totalorder %s4394_s8, 4   ;;  %s7063_s24 = smov %s4203_s25 }
 0xa5e   : > { %s7064_s25 = smov %s4207_s26  ;;  %s7065_s26 = smov %s4404_s19 }
 0xa5f   : > { %s7066_s27 = smov %s4394_s8  ;;  %24 = sbr.rel (!%p22_p4) target bundleno = 7 (0x7), region = 105 }
 0xa66   :  { %3075 = vsyncpa [#allocation3], 1 }
 0xa67   :  { %3077 = vsyncpa [#allocation3 + $0x1], 1 }
 0xa68   :  { %3078 = vsyncpa [#allocation6], 1 }
 0xa69   :  { %3079 = vsyncpa [#allocation9], 1 }
 0xa6a   :  { %3080 = vsyncpa [#allocation4], 1 }
 0xa6b   :  { %3082 = vsyncpa [#allocation4 + $0x1], 1 }

</bundles_post_ra>
